<compile_context>
chip_gen: v5e
topology: v5e:2x2
jax: 0.10.0
libtpu: 0.0.40
codegen_flags: <defaults>
</compile_context>

<pallas_src>
import functools

import jax
import jax.numpy as jnp
from jax.experimental import pallas as pl
from jax.experimental.pallas import tpu as pltpu


# ---------------------------------------------------------------------------
# Kernels
# ---------------------------------------------------------------------------
def _upsample_kernel_fold_sublane(x_ref, o_ref, *, sh, sw):
    """General path: out block (tb, th*sh, tw*sw) of (B, H*sh, W*sw)."""
    x = x_ref[...]                                        # (tb, th, tw)
    tb, th, tw = x.shape
    if sw > 1:
        # Lane-axis interleaved repeat: y[..., ow] = x[..., ow // sw].
        x = jnp.broadcast_to(x[:, :, :, None], (tb, th, tw, sw)).reshape(
            tb, th, tw * sw)
    if sh > 1:
        # Fold the sh row-copies into the sublane axis: output block row r
        # equals width-upsampled input row r // sh.  Result is sublane-dense.
        x = jnp.broadcast_to(x[:, :, None, :], (tb, th, sh, tw * sw)).reshape(
            tb, th * sh, tw * sw)
    o_ref[...] = x


def _upsample_kernel_fold_lane(x_ref, o_ref, *, sh, sw):
    """Small-width path: out block (tb, th, sh*W*sw) of (B, H, sh*W*sw)."""
    x = x_ref[...]                                        # (tb, th, W)
    tb, th, w = x.shape
    if sw > 1:
        x = jnp.broadcast_to(x[:, :, :, None], (tb, th, w, sw)).reshape(
            tb, th, w * sw)
    if sh > 1:
        # The sh replicated output rows of one input row are contiguous in
        # HBM, i.e. sh concatenated copies along the lane axis.
        x = jnp.tile(x, (1, 1, sh))
    o_ref[...] = x


# ---------------------------------------------------------------------------
# Tile / VMEM budgeting helpers (all trace-time Python)
# ---------------------------------------------------------------------------
def _round_up(x, m):
    return ((x + m - 1) // m) * m


def _divisor_options(dim, align):
    """Divisors of `dim` that are multiples of `align`, descending.

    Falls back to the full extent (always layout-legal) if none exist.
    """
    opts = [d for d in range(dim, 0, -1) if dim % d == 0 and d % align == 0]
    if not opts:
        opts = [dim]
    elif opts[0] != dim:
        opts = [dim] + opts
    return opts


def _vmem_limit_bytes():
    try:
        cap = int(pltpu.get_tpu_info().vmem_capacity_bytes)
    except Exception:
        cap = 64 * 1024 * 1024  # conservative default: v7x per-TensorCore VMEM
    cap = min(cap, 128 * 1024 * 1024)
    if cap <= 64 * 1024 * 1024:
        # v7x-class part (64 MiB / TensorCore): leave headroom for pipeline
        # bookkeeping (review asked for ~40-44 MiB scoped limit).
        return min(cap * 2 // 3, 44 * 1024 * 1024)
    # v5e/v6e-class (128 MiB).  Also stay under one v7x core's physical VMEM
    # in case the capacity query is chip- rather than core-scoped.
    return min(cap * 3 // 4, 60 * 1024 * 1024)


def _pick_tiles(B, H, W, sh, sw, itemsize, sub, vmem_limit, in_bufs, row_fold):
    """Pick (tb, th, tw) so in_bufs*in + 2*out VMEM tiles fit the budget."""
    budget = int(0.9 * vmem_limit)

    def bytes_of(tb, th, tw):
        in_b = tb * _round_up(th, sub) * _round_up(tw, 128)
        if row_fold:
            out_b = tb * _round_up(th, sub) * _round_up(sh * W * sw, 128)
        else:
            out_b = tb * _round_up(th * sh, sub) * _round_up(tw * sw, 128)
        return (in_bufs * in_b + 2 * out_b) * itemsize

    tw_opts = [W] if row_fold else _divisor_options(W, 128)
    th_opts = _divisor_options(H, sub)
    tb_opts = _divisor_options(B, 1)

    tb, th, tw = tb_opts[-1], th_opts[-1], tw_opts[-1]  # smallest legal tiles
    found = False
    for tw_c in tw_opts:            # prefer the widest (lane-dense) tile
        for th_c in th_opts:        # then the tallest tile (big DMAs)
            for tb_c in tb_opts:    # shrink the batch-of-planes dim first
                if bytes_of(tb_c, th_c, tw_c) <= budget:
                    tb, th, tw = tb_c, th_c, tw_c
                    found = True
                    break
            if found:
                break
        if found:
            break
    # TODO(synk): if no (8,128)-aligned divisor tiling fits the budget (very
    # large prime-ish H *and* W), pad H/W in the wrapper instead of falling
    # back to the smallest legal (full-extent) tiles.

    # Megacore (v7x): keep the leading "parallel" grid axis >= 2 steps,
    # preferably an even count, so both TensorCores get balanced work.
    def steps(extent, tile):
        return extent // tile

    if not (steps(B, tb) >= 2 and steps(B, tb) % 2 == 0):
        for cand in tb_opts:                      # descending => minimal shrink
            if cand <= tb and steps(B, cand) >= 2 and steps(B, cand) % 2 == 0:
                tb = cand
                break
    if steps(B, tb) < 2:
        for cand in tb_opts:
            if cand <= tb and steps(B, cand) >= 2:
                tb = cand
                break
    if steps(B, tb) < 2:                          # B == 1: split H instead.
        picked = None
        for cand in th_opts:
            if cand <= th and steps(H, cand) >= 2 and steps(H, cand) % 2 == 0:
                picked = cand
                break
        if picked is None:
            for cand in th_opts:
                if cand <= th and steps(H, cand) >= 2:
                    picked = cand
                    break
        if picked is not None:
            th = picked
    return tb, th, tw


# ---------------------------------------------------------------------------
# Wrapper
# ---------------------------------------------------------------------------
@functools.partial(jax.jit, static_argnums=(1, 2, 3))
def _upsample_nearest_nchw(x_nchw, sh, sw, triple_buffer_input):
    N, C, H, W = x_nchw.shape
    dtype = x_nchw.dtype
    itemsize = jnp.dtype(dtype).itemsize
    sub = max(8, 32 // itemsize)  # sublane multiple: 8 f32, 16 bf16, 32 int8

    B = N * C
    # Free reshape: NCHW is already contiguous as (N*C, H, W).
    x3 = x_nchw.reshape(B, H, W)

    # Small-width layers: fold the sh copies into the lane axis so stores are
    # as lane-dense as possible (biggest measured lever for W*sw < 128).
    row_fold = (W * sw) < 512

    vmem_limit = _vmem_limit_bytes()
    in_bufs = 3 if triple_buffer_input else 2
    tb, th, tw = _pick_tiles(B, H, W, sh, sw, itemsize, sub, vmem_limit,
                             in_bufs, row_fold)

    in_spec_kwargs = {}
    if triple_buffer_input:
        # Writeback-dominated pipeline: a 3rd (cheap) input buffer keeps reads
        # ahead of the long output DMAs.
        in_spec_kwargs = dict(pipeline_mode=pl.Buffered(buffer_count=3))

    bytes_accessed = (1 + sh * sw) * B * H * W * itemsize
    cost = pl.CostEstimate(flops=0, transcendentals=0,
                           bytes_accessed=bytes_accessed)

    if row_fold:
        kernel = functools.partial(_upsample_kernel_fold_lane, sh=sh, sw=sw)
        out = pl.pallas_call(
            kernel,
            out_shape=jax.ShapeDtypeStruct((B, H, sh * W * sw), dtype),
            grid=(B // tb, H // th),
            in_specs=[pl.BlockSpec((tb, th, W), lambda b, i: (b, i, 0),
                                   **in_spec_kwargs)],
            out_specs=pl.BlockSpec((tb, th, sh * W * sw),
                                   lambda b, i: (b, i, 0)),
            compiler_params=pltpu.CompilerParams(
                dimension_semantics=("parallel", "parallel"),
                vmem_limit_bytes=vmem_limit),
            cost_estimate=cost,
        )(x3)
    else:
        kernel = functools.partial(_upsample_kernel_fold_sublane, sh=sh, sw=sw)
        out = pl.pallas_call(
            kernel,
            out_shape=jax.ShapeDtypeStruct((B, H * sh, W * sw), dtype),
            grid=(B // tb, H // th, W // tw),
            in_specs=[pl.BlockSpec((tb, th, tw), lambda b, i, j: (b, i, j),
                                   **in_spec_kwargs)],
            out_specs=pl.BlockSpec((tb, th * sh, tw * sw),
                                   lambda b, i, j: (b, i, j)),
            compiler_params=pltpu.CompilerParams(
                dimension_semantics=("parallel", "parallel", "parallel"),
                vmem_limit_bytes=vmem_limit),
            cost_estimate=cost,
        )(x3)

    # Both output layouts are bit-identical in HBM to (N, C, H*sh, W*sw):
    # this reshape is metadata-only (no data movement).
    return out.reshape(N, C, H * sh, W * sw)


_BUFFERED3_SUPPORTED = None  # one-time capability probe for pl.Buffered(3)


def _upsample_dispatch(x_nchw, sh, sw):
    global _BUFFERED3_SUPPORTED
    if _BUFFERED3_SUPPORTED is None:
        try:
            out = _upsample_nearest_nchw(x_nchw, sh, sw, True)
            _BUFFERED3_SUPPORTED = True
            return out
        except Exception:
            # TODO(synk): pipeline_mode=pl.Buffered(3) rejected by this
            # jax/Mosaic build; fall back to default double buffering.
            _BUFFERED3_SUPPORTED = False
    return _upsample_nearest_nchw(x_nchw, sh, sw, _BUFFERED3_SUPPORTED)


class Upsample2:
    """JAX/Pallas port of the PyTorch Upsample2 module (NCHW, mode='nearest')."""

    def __init__(self, scale_factor, mode="nearest"):
        if mode != "nearest":
            # TODO(synk): bilinear/bicubic modes need an interpolating kernel.
            raise NotImplementedError("Only mode='nearest' is supported")
        if isinstance(scale_factor, (tuple, list)):
            sh, sw = scale_factor
        else:
            sh = sw = scale_factor
        assert float(sh).is_integer() and float(sw).is_integer(), (
            "integer scale factors only")
        self.sh, self.sw = int(sh), int(sw)

    def __call__(self, x_nchw):
        return _upsample_dispatch(x_nchw, self.sh, self.sw)


# ---------------------------------------------------------------------------
# Self-test
# ---------------------------------------------------------------------------
def _ref_nearest(x, sh, sw):
    return jnp.repeat(jnp.repeat(x, sh, axis=2), sw, axis=3)


if __name__ == "__main__":
    key = jax.random.PRNGKey(0)
    k1, k2, k3 = jax.random.split(key, 3)

    # 1) Module-consistent small NCHW input (lane-fold / small-W path).
    x1 = jax.random.normal(k1, (2, 4, 16, 16), dtype=jnp.float32)
    y1 = jax.block_until_ready(Upsample2(scale_factor=2)(x1))
    assert y1.shape == (2, 4, 32, 32) and y1.dtype == x1.dtype
    assert jnp.array_equal(y1, _ref_nearest(x1, 2, 2))

    # 2) Wider image (general sublane-fold path), odd plane count.
    x2 = jax.random.normal(k2, (1, 3, 8, 256), dtype=jnp.float32)
    y2 = jax.block_until_ready(Upsample2(scale_factor=2)(x2))
    assert y2.shape == (1, 3, 16, 512) and y2.dtype == x2.dtype
    assert jnp.array_equal(y2, _ref_nearest(x2, 2, 2))

    # 3) bf16 with asymmetric integer factors.
    x3 = jax.random.normal(k3, (1, 2, 16, 128), dtype=jnp.bfloat16)
    y3 = jax.block_until_ready(Upsample2(scale_factor=(3, 2))(x3))
    assert y3.shape == (1, 2, 48, 256) and y3.dtype == x3.dtype
    assert jnp.array_equal(y3, _ref_nearest(x3, 3, 2))

    print("KERNEL_OK")
</pallas_src>

<mosaic_0001>
module attributes {stable_mosaic.version = 11 : i64} {
  func.func @_upsample_kernel_fold_lane(%arg0: i32, %arg1: i32, %arg2: memref<4x16x16xf32, #tpu.memory_space<vmem>>, %arg3: memref<4x16x64xf32, #tpu.memory_space<vmem>>) attributes {dimension_semantics = [#tpu.dimension_semantics<parallel>, #tpu.dimension_semantics<parallel>], iteration_bounds = array<i64: 2, 1>, scalar_prefetch = 0 : i64, scratch_operands = 0 : i64, tpu.core_type = #tpu.core_type<tc>, window_params = [{transform_indices = @transform_0, window_bounds = array<i64: 4, 16, 16>}, {transform_indices = @transform_1, window_bounds = array<i64: 4, 16, 64>}]} {
    %c0 = arith.constant 0 : index
    %c0_0 = arith.constant 0 : index
    %c0_1 = arith.constant 0 : index
    %0 = vector.load %arg2[%c0, %c0_0, %c0_1] : memref<4x16x16xf32, #tpu.memory_space<vmem>>, vector<4x16x16xf32>
    %1 = vector.shape_cast %0 : vector<4x16x16xf32> to vector<4x16x16x1xf32>
    %2 = vector.shape_cast %1 : vector<4x16x16x1xf32> to vector<4x16x16x1xf32>
    %3 = vector.broadcast %2 : vector<4x16x16x1xf32> to vector<4x16x16x2xf32>
    %4 = vector.shape_cast %3 : vector<4x16x16x2xf32> to vector<4x16x32xf32>
    %5 = tpu.concatenate %4, %4 in 2 : vector<4x16x32xf32>, vector<4x16x32xf32> -> vector<4x16x64xf32>
    %c0_2 = arith.constant 0 : index
    %c0_3 = arith.constant 0 : index
    %c0_4 = arith.constant 0 : index
    %6 = vector.load %arg3[%c0_2, %c0_3, %c0_4] : memref<4x16x64xf32, #tpu.memory_space<vmem>>, vector<4x16x64xf32>
    tpu.vector_store %arg3[%c0_2, %c0_3, %c0_4], %5 {strides = array<i32>} : memref<4x16x64xf32, #tpu.memory_space<vmem>>, vector<4x16x64xf32>,
    return
  }
  func.func @transform_0(%arg0: i32, %arg1: i32) -> (i32, i32, i32) {
    %c0_i32 = arith.constant 0 : i32
    %c0_i32_0 = arith.constant 0 : i32
    return %arg0, %arg1, %c0_i32 : i32, i32, i32
  }
  func.func @transform_1(%arg0: i32, %arg1: i32) -> (i32, i32, i32) {
    %c0_i32 = arith.constant 0 : i32
    %c0_i32_0 = arith.constant 0 : i32
    return %arg0, %arg1, %c0_i32 : i32, i32, i32
  }
}

</mosaic_0001>

<bundles_post_ra>
// kernel: _upsample_nearest_nchw.1
= control target key start
LH: loop header
LB: loop body
LE: loop exit
PB: predicated region body
PF: predicated region fallthrough
CT: control target
= control target key end

     0   :  { %6 = vsyncpa [#allocation3], 0  ;;  %s6139_s0 = inlined_call_operand.hbm [shape: f32[8,16,16], index: 0, kind: input, shape index: {}]   ;;  %s6140_s1 = inlined_call_operand.vmem [shape: f32[8,16,64], index: 1, kind: output, shape index: {}]  }
   0x1   :  { %8 = vsyncpa [#allocation3 + $0x1], 0  ;;  %s3831_s6 = smov 0   ;;  %s3833_s7 = smov 0  }
   0x2   :  { %s3835_s8 = smov 0   ;;  %s3837_s9 = smov 0  }
   0x3   :  { %s3839_s10 = smov 0   ;;  %s3841_s11 = smov 0  }
   0x4 LB: > { %s3568_s12 = sadd.s32 4294967295, %s3799_s11   ;;  %s26_s13 = sadd.s32 1, %s3795_s10  ;;  %s3799_s11 = sphi %s3841_s11, %s14_s11   ;;  %s3795_s10 = sphi %s3839_s10, %s6514_s10   ;;  %s3791_s9 = sphi %s3837_s9, %s6513_s9   ;;  %s3787_s8 = sphi %s3835_s8, %s6512_s8   ;;  %s3783_s7 = sphi %s3833_s7, %s6511_s7   ;;  %s3779_s6 = sphi %s3831_s6, %s6510_s6  }
   0x5   : > { %p28_p0 = scmp.ge.s32.totalorder %s26_s13, 2  ;;  %s35_s14 = sadd.s32 1, %s3787_s8 }
   0x6   : > { %p42_p1 = scmp.ne.s32.totalorder %s3787_s8, %s3783_s7  ;;  %p43_p2 = scmp.eq.s32.totalorder %s3799_s11, 0 }
   0x7   : > { %s6516_s13 = smov (%p28_p0, %s26_s13), 0  ;;  %p48_p4 = scmp.ne.s32.totalorder %s3783_s7, %s3779_s6 }
   0x8   : > { %p3867_p3 = por %p43_p2, %p42_p1  ;;  %s30_s16 = ssub.s32 %s3795_s10, %s6516_s13 }
   0x9   : > { %p49_p5 = scmp.eq.s32.totalorder %s3568_s12, 0  ;;  %p33_p6 = scmp.eq.s32.totalorder %s30_s16, 0 }
   0xa   : > { %p3592_p8 = scmp.lt.s32.totalorder %s3799_s11, 2  ;;  %s100_s19 = sand.u32 1, %s3787_s8  }
   0xb   : > { %p3874_p7 = por %p49_p5, %p48_p4  ;;  %s3584_s20 = sshll.u32 %s3795_s10, 6 }
   0xc   : > { %s3880_s18 = scalar_select %p33_p6, %s3787_s8, %s35_s14  }
   0xd   : > { %s3572_s21 = sshll.u32 %s100_s19, 6  ;;  %s112_s24 = scalar_lea.hbm %s6139_s0, %s3584_s20 }
   0xe   : > { %s113_s25 = sshll.u32 %s112_s24, 4  ;;  %s104_s26 = scalar_lea.vmem [#allocation2], %s3572_s21  ;;  %s114_s25 = int_to_ptr.hbm [resolvable:$true] %s113_s25 }
   0xf   : > { %s115_s27 = sshll.u32 %s104_s26, 4  ;;  %p3589_p9 = pnand %p3592_p8, %p3867_p3  ;;  %s116_s27 = int_to_ptr.vmem [resolvable:$true] %s115_s27 }
  0x10   : > { %p3576_p10 = scmp.ge.s32.totalorder %s3799_s11, 1  ;;  %p123_p11 = scmp.lt.s32.totalorder %s3799_s11, 3 }
  0x11   : > { %s101_s28 = scalar_lea.sflag [#allocation3], %s100_s19  ;;  %s3801_s29 = smov 128  }
  0x12   : > { %s3802_s30 = smov 8   ;;  %p124_p12 = pnand %p3576_p10, %p123_p11 }
  0x13   : > { %3591 = dma.hbm_to_vmem [thread:$0]  (!%p3589_p9), %s114_s25, 1024, %s116_s27, %s101_s28, %s3801_s29, %s3801_s29, %s3802_s30  }
  0x14   : > { %127 = sbr.rel (%p124_p12) target bundleno = 1304 (0x518), region = 24 }
  0x19   : > { %s129_s2 = sand.u32 1, %s3783_s7  }
  0x1a   : > { %s3577_s3 = sshll.u32 %s129_s2, 6  ;;  %s130_s4 = scalar_lea.sflag [#allocation3], %s129_s2 }
  0x1b   : > { %s3892_s5 = scalar_lea.vmem [#allocation2], %s3577_s3 }
  0x1c   : > { %3774 = dma.done.wait (%p3874_p7), %s130_s4, 1024  }
  0x1d   : > { %3776 = vsyncadd (%p3874_p7), %s130_s4, 4294966272  ;;  %v181_v0 = vlaneseq  ;;  %v3904_v2 = vld [vmem:[%s3892_s5] sm:$0xff]  ;;  %v3918_v8 = vld [vmem:[%s3892_s5 + $0x8] sm:$0xff]  ;;  %v3803_v43 = vmov 1983009808   ;;  %vm1013_vm0 = vcmask 1047556  }
  0x1e   : > { %v206_v3 = vperm.slane %v3904_v2, 2  ;;  %v193_v4 = vperm.slane %v3904_v2, 1  ;;  %v180_v5 = vperm.slane %v3904_v2, 0  ;;  %v232_v7 = vperm.slane %v3904_v2, 4  ;;  %v3927_v12 = vld [vmem:[%s3892_s5 + $0x10] sm:$0xff]  ;;  %v3934_v14 = vld [vmem:[%s3892_s5 + $0x18] sm:$0xff] }
  0x1f   : > { %v3898_v1 = vshrl.u32 %v181_v0, 7  ;;  %v297_v9 = vperm.slane %v3918_v8, 1  ;;  %v219_v10 = vperm.slane %v3904_v2, 3  ;;  %v362_v11 = vperm.slane %v3918_v8, 6  ;;  %v3946_v19 = vld [vmem:[%s3892_s5 + $0x20] sm:$0xff]  ;;  %v3958_v23 = vld [vmem:[%s3892_s5 + $0x28] sm:$0xff] }
  0x20   : > { %v427_v13 = vperm.slane %v3927_v12, 3  ;;  %v245_v15 = vperm.slane %v3904_v2, 5  ;;  %v6156_v16 = vperm.slane %v3934_v14, 0  ;;  %v258_v17 = vperm.slane %v3904_v2, 6  ;;  %v3965_v26 = vld [vmem:[%s3892_s5 + $0x30] sm:$0xff]  ;;  %v3977_v30 = vld [vmem:[%s3892_s5 + $0x38] sm:$0xff] }
  0x21   : > { %3663 = vset.pattern.permute.xlu2 %v3898_v1  ;;  %3662 = vset.pattern.permute.xlu1 %v3898_v1  ;;  %v3912_v6 = vadd.s32 8, %v3898_v1  ;;  %v6153_v18 = vperm.slane %v3934_v14, 5  ;;  %v6151_v20 = vperm.slane %v3946_v19, 2  ;;  %v271_v21 = vperm.slane %v3904_v2, 7  ;;  %s3805_s6 = smov 2   ;;  %s3806_s12 = smov 4  }
  0x22   : > { %3661 = vset.pattern.permute.xlu0 %v3898_v1  ;;  %v6149_v22 = vperm.slane %v3946_v19, 7  ;;  %v284_v24 = vperm.slane %v3918_v8, 0  ;;  %v6147_v25 = vperm.slane %v3958_v23, 4  ;;  %v6145_v27 = vperm.slane %v3965_v26, 1  ;;  %s3807_s14 = smov 6   ;;  %s3808_s15 = smov 8  }
  0x23   : > { %v310_v28 = vperm.slane %v3918_v8, 2  ;;  %v6143_v29 = vperm.slane %v3965_v26, 6  ;;  %v323_v31 = vperm.slane %v3918_v8, 3  ;;  %v6141_v32 = vperm.slane %v3977_v30, 3  ;;  %s3809_s16 = smov 10   ;;  %s3810_s17 = smov 12  }
  0x24   : > { %v336_v33 = vperm.slane %v3918_v8, 4  ;;  %v349_v35 = vperm.slane %v3918_v8, 5  ;;  %v375_v40 = vperm.slane %v3918_v8, 7  ;;  %v388_v41 = vperm.slane %v3927_v12, 0  ;;  %s3811_s19 = smov 14   ;;  %s3812_s20 = smov 16  }
  0x25   : > { %v1018_v44 = vunpack.c.l.s4 %v3803_v43  ;;  %v453_v52 = vperm.slane %v3927_v12, 5  ;;  %v6157_v0 = vperm.slane %v3934_v14, 2  ;;  %v401_v8 = vperm.slane %v3927_v12, 1  ;;  %s3813_s21 = smov 18   ;;  %s3814_s22 = smov 20  }
  0x26   : > { %v6148_v43 = vperm.slane %v3958_v23, 6  ;;  %vm3285_vm1 = vcmask 15360   ;;  %vm3294_vm2 = vcmask 31744   ;;  %vm3303_vm3 = vcmask 48128   ;;  %s3815_s23 = smov 22   ;;  %s3816_s24 = smov 24  }
  0x27   : > { %v4005_v50 = vunpack.c.0.s8 %v1018_v44  ;;  %vm3312_vm4 = vcmask 64512   ;;  %vm3321_vm5 = vcmask 80896   ;;  %vm3330_vm6 = vcmask 97280   ;;  %s3817_s25 = smov 26   ;;  %s3818_s26 = smov 28  }
  0x28   : > { %vm3339_vm7 = vcmask 113664   ;;  %vm3348_vm8 = vcmask 130048   ;;  %s3819_s27 = smov 30   ;;  %vm3357_vm9 = vcmask 146432   ;;  %vm3366_vm10 = vcmask 162816   ;;  %s3820_s28 = smov 32  }
  0x29   : > { %211 = vperm.xlu2 %3663, %v206_v3   ;;  %198 = vperm.xlu1 %3662, %v193_v4   ;;  %vm3375_vm11 = vcmask 179200   ;;  %vm3384_vm12 = vcmask 195584   ;;  %vm3393_vm13 = vcmask 211968   ;;  %vm3402_vm14 = vcmask 228352   ;;  %s3578_s29 = sshll.u32 %s3791_s9, 2 }
  0x2a   : > { %185 = vperm.xlu0 %3661, %v180_v5   ;;  %vm3411_vm15 = vcmask 244736   ;;  %p162_p13 = scmp.lt.s32.totalorder %s3578_s29, 7 }
  0x2c   : > { %s6518_s29 = smov (!%p162_p13, %s3578_s29), 7 }
  0x2d   : > { %s3585_s30 = sshll.u32 %s6518_s29, 4 }
  0x2e   : > { %s169_s4 = scalar_lea.vmem %s6140_s1, %s3585_s30 }
  0x31   : > { %3666 = vset.pattern.permute.xlu2 %v3912_v6  ;;  %3664 = vset.pattern.permute.xlu1 %v3912_v6 }
  0x32   : > { %237 = vperm.xlu0 %3661, %v232_v7  }
  0x39   : > { %217 = vperm.xlu2 %3666, %v206_v3   ;;  %204 = vperm.xlu1 %3664, %v193_v4  }
  0x3a   : > { %302 = vperm.xlu0 %3661, %v297_v9  }
  0x41   : > { %230 = vperm.xlu2 %3666, %v219_v10   ;;  %3665 = vset.pattern.permute.xlu1 %v3898_v1 }
  0x42   : > { %367 = vperm.xlu0 %3661, %v362_v11  }
  0x49   : > { %3668 = vset.pattern.permute.xlu2 %v3898_v1  ;;  %224 = vperm.xlu1 %3665, %v219_v10  }
  0x4a   : > { %432 = vperm.xlu0 %3661, %v427_v13  }
  0x51   : > { %250 = vperm.xlu2 %3668, %v245_v15   ;;  %3667 = vset.pattern.permute.xlu1 %v3912_v6 }
  0x52   : > { %497 = vperm.xlu0 %3661, %v6156_v16  }
  0x59   : > { %263 = vperm.xlu2 %3668, %v258_v17   ;;  %243 = vperm.xlu1 %3667, %v232_v7  }
  0x5a   : > { %562 = vperm.xlu0 %3661, %v6153_v18  }
  0x61   : > { %3670 = vset.pattern.permute.xlu2 %v3912_v6  ;;  %256 = vperm.xlu1 %3667, %v245_v15   ;;  %v414_v15 = vperm.slane %v3927_v12, 2 }
  0x62   : > { %627 = vperm.xlu0 %3661, %v6151_v20  }
  0x69   : > { %282 = vperm.xlu2 %3670, %v271_v21   ;;  %3669 = vset.pattern.permute.xlu1 %v3898_v1 }
  0x6a   : > { %692 = vperm.xlu0 %3661, %v6149_v22  }
  0x71   : > { %295 = vperm.xlu2 %3670, %v284_v24   ;;  %276 = vperm.xlu1 %3669, %v271_v21  }
  0x72   : > { %757 = vperm.xlu0 %3661, %v6147_v25  }
  0x79   : > { %3672 = vset.pattern.permute.xlu2 %v3898_v1  ;;  %289 = vperm.xlu1 %3669, %v284_v24  }
  0x7a   : > { %822 = vperm.xlu0 %3661, %v6145_v27  }
  0x81   : > { %315 = vperm.xlu2 %3672, %v310_v28   ;;  %3671 = vset.pattern.permute.xlu1 %v3912_v6 }
  0x82   : > { %887 = vperm.xlu0 %3661, %v6143_v29  }
  0x83   : > { %v212_v37 = vpop.permute.xlu2 %211 }
  0x84   : > { %v1012_v45 = vrot.slane %v212_v37, 4 }
  0x89   : > { %328 = vperm.xlu2 %3672, %v323_v31   ;;  %308 = vperm.xlu1 %3671, %v297_v9   ;;  %v6154_v9 = vperm.slane %v3934_v14, 7 }
  0x8a   : > { %952 = vperm.xlu0 %3661, %v6141_v32  }
  0x91   : > { %3674 = vset.pattern.permute.xlu2 %v3912_v6  ;;  %321 = vperm.xlu1 %3671, %v310_v28  }
  0x92   : > { %3711 = vset.pattern.permute.xlu0 %v3912_v6 }
  0x93   : > { %v4003_v49 = vpop.permute.xlu2 %217 }
  0x94   : > { %6252 = vst [vmem:[#allocation6_spill] sm:$0xff] %v4003_v49  ;;  %v1237_v32 = vrot.slane %v4003_v49, 4 }
  0x99   : > { %347 = vperm.xlu2 %3674, %v336_v33   ;;  %3673 = vset.pattern.permute.xlu1 %v3898_v1 }
  0x9a   : > { %191 = vperm.xlu0 %3711, %v180_v5  }
  0x9b   : > { %v199_v38 = vpop.permute.xlu1 %198  ;;  %v4029_v2 = vpop.permute.xlu2 %230 }
  0x9c   : > { %v186_v34 = vpop.permute.xlu0 %185  ;;  %v1027_v55 = vrot.slane %v199_v38, 4  ;;  %6253 = vst [vmem:[#allocation7_spill] sm:$0xff] %v4029_v2 }
  0x9d   : > { %v1015_v42 = vrot.slane %v186_v34, 4  ;;  %v1014_v51 = vsel %vm1013_vm0, %v1012_v45, %v186_v34 }
  0x9e   : > { %v4013_v54 = vperm.slane %v1014_v51, %v4005_v50 }
  0x9f   : > { %v1016_v47 = vsel %vm1013_vm0, %v212_v37, %v1015_v42 }
  0xa0   : > { %v4010_v53 = vperm.slane %v1016_v47, %v4005_v50  ;;  %v1063_v61 = vrot.slane %v4013_v54, 4 }
  0xa1   : > { %360 = vperm.xlu2 %3674, %v349_v35   ;;  %341 = vperm.xlu1 %3673, %v336_v33  }
  0xa2   : > { %269 = vperm.xlu0 %3711, %v258_v17   ;;  %v1075_v56 = vrot.slane %v4010_v53, 4  ;;  %v6152_v17 = vperm.slane %v3946_v19, 4 }
  0xa4   : > { %v3990_v36 = vpop.permute.xlu0 %237 }
  0xa5   : > { %v1039_v33 = vrot.slane %v3990_v36, 4 }
  0xa9   : > { %3676 = vset.pattern.permute.xlu2 %v3898_v1  ;;  %354 = vperm.xlu1 %3673, %v349_v35  }
  0xaa   : > { %334 = vperm.xlu0 %3711, %v323_v31   ;;  %v6150_v31 = vperm.slane %v3958_v23, 1 }
  0xab   : > { %v3998_v46 = vpop.permute.xlu1 %204  ;;  %v251_v10 = vpop.permute.xlu2 %250 }
  0xac   : > { %v3993_v39 = vpop.permute.xlu0 %302  ;;  %6251 = vst [vmem:[#allocation5_spill] sm:$0xff] %v3998_v46  ;;  %v1051_v44 = vrot.slane %v251_v10, 4 }
  0xad   : > { %v1139_v25 = vrot.slane %v3993_v39, 4 }
  0xb1   : > { %380 = vperm.xlu2 %3676, %v375_v40   ;;  %3675 = vset.pattern.permute.xlu1 %v3912_v6 }
  0xb2   : > { %399 = vperm.xlu0 %3711, %v388_v41  }
  0xb3   : > { %v264_v21 = vpop.permute.xlu2 %263 }
  0xb4   : > { %v4001_v48 = vpop.permute.xlu0 %367  ;;  %v1037_v34 = vrot.slane %v264_v21, 4  ;;  %v1040_v42 = vsel %vm1013_vm0, %v264_v21, %v1039_v33  ;;  %v6146_v33 = vperm.slane %v3965_v26, 3 }
  0xb5   : > { %v4078_v47 = vperm.slane %v1040_v42, %v4005_v50 }
  0xb9   : > { %393 = vperm.xlu2 %3676, %v388_v41   ;;  %373 = vperm.xlu1 %3675, %v362_v11   ;;  %v1038_v41 = vsel %vm1013_vm0, %v1037_v34, %v3990_v36 }
  0xba   : > { %464 = vperm.xlu0 %3711, %v453_v52   ;;  %v1044_v45 = vperm.slane %v1038_v41, %v4005_v50 }
  0xbb   : > { %v225_v57 = vpop.permute.xlu1 %224 }
  0xbc   : > { %v1025_v58 = vrot.slane %v225_v57, 4  ;;  %v1028_v59 = vsel %vm1013_vm0, %v225_v57, %v1027_v55  ;;  %v4021_v60 = vpop.permute.xlu0 %432  ;;  %v3804_v55 = vmov 1934713408  }
  0xbd   : > { %v4025_v62 = vperm.slane %v1028_v59, %v4005_v50  ;;  %v1087_v59 = vrot.slane %v1044_v45, 4 }
  0xbe   : > { %v1026_v63 = vsel %vm1013_vm0, %v1025_v58, %v199_v38 }
  0xbf   : > { %v4032_v3 = vperm.slane %v1026_v63, %v4005_v50  ;;  %v4036_v4 = vsel %vm1013_vm0, %v4025_v62, %v1075_v56  ;;  %v1066_v56 = vunpack.c.l.s4 %v3804_v55 }
  0xc1   : > { %3678 = vset.pattern.permute.xlu2 %v3912_v6  ;;  %386 = vperm.xlu1 %3675, %v375_v40   ;;  %v1064_v5 = vsel %vm1013_vm0, %v4032_v3, %v1063_v61  ;;  %v440_v40 = vperm.slane %v3927_v12, 4  ;;  %v1099_v61 = vrot.slane %v4078_v47, 4  ;;  %v4096_v41 = vunpack.c.0.s8 %v1066_v56 }
  0xc2   : > { %529 = vperm.xlu0 %3711, %v6157_v0  }
  0xc3   : > { %v4065_v35 = vpop.permute.xlu2 %282 }
  0xc4   : > { %v4043_v7 = vpop.permute.xlu0 %497  ;;  %6255 = vst [vmem:[#allocation9_spill] sm:$0xff] %v4065_v35  ;;  %v1273_v29 = vrot.slane %v4065_v35, 4 }
  0xc9   : > { %412 = vperm.xlu2 %3678, %v401_v8   ;;  %3677 = vset.pattern.permute.xlu1 %v3898_v1 }
  0xca   : > { %594 = vperm.xlu0 %3711, %v6154_v9  }
  0xcb   : > { %v4054_v24 = vpop.permute.xlu1 %243  ;;  %v4087_v63 = vpop.permute.xlu2 %295 }
  0xcc   : > { %v4050_v11 = vpop.permute.xlu0 %562  ;;  %6254 = vst [vmem:[#allocation8_spill] sm:$0xff] %v4054_v24 }
  0xd1   : > { %425 = vperm.xlu2 %3678, %v414_v15   ;;  %406 = vperm.xlu1 %3677, %v401_v8   ;;  %v1061_v8 = vrot.slane %v4032_v3, 4 }
  0xd2   : > { %659 = vperm.xlu0 %3711, %v6152_v17  }
  0xd3   : > { %v4067_v37 = vpop.permute.xlu1 %256 }
  0xd4   : > { %v4058_v28 = vpop.permute.xlu0 %627  ;;  %6256 = vst [vmem:[#allocation10_spill] sm:$0xff] %v4067_v37 }
  0xd9   : > { %3680 = vset.pattern.permute.xlu2 %v3898_v1  ;;  %419 = vperm.xlu1 %3677, %v414_v15  }
  0xda   : > { %724 = vperm.xlu0 %3711, %v6150_v31  }
  0xdc   : > { %v4069_v38 = vpop.permute.xlu0 %692 }
  0xe1   : > { %445 = vperm.xlu2 %3680, %v440_v40   ;;  %3679 = vset.pattern.permute.xlu1 %v3912_v6 }
  0xe2   : > { %789 = vperm.xlu0 %3711, %v6148_v43   ;;  %v1274_v43 = vsel %vm1013_vm0, %v1273_v29, %v4067_v37 }
  0xe3   : > { %v277_v51 = vpop.permute.xlu1 %276 }
  0xe4   : > { %v1049_v36 = vrot.slane %v277_v51, 4  ;;  %v1052_v57 = vsel %vm1013_vm0, %v277_v51, %v1051_v44  ;;  %v4084_v58 = vpop.permute.xlu0 %757  ;;  %v1072_v44 = vperm.slane %v1064_v5, %v4096_v41 }
  0xe5   : > { %v4092_v21 = vperm.slane %v1052_v57, %v4005_v50 }
  0xe6   : > { %v1050_v15 = vsel %vm1013_vm0, %v1049_v36, %v251_v10  ;;  %v1062_v10 = vsel %vm1013_vm0, %v1061_v8, %v4013_v54  ;;  %v6144_v54 = vperm.slane %v3977_v30, 0 }
  0xe7   : > { %v1056_v34 = vperm.slane %v1050_v15, %v4005_v50  ;;  %v1100_v55 = vsel %vm1013_vm0, %v4092_v21, %v1099_v61  ;;  %v1068_v57 = vperm.slane %v1062_v10, %v4096_v41  ;;  %v1115_v61 = vrot.slane %v1072_v44, 4 }
  0xe9   : > { %v1085_v42 = vrot.slane %v1056_v34, 4  ;;  %458 = vperm.xlu2 %3680, %v453_v52   ;;  %438 = vperm.xlu1 %3679, %v427_v13   ;;  %v1088_v3 = vsel %vm1013_vm0, %v1056_v34, %v1087_v59  ;;  %v1084_v13 = vperm.slane %v4036_v4, %v4096_v41  ;;  %v1108_v59 = vperm.slane %v1100_v55, %v4096_v41 }
  0xea   : > { %854 = vperm.xlu0 %3711, %v6146_v33   ;;  %v1096_v51 = vperm.slane %v1088_v3, %v4096_v41 }
  0xeb   : > { %v1086_v52 = vsel %vm1013_vm0, %v1085_v42, %v1044_v45  ;;  %v4123_v45 = vpop.permute.xlu2 %315  ;;  %v1123_v34 = vrot.slane %v1084_v13, 4  ;;  %v1121_v10 = vrot.slane %v1108_v59, 4 }
  0xec   : > { %v1092_v56 = vperm.slane %v1086_v52, %v4096_v41  ;;  %v1113_v36 = vrot.slane %v1096_v51, 4  ;;  %v4118_v5 = vpop.permute.xlu0 %822  ;;  %v4129_v42 = vsel %vm1013_vm0, %v1096_v51, %v1115_v61  ;;  %v6142_v52 = vperm.slane %v3977_v30, 5 }
  0xed   : > { %6257 = vst [vmem:[#allocation11_spill] sm:$0xff] %v4129_v42  ;;  %v4133_v3 = vsel %vm1013_vm0, %v1108_v59, %v1123_v34  ;;  %v4139_v55 = vsel %vm1013_vm0, %v1121_v10, %v1084_v13  ;;  %v1111_v59 = vrot.slane %v1068_v57, 4  ;;  %v1125_v31 = vrot.slane %v4123_v45, 4 }
  0xee   : > { %v1109_v8 = vrot.slane %v1092_v56, 4  ;;  %v4121_v15 = vsel %vm1013_vm0, %v1113_v36, %v1072_v44  ;;  %6258 = vst [vmem:[#allocation12_spill] sm:$0xff] %v4133_v3  ;;  %v466_v44 = vperm.slane %v3927_v12, 6 }
  0xef   : > { %6259 = vst [vmem:[#allocation13_spill] sm:$0xff] %v4139_v55  ;;  %v1112_v13 = vsel %vm1013_vm0, %v1092_v56, %v1111_v59 }
  0xf0   : > { %v4126_v4 = vsel %vm1013_vm0, %v1109_v8, %v1068_v57  ;;  %v290_v8 = vpop.permute.xlu1 %289 }
  0xf1   : > { %3682 = vset.pattern.permute.xlu2 %v3912_v6  ;;  %451 = vperm.xlu1 %3679, %v440_v40   ;;  %v479_v40 = vperm.slane %v3927_v12, 7  ;;  %v1249_v12 = vrot.slane %v4029_v2, 4 }
  0xf2   : > { %919 = vperm.xlu0 %3711, %v6144_v54  }
  0xf3   : > { %v329_v51 = vpop.permute.xlu2 %328 }
  0xf4   : > { %v4142_v36 = vpop.permute.xlu0 %887  ;;  %v1137_v54 = vrot.slane %v329_v51, 4  ;;  %v1140_v29 = vsel %vm1013_vm0, %v329_v51, %v1139_v25 }
  0xf9   : > { %477 = vperm.xlu2 %3682, %v466_v44   ;;  %3681 = vset.pattern.permute.xlu1 %v3898_v1 }
  0xfa   : > { %984 = vperm.xlu0 %3711, %v6142_v52  }
  0xfb   : > { %v4148_v61 = vpop.permute.xlu1 %308  ;;  %v4151_v34 = vpop.permute.xlu2 %347 }
  0xfc   : > { %v4154_v10 = vpop.permute.xlu0 %952 }
 0x101   : > { %490 = vperm.xlu2 %3682, %v479_v40   ;;  %471 = vperm.xlu1 %3681, %v466_v44   ;;  %v1127_v44 = vrot.slane %v290_v8, 4 }
 0x102   : > { %2813 = vrot.lane.b32.xlu0 %v1112_v13, %s3805_s6  ;;  %v6155_v13 = vperm.slane %v3934_v14, 1 }
 0x103   : > { %v4159_v57 = vpop.permute.xlu1 %321  ;;  %v4161_v52 = vpop.permute.xlu2 %360  ;;  %v1128_v33 = vsel %vm1013_vm0, %v4123_v45, %v1127_v44 }
 0x109   : > { %3684 = vset.pattern.permute.xlu2 %v3898_v1  ;;  %484 = vperm.xlu1 %3681, %v479_v40   ;;  %v1250_v40 = vsel %vm1013_vm0, %v1249_v12, %v3998_v46  ;;  %v1138_v12 = vsel %vm1013_vm0, %v1137_v54, %v3993_v39 }
 0x10a   : > { %v4193_v39 = vperm.slane %v1138_v12, %v4005_v50  ;;  %v4205_v12 = vperm.slane %v1140_v29, %v4005_v50 }
 0x10b   : > { %v381_v9 = vpop.permute.xlu2 %380 }
 0x10c   : > { %v4163_v56 = vpop.permute.xlu0 %191  ;;  %v1161_v25 = vrot.slane %v381_v9, 4  ;;  %6263 = vst [vmem:[#allocation17_spill] sm:$0xff] %v4205_v12 }
 0x10d   : > { %6260 = vst [vmem:[#allocation14_spill] sm:$0xff] %v4163_v56  ;;  %v1238_v59 = vsel %vm1013_vm0, %v1237_v32, %v4163_v56  ;;  %v1256_v32 = vperm.slane %v1250_v40, %v4005_v50  ;;  %v1280_v40 = vperm.slane %v1274_v43, %v4005_v50  ;;  %v1126_v43 = vsel %vm1013_vm0, %v1125_v31, %v290_v8 }
 0x10e   : > { %v1244_v27 = vperm.slane %v1238_v59, %v4005_v50  ;;  %v4184_v59 = vperm.slane %v1128_v33, %v4005_v50  ;;  %v1149_v33 = vrot.slane %v4001_v48, 4  ;;  %v6264_v56 = vperm.slane %v3934_v14, 2 }
 0x10f   : > { %v1309_v51 = vrot.slane %v1280_v40, 4  ;;  %v4216_v8 = vperm.slane %v1126_v43, %v4005_v50 }
 0x110   : > { %6261 = vst [vmem:[#allocation15_spill] sm:$0xff] %v4184_v59  ;;  %v1287_v22 = vrot.slane %v1244_v27, 4  ;;  %v1187_v54 = vrot.slane %v4184_v59, 4 }
 0x111   : > { %510 = vperm.xlu2 %3684, %v6155_v13   ;;  %3683 = vset.pattern.permute.xlu1 %v3912_v6  ;;  %v1285_v13 = vrot.slane %v1256_v32, 4 }
 0x112   : > { %v1288_v16 = vsel %vm1013_vm0, %v1256_v32, %v1287_v22  ;;  %v1173_v22 = vrot.slane %v4193_v39, 4 }
 0x113   : > { %v342_v44 = vpop.permute.xlu1 %341 }
 0x114   : > { %v1151_v20 = vrot.slane %v342_v44, 4  ;;  %v4187_v17 = vpop.permute.xlu0 %269  ;;  %v1150_v32 = vsel %vm1013_vm0, %v1149_v33, %v342_v44 }
 0x115   : > { %6262 = vst [vmem:[#allocation16_spill] sm:$0xff] %v4187_v17  ;;  %v1261_v18 = vrot.slane %v4187_v17, 4  ;;  %v1349_v17 = vrot.slane %v4159_v57, 4 }
 0x116   : > { %v1152_v0 = vsel %vm1013_vm0, %v4001_v48, %v1151_v20  ;;  %v1286_v20 = vsel %vm1013_vm0, %v1285_v13, %v1244_v27  ;;  %v1296_v48 = vperm.slane %v1288_v16, %v4096_v41 }
 0x117   : > { %v1262_v45 = vsel %vm1013_vm0, %v1261_v18, %v4054_v24  ;;  %v6265_v18 = vperm.slane %v3934_v14, 0  ;;  %v4220_v29 = vperm.slane %v1152_v0, %v4005_v50  ;;  %v1350_v13 = vsel %vm1013_vm0, %v1349_v17, %v4087_v63 }
 0x118   : > { %v1268_v49 = vperm.slane %v1262_v45, %v4005_v50  ;;  %v4233_v33 = vperm.slane %v1286_v20, %v4096_v41  ;;  %v1174_v20 = vsel %vm1013_vm0, %v1173_v22, %v4216_v8 }
 0x119   : > { %523 = vperm.xlu2 %3684, %v6264_v56   ;;  %503 = vperm.xlu1 %3683, %v6265_v18   ;;  %6266 = vst [vmem:[#allocation18_spill] sm:$0xff] %v4220_v29  ;;  %v1188_v56 = vsel %vm1013_vm0, %v4205_v12, %v1187_v54  ;;  %v4236_v54 = vperm.slane %v1150_v32, %v4005_v50 }
 0x11a   : > { %v1311_v31 = vrot.slane %v1268_v49, 4  ;;  %v1310_v27 = vsel %vm1013_vm0, %v1309_v51, %v1268_v49  ;;  %6267 = vst [vmem:[#allocation19_spill] sm:$0xff] %v4233_v33  ;;  %v1339_v49 = vrot.slane %v1296_v48, 4 }
 0x11b   : > { %v355_v45 = vpop.permute.xlu1 %354 }
 0x11c   : > { %v1162_v18 = vsel %vm1013_vm0, %v1161_v25, %v355_v45  ;;  %v1163_v35 = vrot.slane %v355_v45, 4  ;;  %v335_v24 = vpop.permute.xlu0 %334  ;;  %v1312_v16 = vsel %vm1013_vm0, %v1280_v40, %v1311_v31  ;;  %v1211_v40 = vrot.slane %v4220_v29, 4  ;;  %v4258_v45 = vpop.permute.xlu2 %393 }
 0x11d   : > { %v4230_v44 = vperm.slane %v1162_v18, %v4005_v50  ;;  %v1361_v0 = vrot.slane %v335_v24, 4  ;;  %v1320_v25 = vperm.slane %v1312_v16, %v4096_v41  ;;  %v4246_v31 = vperm.slane %v1310_v27, %v4096_v41 }
 0x11e   : > { %v1164_v43 = vsel %vm1013_vm0, %v381_v9, %v1163_v35  ;;  %v4253_v9 = vperm.slane %v1188_v56, %v4096_v41  ;;  %v6271_v35 = vperm.slane %v3934_v14, 1  ;;  %v1335_v16 = vrot.slane %v4233_v33, 4 }
 0x11f   : > { %v4242_v51 = vperm.slane %v1164_v43, %v4005_v50  ;;  %v1197_v17 = vrot.slane %v4230_v44, 4  ;;  %6269 = vst [vmem:[#allocation21_spill] sm:$0xff] %v4246_v31  ;;  %v1362_v32 = vsel %vm1013_vm0, %v1361_v0, %v4148_v61  ;;  %v4265_v22 = vsel %vm1013_vm0, %v1320_v25, %v1339_v49 }
 0x120   : > { %6270 = vst [vmem:[#allocation22_spill] sm:$0xff] %v4253_v9  ;;  %v4269_v56 = vperm.slane %v1350_v13, %v4005_v50  ;;  %v4285_v49 = vperm.slane %v1174_v20, %v4096_v41  ;;  %v1235_v2 = vrot.slane %v4253_v9, 4 }
 0x121   : > { %6268 = vst [vmem:[#allocation20_spill] sm:$0xff] %v4242_v51  ;;  %3686 = vset.pattern.permute.xlu2 %v3912_v6  ;;  %516 = vperm.xlu1 %3683, %v6271_v35   ;;  %v1198_v18 = vsel %vm1013_vm0, %v1197_v17, %v4236_v54  ;;  %v1212_v27 = vsel %vm1013_vm0, %v4242_v51, %v1211_v40  ;;  %v1337_v35 = vrot.slane %v1320_v25, 4 }
 0x122   : > { %6272 = vst [vmem:[#allocation23_spill] sm:$0xff] %v4265_v22  ;;  %v4272_v0 = vperm.slane %v1198_v18, %v4096_v41  ;;  %v4275_v43 = vperm.slane %v1212_v27, %v4096_v41  ;;  %v4279_v17 = vsel %vm1013_vm0, %v4246_v31, %v1335_v16  ;;  %v4282_v40 = vperm.slane %v1362_v32, %v4005_v50 }
 0x123   : > { %6273 = vst [vmem:[#allocation24_spill] sm:$0xff] %v4269_v56  ;;  %v1363_v18 = vrot.slane %v4148_v61, 4  ;;  %v531_v27 = vperm.slane %v3934_v14, 3  ;;  %v1399_v37 = vrot.slane %v4269_v56, 4  ;;  %v4301_v20 = vsel %vm1013_vm0, %v1337_v35, %v1296_v48 }
 0x124   : > { %6274 = vst [vmem:[#allocation25_spill] sm:$0xff] %v4275_v43  ;;  %v1221_v13 = vrot.slane %v4272_v0, 4  ;;  %v4298_v25 = vsel %vm1013_vm0, %v4275_v43, %v1235_v2  ;;  %v1351_v2 = vrot.slane %v4087_v63, 4  ;;  %v544_v48 = vperm.slane %v3934_v14, 4 }
 0x125   : > { %6275 = vst [vmem:[#allocation26_spill] sm:$0xff] %v4279_v17  ;;  %v1364_v32 = vsel %vm1013_vm0, %v335_v24, %v1363_v18  ;;  %v1400_v61 = vsel %vm1013_vm0, %v4282_v40, %v1399_v37  ;;  %v4310_v17 = vpop.permute.xlu2 %412  ;;  %v1375_v37 = vrot.slane %v4151_v34, 4  ;;  %v1387_v63 = vrot.slane %v4161_v52, 4 }
 0x126   : > { %6276 = vst [vmem:[#allocation27_spill] sm:$0xff] %v4282_v40  ;;  %v4294_v16 = vsel %vm1013_vm0, %v1221_v13, %v4285_v49  ;;  %v4308_v46 = vperm.slane %v1364_v32, %v4005_v50  ;;  %v1352_v24 = vsel %vm1013_vm0, %v4159_v57, %v1351_v2 }
 0x127   : > { %6277 = vst [vmem:[#allocation28_spill] sm:$0xff] %v4298_v25  ;;  %v4321_v32 = vperm.slane %v1352_v24, %v4005_v50 }
 0x128   : > { %6278 = vst [vmem:[#allocation29_spill] sm:$0xff] %v4301_v20  ;;  %v1409_v35 = vrot.slane %v4308_v46, 4 }
 0x129   : > { %542 = vperm.xlu2 %3686, %v531_v27   ;;  %3685 = vset.pattern.permute.xlu1 %v3898_v1  ;;  %6279 = vst [vmem:[#allocation30_spill] sm:$0xff] %v4308_v46 }
 0x12a   : > { %6280 = vst [vmem:[#allocation31_spill] sm:$0xff] %v4321_v32  ;;  %v1410_v57 = vsel %vm1013_vm0, %v1409_v35, %v4321_v32 }
 0x12b   : > { %v374_v13 = vpop.permute.xlu1 %373  ;;  %v4337_v24 = vperm.slane %v1410_v57, %v4096_v41 }
 0x12c   : > { %v1373_v22 = vrot.slane %v374_v13, 4  ;;  %v1376_v2 = vsel %vm1013_vm0, %v374_v13, %v1375_v37 }
 0x12d   : > { %6283 = vst [vmem:[#allocation34_spill] sm:$0xff] %v4337_v24  ;;  %v4341_v40 = vperm.slane %v1376_v2, %v4005_v50  ;;  %v570_v2 = vperm.slane %v3934_v14, 6 }
 0x12e   : > { %v1374_v18 = vsel %vm1013_vm0, %v1373_v22, %v4151_v34  ;;  %v426_v22 = vpop.permute.xlu2 %425 }
 0x12f   : > { %v4325_v20 = vperm.slane %v1374_v18, %v4005_v50  ;;  %v1408_v18 = vperm.slane %v1400_v61, %v4096_v41  ;;  %6284 = vst [vmem:[#allocation35_spill] sm:$0xff] %v4341_v40 }
 0x131   : > { %555 = vperm.xlu2 %3686, %v544_v48   ;;  %536 = vperm.xlu1 %3685, %v531_v27   ;;  %6281 = vst [vmem:[#allocation32_spill] sm:$0xff] %v4325_v20  ;;  %v1423_v13 = vrot.slane %v4325_v20, 4  ;;  %v1451_v37 = vrot.slane %v1408_v18, 4 }
 0x133   : > { %v387_v25 = vpop.permute.xlu1 %386 }
 0x134   : > { %v1385_v46 = vrot.slane %v387_v25, 4  ;;  %v1388_v56 = vsel %vm1013_vm0, %v387_v25, %v1387_v63  ;;  %v1455_v63 = vrot.slane %v4337_v24, 4 }
 0x135   : > { %v4332_v34 = vperm.slane %v1388_v56, %v4005_v50 }
 0x136   : > { %v1386_v27 = vsel %vm1013_vm0, %v1385_v46, %v4161_v52 }
 0x137   : > { %6282 = vst [vmem:[#allocation33_spill] sm:$0xff] %v4332_v34  ;;  %v4345_v35 = vperm.slane %v1386_v27, %v4005_v50  ;;  %v1433_v56 = vrot.slane %v4332_v34, 4 }
 0x139   : > { %6285 = vst [vmem:[#allocation36_spill] sm:$0xff] %v4345_v35  ;;  %3688 = vset.pattern.permute.xlu2 %v3898_v1  ;;  %549 = vperm.xlu1 %3685, %v544_v48   ;;  %v1434_v46 = vsel %vm1013_vm0, %v1433_v56, %v4341_v40  ;;  %v1424_v52 = vsel %vm1013_vm0, %v4345_v35, %v1423_v13  ;;  %v609_v35 = vperm.slane %v3946_v19, 1 }
 0x13a   : > { %v4354_v25 = vperm.slane %v1434_v46, %v4096_v41  ;;  %v1432_v61 = vperm.slane %v1424_v52, %v4096_v41  ;;  %v6290_v52 = vperm.slane %v3934_v14, 7 }
 0x13b   : > { %v4369_v56 = vpop.permute.xlu2 %445 }
 0x13c   : > { %6286 = vst [vmem:[#allocation37_spill] sm:$0xff] %v4354_v25  ;;  %v1449_v57 = vrot.slane %v1432_v61, 4  ;;  %v4360_v27 = vsel %vm1013_vm0, %v1432_v61, %v1451_v37  ;;  %v4364_v48 = vsel %vm1013_vm0, %v4354_v25, %v1455_v63  ;;  %v6291_v61 = vperm.slane %v3934_v14, 5 }
 0x13d   : > { %6287 = vst [vmem:[#allocation38_spill] sm:$0xff] %v4360_v27  ;;  %v1473_v63 = vrot.slane %v4021_v60, 4  ;;  %v596_v27 = vperm.slane %v3946_v19, 0 }
 0x13e   : > { %6288 = vst [vmem:[#allocation39_spill] sm:$0xff] %v4364_v48  ;;  %v4367_v13 = vsel %vm1013_vm0, %v1449_v57, %v1408_v18 }
 0x13f   : > { %6289 = vst [vmem:[#allocation40_spill] sm:$0xff] %v4367_v13 }
 0x141   : > { %575 = vperm.xlu2 %3688, %v570_v2   ;;  %3687 = vset.pattern.permute.xlu1 %v3912_v6 }
 0x143   : > { %v4372_v46 = vpop.permute.xlu1 %406  ;;  %v4378_v37 = vpop.permute.xlu2 %458 }
 0x144   : > { %v1474_v57 = vsel %vm1013_vm0, %v1473_v63, %v4372_v46  ;;  %v1685_v63 = vrot.slane %v426_v22, 4 }
 0x145   : > { %v4392_v14 = vperm.slane %v1474_v57, %v4005_v50  ;;  %v1699_v57 = vrot.slane %v4310_v17, 4 }
 0x149   : > { %588 = vperm.xlu2 %3688, %v6290_v52   ;;  %568 = vperm.xlu1 %3687, %v6291_v61  }
 0x14b   : > { %v4381_v48 = vpop.permute.xlu1 %419 }
 0x14c   : > { %v1461_v18 = vrot.slane %v4381_v48, 4 }
 0x14e   : > { %v1462_v32 = vsel %vm1013_vm0, %v1461_v18, %v4258_v45  ;;  %v400_v18 = vpop.permute.xlu0 %399 }
 0x14f   : > { %v4389_v34 = vperm.slane %v1462_v32, %v4005_v50  ;;  %v1687_v13 = vrot.slane %v400_v18, 4  ;;  %v1686_v32 = vsel %vm1013_vm0, %v1685_v63, %v400_v18 }
 0x150   : > { %v4406_v25 = vperm.slane %v1686_v32, %v4005_v50 }
 0x151   : > { %v1511_v52 = vrot.slane %v4389_v34, 4  ;;  %3690 = vset.pattern.permute.xlu2 %v3912_v6  ;;  %581 = vperm.xlu1 %3687, %v570_v2   ;;  %v1688_v24 = vsel %vm1013_vm0, %v426_v22, %v1687_v13 }
 0x152   : > { %6292 = vst [vmem:[#allocation41_spill] sm:$0xff] %v4406_v25  ;;  %v4410_v55 = vperm.slane %v1688_v24, %v4005_v50  ;;  %v1735_v3 = vrot.slane %v4406_v25, 4 }
 0x153   : > { %v478_v61 = vpop.permute.xlu2 %477  ;;  %v4398_v40 = vsel %vm1013_vm0, %v4392_v14, %v1511_v52 }
 0x154   : > { %6293 = vst [vmem:[#allocation42_spill] sm:$0xff] %v4410_v55  ;;  %v1709_v33 = vrot.slane %v478_v61, 4  ;;  %v1747_v9 = vrot.slane %v4410_v55, 4 }
 0x156   : > { %v465_v32 = vpop.permute.xlu0 %464 }
 0x157   : > { %v1723_v31 = vrot.slane %v465_v32, 4 }
 0x159   : > { %607 = vperm.xlu2 %3690, %v596_v27   ;;  %3689 = vset.pattern.permute.xlu1 %v3898_v1 }
 0x15b   : > { %v439_v2 = vpop.permute.xlu1 %438  ;;  %v491_v20 = vpop.permute.xlu2 %490 }
 0x15c   : > { %v1697_v52 = vrot.slane %v439_v2, 4  ;;  %v1700_v18 = vsel %vm1013_vm0, %v439_v2, %v1699_v57  ;;  %v1721_v13 = vrot.slane %v491_v20, 4 }
 0x15d   : > { %v4421_v24 = vperm.slane %v1700_v18, %v4005_v50 }
 0x15e   : > { %v1698_v63 = vsel %vm1013_vm0, %v1697_v52, %v4310_v17  ;;  %v1722_v17 = vsel %vm1013_vm0, %v1721_v13, %v465_v32 }
 0x15f   : > { %v4417_v22 = vperm.slane %v1698_v63, %v4005_v50  ;;  %6295 = vst [vmem:[#allocation44_spill] sm:$0xff] %v4421_v24  ;;  %v1748_v18 = vsel %vm1013_vm0, %v4421_v24, %v1747_v9  ;;  %v4435_v55 = vperm.slane %v1722_v17, %v4005_v50  ;;  %v1463_v17 = vrot.slane %v4258_v45, 4 }
 0x161   : > { %6294 = vst [vmem:[#allocation43_spill] sm:$0xff] %v4417_v22  ;;  %620 = vperm.xlu2 %3690, %v609_v35   ;;  %601 = vperm.xlu1 %3689, %v596_v27   ;;  %v1736_v52 = vsel %vm1013_vm0, %v4417_v22, %v1735_v3  ;;  %v1724_v27 = vsel %vm1013_vm0, %v491_v20, %v1723_v31 }
 0x162   : > { %6297 = vst [vmem:[#allocation46_spill] sm:$0xff] %v4435_v55  ;;  %v4442_v3 = vperm.slane %v1736_v52, %v4096_v41  ;;  %v4452_v20 = vperm.slane %v1748_v18, %v4096_v41  ;;  %v1464_v18 = vsel %vm1013_vm0, %v4381_v48, %v1463_v17 }
 0x163   : > { %v452_v43 = vpop.permute.xlu1 %451  ;;  %v1472_v45 = vperm.slane %v1464_v18, %v4005_v50 }
 0x164   : > { %v1710_v57 = vsel %vm1013_vm0, %v1709_v33, %v452_v43  ;;  %v1711_v2 = vrot.slane %v452_v43, 4  ;;  %6299 = vst [vmem:[#allocation48_spill] sm:$0xff] %v4442_v3  ;;  %v4445_v43 = vperm.slane %v1724_v27, %v4005_v50  ;;  %v1795_v52 = vrot.slane %v4452_v20, 4 }
 0x165   : > { %v4428_v63 = vperm.slane %v1710_v57, %v4005_v50  ;;  %6301 = vst [vmem:[#allocation50_spill] sm:$0xff] %v4452_v20  ;;  %v635_v57 = vperm.slane %v3946_v19, 3  ;;  %v1475_v27 = vrot.slane %v4372_v46, 4  ;;  %v1523_v17 = vrot.slane %v1472_v45, 4 }
 0x166   : > { %v1712_v25 = vsel %vm1013_vm0, %v478_v61, %v1711_v2  ;;  %6300 = vst [vmem:[#allocation49_spill] sm:$0xff] %v4445_v43  ;;  %v1787_v61 = vrot.slane %v4442_v3, 4 }
 0x167   : > { %6296 = vst [vmem:[#allocation45_spill] sm:$0xff] %v4428_v63  ;;  %v4438_v13 = vperm.slane %v1712_v25, %v4005_v50  ;;  %v1759_v33 = vrot.slane %v4428_v63, 4 }
 0x169   : > { %6298 = vst [vmem:[#allocation47_spill] sm:$0xff] %v4438_v13  ;;  %v1771_v31 = vrot.slane %v4438_v13, 4  ;;  %3692 = vset.pattern.permute.xlu2 %v3898_v1  ;;  %614 = vperm.xlu1 %3689, %v609_v35   ;;  %v1760_v9 = vsel %vm1013_vm0, %v4435_v55, %v1759_v33 }
 0x16a   : > { %v4455_v25 = vperm.slane %v1760_v9, %v4096_v41  ;;  %v1487_v9 = vrot.slane %v4369_v56, 4 }
 0x16b   : > { %v1772_v32 = vsel %vm1013_vm0, %v4445_v43, %v1771_v31  ;;  %v1476_v31 = vsel %vm1013_vm0, %v4021_v60, %v1475_v27  ;;  %v6307_v60 = vperm.slane %v3946_v19, 2 }
 0x16c   : > { %6302 = vst [vmem:[#allocation51_spill] sm:$0xff] %v4455_v25  ;;  %v4464_v35 = vsel %vm1013_vm0, %v4455_v25, %v1787_v61  ;;  %v4467_v2 = vperm.slane %v1772_v32, %v4096_v41  ;;  %v4482_v32 = vpop.permute.xlu2 %510  ;;  %v1484_v48 = vperm.slane %v1476_v31, %v4005_v50 }
 0x16d   : > { %6303 = vst [vmem:[#allocation52_spill] sm:$0xff] %v4464_v35  ;;  %v1499_v35 = vrot.slane %v4378_v37, 4 }
 0x16e   : > { %6304 = vst [vmem:[#allocation53_spill] sm:$0xff] %v4467_v2  ;;  %v4475_v33 = vsel %vm1013_vm0, %v4467_v2, %v1795_v52  ;;  %v6306_v2 = vperm.slane %v3946_v19, 4  ;;  %v1524_v27 = vsel %vm1013_vm0, %v1484_v48, %v1523_v17 }
 0x16f   : > { %6305 = vst [vmem:[#allocation54_spill] sm:$0xff] %v4475_v33  ;;  %v1521_v33 = vrot.slane %v1484_v48, 4 }
 0x171   : > { %640 = vperm.xlu2 %3692, %v635_v57   ;;  %3691 = vset.pattern.permute.xlu1 %v3912_v6 }
 0x173   : > { %v472_v61 = vpop.permute.xlu1 %471 }
 0x174   : > { %v1485_v46 = vrot.slane %v472_v61, 4  ;;  %v1488_v52 = vsel %vm1013_vm0, %v472_v61, %v1487_v9  ;;  %v1522_v9 = vsel %vm1013_vm0, %v1521_v33, %v1472_v45  ;;  %v524_v43 = vpop.permute.xlu2 %523 }
 0x175   : > { %v1496_v20 = vperm.slane %v1488_v52, %v4005_v50  ;;  %v4505_v17 = vperm.slane %v1522_v9, %v4096_v41 }
 0x176   : > { %v1486_v18 = vsel %vm1013_vm0, %v1485_v46, %v4369_v56  ;;  %v1532_v46 = vperm.slane %v1524_v27, %v4096_v41 }
 0x177   : > { %v1492_v31 = vperm.slane %v1486_v18, %v4005_v50  ;;  %v1547_v52 = vrot.slane %v1496_v20, 4 }
 0x179   : > { %653 = vperm.xlu2 %3692, %v6306_v2   ;;  %633 = vperm.xlu1 %3691, %v6307_v60   ;;  %v1520_v60 = vperm.slane %v4398_v40, %v4096_v41  ;;  %v1535_v18 = vrot.slane %v1492_v31, 4 }
 0x17b   : > { %v485_v13 = vpop.permute.xlu1 %484  ;;  %v1563_v9 = vrot.slane %v1520_v60, 4 }
 0x17c   : > { %v1497_v61 = vrot.slane %v485_v13, 4  ;;  %v1500_v56 = vsel %vm1013_vm0, %v485_v13, %v1499_v35  ;;  %v1509_v35 = vrot.slane %v4392_v14, 4 }
 0x17d   : > { %v1508_v2 = vperm.slane %v1500_v56, %v4005_v50  ;;  %v1571_v56 = vrot.slane %v1532_v46, 4 }
 0x17e   : > { %v1498_v48 = vsel %vm1013_vm0, %v1497_v61, %v4378_v37 }
 0x17f   : > { %v1504_v33 = vperm.slane %v1498_v48, %v4005_v50  ;;  %v1545_v45 = vrot.slane %v1508_v2, 4  ;;  %v1548_v13 = vsel %vm1013_vm0, %v1508_v2, %v1547_v52  ;;  %v1510_v2 = vsel %vm1013_vm0, %v1509_v35, %v4389_v34 }
 0x180   : > { %v1556_v27 = vperm.slane %v1548_v13, %v4096_v41  ;;  %v4540_v34 = vperm.slane %v1510_v2, %v4096_v41 }
 0x181   : > { %v1533_v24 = vrot.slane %v1504_v33, 4  ;;  %3694 = vset.pattern.permute.xlu2 %v3912_v6  ;;  %646 = vperm.xlu1 %3691, %v635_v57   ;;  %v1546_v40 = vsel %vm1013_vm0, %v1545_v45, %v1496_v20  ;;  %v1536_v37 = vsel %vm1013_vm0, %v1504_v33, %v1535_v18  ;;  %v1567_v57 = vrot.slane %v4505_v17, 4 }
 0x182   : > { %v4515_v61 = vperm.slane %v1546_v40, %v4096_v41  ;;  %v1544_v48 = vperm.slane %v1536_v37, %v4096_v41  ;;  %v4519_v52 = vsel %vm1013_vm0, %v1556_v27, %v1571_v56  ;;  %v1569_v14 = vrot.slane %v1556_v27, 4 }
 0x183   : > { %6308 = vst [vmem:[#allocation55_spill] sm:$0xff] %v4519_v52  ;;  %v1534_v13 = vsel %vm1013_vm0, %v1533_v24, %v1492_v31  ;;  %v661_v33 = vperm.slane %v3946_v19, 5  ;;  %v4543_v31 = vpop.permute.xlu2 %542 }
 0x184   : > { %v4526_v20 = vperm.slane %v1534_v13, %v4096_v41  ;;  %v4529_v18 = vsel %vm1013_vm0, %v1544_v48, %v1563_v9  ;;  %v1561_v45 = vrot.slane %v1544_v48, 4  ;;  %v4533_v56 = vsel %vm1013_vm0, %v1569_v14, %v1532_v46  ;;  %6311 = vst [vmem:[#allocation58_spill] sm:$0xff] %v4543_v31 }
 0x185   : > { %6309 = vst [vmem:[#allocation56_spill] sm:$0xff] %v4533_v56  ;;  %v4537_v27 = vsel %vm1013_vm0, %v4515_v61, %v1567_v57  ;;  %v674_v46 = vperm.slane %v3946_v19, 6  ;;  %v1575_v48 = vrot.slane %v4043_v7, 4  ;;  %v700_v57 = vperm.slane %v3958_v23, 0 }
 0x186   : > { %6310 = vst [vmem:[#allocation57_spill] sm:$0xff] %v4537_v27  ;;  %v1557_v24 = vrot.slane %v4526_v20, 4  ;;  %v4546_v35 = vsel %vm1013_vm0, %v1561_v45, %v1520_v60  ;;  %v1573_v60 = vrot.slane %v524_v43, 4 }
 0x187   : > { %v1576_v13 = vsel %vm1013_vm0, %v524_v43, %v1575_v48 }
 0x188   : > { %v4550_v40 = vsel %vm1013_vm0, %v1557_v24, %v4540_v34  ;;  %v1574_v45 = vsel %vm1013_vm0, %v1573_v60, %v4043_v7  ;;  %v1587_v24 = vrot.slane %v4482_v32, 4 }
 0x189   : > { %672 = vperm.xlu2 %3694, %v661_v33   ;;  %3693 = vset.pattern.permute.xlu1 %v3898_v1  ;;  %v1580_v3 = vperm.slane %v1574_v45, %v4005_v50 }
 0x18b   : > { %v4554_v37 = vpop.permute.xlu1 %503  ;;  %v4556_v9 = vpop.permute.xlu2 %555  ;;  %v1623_v55 = vrot.slane %v1580_v3, 4 }
 0x18c   : > { %6312 = vst [vmem:[#allocation59_spill] sm:$0xff] %v4554_v37 }
 0x18d   : > { %6313 = vst [vmem:[#allocation60_spill] sm:$0xff] %v4556_v9 }
 0x191   : > { %685 = vperm.xlu2 %3694, %v674_v46   ;;  %666 = vperm.xlu1 %3693, %v661_v33   ;;  %v4567_v33 = vperm.slane %v1576_v13, %v4005_v50 }
 0x193   : > { %v4560_v14 = vpop.permute.xlu1 %516  ;;  %6315 = vst [vmem:[#allocation62_spill] sm:$0xff] %v4567_v33 }
 0x194   : > { %6314 = vst [vmem:[#allocation61_spill] sm:$0xff] %v4560_v14 }
 0x199   : > { %3696 = vset.pattern.permute.xlu2 %v3898_v1  ;;  %679 = vperm.xlu1 %3693, %v674_v46   ;;  %v1635_v46 = vrot.slane %v4567_v33, 4 }
 0x19b   : > { %v576_v2 = vpop.permute.xlu2 %575 }
 0x19c   : > { %v1597_v52 = vrot.slane %v576_v2, 4 }
 0x1a1   : > { %705 = vperm.xlu2 %3696, %v700_v57   ;;  %3695 = vset.pattern.permute.xlu1 %v3912_v6 }
 0x1a3   : > { %v537_v25 = vpop.permute.xlu1 %536  ;;  %v589_v63 = vpop.permute.xlu2 %588 }
 0x1a4   : > { %v1585_v43 = vrot.slane %v537_v25, 4  ;;  %v1588_v48 = vsel %vm1013_vm0, %v537_v25, %v1587_v24  ;;  %v1609_v22 = vrot.slane %v589_v63, 4  ;;  %v6316_v24 = vperm.slane %v3958_v23, 1 }
 0x1a5   : > { %v4575_v7 = vperm.slane %v1588_v48, %v4005_v50  ;;  %v6317_v48 = vperm.slane %v3946_v19, 7 }
 0x1a6   : > { %v1586_v60 = vsel %vm1013_vm0, %v1585_v43, %v4482_v32  ;;  %v1610_v13 = vsel %vm1013_vm0, %v1609_v22, %v4050_v11  ;;  %v1611_v43 = vrot.slane %v4050_v11, 4 }
 0x1a7   : > { %v1592_v45 = vperm.slane %v1586_v60, %v4005_v50  ;;  %v1636_v27 = vsel %vm1013_vm0, %v4575_v7, %v1635_v46  ;;  %v1616_v56 = vperm.slane %v1610_v13, %v4005_v50 }
 0x1a9   : > { %v1621_v25 = vrot.slane %v1592_v45, 4  ;;  %718 = vperm.xlu2 %3696, %v6316_v24   ;;  %698 = vperm.xlu1 %3695, %v6317_v48   ;;  %v1624_v32 = vsel %vm1013_vm0, %v1592_v45, %v1623_v55  ;;  %v1645_v22 = vrot.slane %v1616_v56, 4  ;;  %v1612_v24 = vsel %vm1013_vm0, %v589_v63, %v1611_v43 }
 0x1aa   : > { %v1632_v45 = vperm.slane %v1624_v32, %v4096_v41 }
 0x1ab   : > { %v550_v59 = vpop.permute.xlu1 %549  ;;  %v1622_v60 = vsel %vm1013_vm0, %v1621_v25, %v1580_v3  ;;  %v4606_v25 = vperm.slane %v1612_v24, %v4005_v50 }
 0x1ac   : > { %v1598_v46 = vsel %vm1013_vm0, %v1597_v52, %v550_v59  ;;  %v1599_v29 = vrot.slane %v550_v59, 4  ;;  %v1628_v13 = vperm.slane %v1622_v60, %v4096_v41  ;;  %v4603_v59 = vpop.permute.xlu0 %529 }
 0x1ad   : > { %v1604_v12 = vperm.slane %v1598_v46, %v4005_v50  ;;  %6319 = vst [vmem:[#allocation64_spill] sm:$0xff] %v4603_v59  ;;  %v1809_v46 = vrot.slane %v4543_v31, 4 }
 0x1ae   : > { %v1600_v19 = vsel %vm1013_vm0, %v576_v2, %v1599_v29  ;;  %v1671_v52 = vrot.slane %v1628_v13, 4  ;;  %6320 = vst [vmem:[#allocation65_spill] sm:$0xff] %v4606_v25 }
 0x1af   : > { %v4598_v48 = vperm.slane %v1600_v19, %v4005_v50  ;;  %v1647_v55 = vrot.slane %v1604_v12, 4  ;;  %v1646_v11 = vsel %vm1013_vm0, %v1645_v22, %v1604_v12  ;;  %v1644_v12 = vperm.slane %v1636_v27, %v4096_v41 }
 0x1b0   : > { %v1652_v3 = vperm.slane %v1646_v11, %v4096_v41  ;;  %v1675_v22 = vrot.slane %v1632_v45, 4 }
 0x1b1   : > { %6318 = vst [vmem:[#allocation63_spill] sm:$0xff] %v4598_v48  ;;  %v1659_v63 = vrot.slane %v4598_v48, 4  ;;  %3698 = vset.pattern.permute.xlu2 %v3912_v6  ;;  %711 = vperm.xlu1 %3695, %v700_v57   ;;  %v1648_v29 = vsel %vm1013_vm0, %v1616_v56, %v1647_v55  ;;  %v4622_v56 = vld [vmem:[%s3892_s5 + $0x28] sm:$0xff]  ;;  %v1683_v11 = vrot.slane %v1644_v12, 4 }
 0x1b2   : > { %v1672_v2 = vsel %vm1013_vm0, %v1652_v3, %v1671_v52  ;;  %v1669_v32 = vrot.slane %v1652_v3, 4  ;;  %v1656_v43 = vperm.slane %v1648_v29, %v4096_v41  ;;  %v726_v27 = vperm.slane %v4622_v56, 2 }
 0x1b3   : > { %2819 = vrot.lane.b32.xlu0 %v1672_v2, %s3805_s6  ;;  %v1660_v60 = vsel %vm1013_vm0, %v4606_v25, %v1659_v63  ;;  %v1810_v29 = vsel %vm1013_vm0, %v1809_v46, %v4560_v14 }
 0x1b4   : > { %v4619_v24 = vsel %vm1013_vm0, %v1669_v32, %v1628_v13  ;;  %v1673_v57 = vrot.slane %v1656_v43, 4  ;;  %v4626_v19 = vsel %vm1013_vm0, %v1656_v43, %v1675_v22  ;;  %v1668_v55 = vperm.slane %v1660_v60, %v4096_v41  ;;  %v4642_v32 = vpop.permute.xlu0 %594 }
 0x1b5   : > { %6321 = vst [vmem:[#allocation66_spill] sm:$0xff] %v4626_v19  ;;  %v1797_v13 = vrot.slane %v4603_v59, 4  ;;  %v1833_v22 = vrot.slane %v4642_v32, 4 }
 0x1b6   : > { %v4630_v3 = vsel %vm1013_vm0, %v1673_v57, %v1632_v45  ;;  %v4633_v52 = vsel %vm1013_vm0, %v1668_v55, %v1683_v11  ;;  %v1681_v63 = vrot.slane %v1668_v55, 4  ;;  %6324 = vst [vmem:[#allocation69_spill] sm:$0xff] %v4642_v32  ;;  %v1816_v45 = vperm.slane %v1810_v29, %v4005_v50 }
 0x1b7   : > { %6322 = vst [vmem:[#allocation67_spill] sm:$0xff] %v4633_v52  ;;  %v1798_v60 = vsel %vm1013_vm0, %v1797_v13, %v4554_v37  ;;  %v739_v57 = vperm.slane %v4622_v56, 3 }
 0x1b8   : > { %v4640_v2 = vsel %vm1013_vm0, %v1681_v63, %v1644_v12  ;;  %v1804_v46 = vperm.slane %v1798_v60, %v4005_v50  ;;  %v1845_v55 = vrot.slane %v1816_v45, 4 }
 0x1b9   : > { %737 = vperm.xlu2 %3698, %v726_v27   ;;  %3697 = vset.pattern.permute.xlu1 %v3898_v1  ;;  %6323 = vst [vmem:[#allocation68_spill] sm:$0xff] %v4640_v2 }
 0x1ba   : > { %v1847_v11 = vrot.slane %v1804_v46, 4  ;;  %v1846_v59 = vsel %vm1013_vm0, %v1845_v55, %v1804_v46 }
 0x1bb   : > { %v4645_v43 = vpop.permute.xlu1 %568  ;;  %v4663_v37 = vperm.slane %v1846_v59, %v4096_v41 }
 0x1bc   : > { %6325 = vst [vmem:[#allocation70_spill] sm:$0xff] %v4645_v43  ;;  %v1834_v12 = vsel %vm1013_vm0, %v1833_v22, %v4645_v43  ;;  %v1848_v13 = vsel %vm1013_vm0, %v1816_v45, %v1847_v11 }
 0x1bd   : > { %v1840_v63 = vperm.slane %v1834_v12, %v4005_v50  ;;  %6327 = vst [vmem:[#allocation72_spill] sm:$0xff] %v4663_v37  ;;  %v1856_v31 = vperm.slane %v1848_v13, %v4096_v41  ;;  %v1895_v45 = vrot.slane %v4663_v37, 4  ;;  %v765_v13 = vperm.slane %v4622_v56, 5 }
 0x1bf   : > { %v1869_v22 = vrot.slane %v1840_v63, 4  ;;  %v1899_v11 = vrot.slane %v1856_v31, 4 }
 0x1c1   : > { %750 = vperm.xlu2 %3698, %v739_v57   ;;  %731 = vperm.xlu1 %3697, %v726_v27  }
 0x1c3   : > { %v4655_v29 = vpop.permute.xlu1 %581 }
 0x1c4   : > { %6326 = vst [vmem:[#allocation71_spill] sm:$0xff] %v4655_v29  ;;  %v1821_v32 = vrot.slane %v4655_v29, 4 }
 0x1c6   : > { %v1822_v60 = vsel %vm1013_vm0, %v1821_v32, %v4556_v9 }
 0x1c7   : > { %v1828_v27 = vperm.slane %v1822_v60, %v4005_v50 }
 0x1c9   : > { %v1871_v12 = vrot.slane %v1828_v27, 4  ;;  %3700 = vset.pattern.permute.xlu2 %v3898_v1  ;;  %744 = vperm.xlu1 %3697, %v739_v57   ;;  %v1870_v46 = vsel %vm1013_vm0, %v1869_v22, %v1828_v27 }
 0x1ca   : > { %v4670_v55 = vperm.slane %v1870_v46, %v4096_v41  ;;  %v6333_v46 = vperm.slane %v3958_v23, 4 }
 0x1cb   : > { %v1872_v32 = vsel %vm1013_vm0, %v1840_v63, %v1871_v12  ;;  %v6332_v12 = vperm.slane %v3958_v23, 6 }
 0x1cc   : > { %6328 = vst [vmem:[#allocation73_spill] sm:$0xff] %v4670_v55  ;;  %v1880_v59 = vperm.slane %v1872_v32, %v4096_v41  ;;  %v4677_v60 = vsel %vm1013_vm0, %v4670_v55, %v1895_v45  ;;  %v4691_v45 = vpop.permute.xlu2 %607 }
 0x1cd   : > { %6329 = vst [vmem:[#allocation74_spill] sm:$0xff] %v4677_v60 }
 0x1ce   : > { %v4681_v57 = vsel %vm1013_vm0, %v1880_v59, %v1899_v11  ;;  %v1897_v22 = vrot.slane %v1880_v59, 4  ;;  %6334 = vst [vmem:[#allocation77_spill] sm:$0xff] %v4691_v45 }
 0x1cf   : > { %6330 = vst [vmem:[#allocation75_spill] sm:$0xff] %v4681_v57 }
 0x1d0   : > { %v4684_v27 = vsel %vm1013_vm0, %v1897_v22, %v1856_v31  ;;  %v791_v31 = vperm.slane %v4622_v56, 7 }
 0x1d1   : > { %6331 = vst [vmem:[#allocation76_spill] sm:$0xff] %v4684_v27  ;;  %770 = vperm.xlu2 %3700, %v765_v13   ;;  %3699 = vset.pattern.permute.xlu1 %v3912_v6 }
 0x1d3   : > { %v602_v63 = vpop.permute.xlu1 %601 }
 0x1d4   : > { %v4694_v59 = vpop.permute.xlu2 %620 }
 0x1d5   : > { %6335 = vst [vmem:[#allocation78_spill] sm:$0xff] %v4694_v59 }
 0x1d9   : > { %783 = vperm.xlu2 %3700, %v6332_v12   ;;  %763 = vperm.xlu1 %3699, %v6333_v46   ;;  %v4702_v12 = vld [vmem:[%s3892_s5 + $0x30] sm:$0xff] }
 0x1da   : > { %v804_v23 = vperm.slane %v4702_v12, 0 }
 0x1db   : > { %v615_v32 = vpop.permute.xlu1 %614 }
 0x1dc   : > { %v641_v46 = vpop.permute.xlu2 %640 }
 0x1e1   : > { %3702 = vset.pattern.permute.xlu2 %v3912_v6  ;;  %776 = vperm.xlu1 %3699, %v765_v13  }
 0x1e9   : > { %802 = vperm.xlu2 %3702, %v791_v31   ;;  %3701 = vset.pattern.permute.xlu1 %v3898_v1 }
 0x1eb   : > { %v4698_v11 = vpop.permute.xlu1 %633 }
 0x1ec   : > { %6336 = vst [vmem:[#allocation79_spill] sm:$0xff] %v4698_v11  ;;  %v2133_v22 = vrot.slane %v4698_v11, 4  ;;  %v654_v11 = vpop.permute.xlu2 %653 }
 0x1ee   : > { %v2134_v13 = vsel %vm1013_vm0, %v2133_v22, %v4691_v45  ;;  %v830_v22 = vperm.slane %v4702_v12, 2  ;;  %v1923_v45 = vrot.slane %v615_v32, 4 }
 0x1ef   : > { %v4708_v29 = vperm.slane %v2134_v13, %v4005_v50  ;;  %v1911_v13 = vrot.slane %v602_v63, 4 }
 0x1f0   : > { %v1924_v60 = vsel %vm1013_vm0, %v641_v46, %v1923_v45  ;;  %v6343_v45 = vperm.slane %v3965_v26, 3 }
 0x1f1   : > { %815 = vperm.xlu2 %3702, %v804_v23   ;;  %796 = vperm.xlu1 %3701, %v791_v31   ;;  %6337 = vst [vmem:[#allocation80_spill] sm:$0xff] %v4708_v29  ;;  %v2183_v14 = vrot.slane %v4708_v29, 4  ;;  %v1909_v29 = vrot.slane %v4058_v28, 4 }
 0x1f3   : > { %v4710_v56 = vpop.permute.xlu1 %646 }
 0x1f4   : > { %6338 = vst [vmem:[#allocation81_spill] sm:$0xff] %v4710_v56  ;;  %v2145_v9 = vrot.slane %v4710_v56, 4  ;;  %v4725_v56 = vpop.permute.xlu2 %672 }
 0x1f5   : > { %6340 = vst [vmem:[#allocation83_spill] sm:$0xff] %v4725_v56 }
 0x1f6   : > { %v2146_v43 = vsel %vm1013_vm0, %v2145_v9, %v4694_v59  ;;  %v1912_v9 = vsel %vm1013_vm0, %v4058_v28, %v1911_v13  ;;  %v1910_v28 = vsel %vm1013_vm0, %v1909_v29, %v602_v63 }
 0x1f7   : > { %v4717_v27 = vperm.slane %v2146_v43, %v4005_v50  ;;  %v1921_v43 = vrot.slane %v641_v46, 4  ;;  %v6344_v46 = vperm.slane %v3965_v26, 1  ;;  %v4765_v29 = vperm.slane %v1910_v28, %v4005_v50 }
 0x1f9   : > { %6339 = vst [vmem:[#allocation82_spill] sm:$0xff] %v4717_v27  ;;  %3704 = vset.pattern.permute.xlu2 %v3898_v1  ;;  %809 = vperm.xlu1 %3701, %v804_v23   ;;  %v4722_v31 = vsel %vm1013_vm0, %v4717_v27, %v2183_v14  ;;  %v1945_v23 = vrot.slane %v4069_v38, 4  ;;  %v4733_v14 = vperm.slane %v1912_v9, %v4005_v50 }
 0x1fa   : > { %v1922_v57 = vsel %vm1013_vm0, %v1921_v43, %v615_v32  ;;  %v4738_v27 = vperm.slane %v1924_v60, %v4005_v50  ;;  %v1935_v32 = vrot.slane %v654_v11, 4 }
 0x1fb   : > { %6341 = vst [vmem:[#allocation84_spill] sm:$0xff] %v4733_v14  ;;  %v1971_v13 = vrot.slane %v4733_v14, 4  ;;  %v4743_v37 = vperm.slane %v1922_v57, %v4005_v50 }
 0x1fc   : > { %6342 = vst [vmem:[#allocation85_spill] sm:$0xff] %v4738_v27  ;;  %v4750_v9 = vpop.permute.xlu2 %685 }
 0x1fd   : > { %6345 = vst [vmem:[#allocation86_spill] sm:$0xff] %v4750_v9  ;;  %v1972_v43 = vsel %vm1013_vm0, %v4738_v27, %v1971_v13 }
 0x1fe   : > { %v4769_v63 = vperm.slane %v1972_v43, %v4096_v41 }
 0x200   : > { %6347 = vst [vmem:[#allocation88_spill] sm:$0xff] %v4769_v63 }
 0x201   : > { %835 = vperm.xlu2 %3704, %v830_v22   ;;  %3703 = vset.pattern.permute.xlu1 %v3912_v6 }
 0x203   : > { %v667_v59 = vpop.permute.xlu1 %666 }
 0x204   : > { %v1946_v2 = vsel %vm1013_vm0, %v1945_v23, %v667_v59  ;;  %v1947_v52 = vrot.slane %v667_v59, 4 }
 0x205   : > { %v4753_v60 = vperm.slane %v1946_v2, %v4005_v50 }
 0x206   : > { %v1948_v57 = vsel %vm1013_vm0, %v4069_v38, %v1947_v52 }
 0x207   : > { %v4772_v13 = vperm.slane %v1948_v57, %v4005_v50  ;;  %v1981_v38 = vrot.slane %v4753_v60, 4 }
 0x209   : > { %848 = vperm.xlu2 %3704, %v6343_v45   ;;  %828 = vperm.xlu1 %3703, %v6344_v46   ;;  %v1957_v46 = vrot.slane %v4743_v37, 4  ;;  %6348 = vst [vmem:[#allocation89_spill] sm:$0xff] %v4772_v13 }
 0x20b   : > { %v680_v59 = vpop.permute.xlu1 %679  ;;  %v1958_v28 = vsel %vm1013_vm0, %v1957_v46, %v4765_v29 }
 0x20c   : > { %v1933_v23 = vrot.slane %v680_v59, 4  ;;  %v1936_v45 = vsel %vm1013_vm0, %v680_v59, %v1935_v32 }
 0x20d   : > { %v4762_v55 = vperm.slane %v1936_v45, %v4005_v50  ;;  %v2019_v45 = vrot.slane %v4769_v63, 4 }
 0x20e   : > { %v1934_v2 = vsel %vm1013_vm0, %v1933_v23, %v654_v11  ;;  %v2157_v23 = vrot.slane %v4750_v9, 4 }
 0x20f   : > { %6346 = vst [vmem:[#allocation87_spill] sm:$0xff] %v4762_v55  ;;  %v4776_v52 = vperm.slane %v1934_v2, %v4005_v50  ;;  %v1995_v32 = vrot.slane %v4762_v55, 4  ;;  %v4798_v2 = vpop.permute.xlu2 %705 }
 0x211   : > { %3706 = vset.pattern.permute.xlu2 %v3912_v6  ;;  %841 = vperm.xlu1 %3703, %v830_v22   ;;  %v1982_v11 = vsel %vm1013_vm0, %v1981_v38, %v4776_v52  ;;  %v1996_v59 = vsel %vm1013_vm0, %v4772_v13, %v1995_v32  ;;  %v4795_v22 = vperm.slane %v1958_v28, %v4096_v41  ;;  %v856_v38 = vperm.slane %v4702_v12, 4 }
 0x212   : > { %v4787_v43 = vperm.slane %v1982_v11, %v4096_v41  ;;  %v4790_v57 = vperm.slane %v1996_v59, %v4096_v41  ;;  %v4805_v11 = vpop.permute.xlu0 %659 }
 0x213   : > { %6351 = vst [vmem:[#allocation92_spill] sm:$0xff] %v4805_v11  ;;  %v2158_v28 = vsel %vm1013_vm0, %v2157_v23, %v4805_v11 }
 0x214   : > { %6349 = vst [vmem:[#allocation90_spill] sm:$0xff] %v4790_v57  ;;  %v2005_v46 = vrot.slane %v4787_v43, 4  ;;  %v4803_v32 = vsel %vm1013_vm0, %v4790_v57, %v2019_v45  ;;  %v4815_v9 = vperm.slane %v2158_v28, %v4005_v50  ;;  %v2192_v28 = vperm.slane %v4722_v31, %v4096_v41 }
 0x215   : > { %6350 = vst [vmem:[#allocation91_spill] sm:$0xff] %v4803_v32  ;;  %v869_v32 = vperm.slane %v4702_v12, 5 }
 0x216   : > { %v4809_v59 = vsel %vm1013_vm0, %v2005_v46, %v4795_v22  ;;  %6353 = vst [vmem:[#allocation94_spill] sm:$0xff] %v4815_v9  ;;  %v2207_v57 = vrot.slane %v4815_v9, 4  ;;  %v2235_v55 = vrot.slane %v2192_v28, 4 }
 0x217   : > { %6352 = vst [vmem:[#allocation93_spill] sm:$0xff] %v4809_v59  ;;  %v4824_v14 = vpop.permute.xlu2 %718 }
 0x219   : > { %867 = vperm.xlu2 %3706, %v856_v38   ;;  %3705 = vset.pattern.permute.xlu1 %v3898_v1 }
 0x21b   : > { %v4817_v63 = vpop.permute.xlu1 %698 }
 0x21c   : > { %6354 = vst [vmem:[#allocation95_spill] sm:$0xff] %v4817_v63  ;;  %v2169_v45 = vrot.slane %v4817_v63, 4 }
 0x21e   : > { %v2170_v46 = vsel %vm1013_vm0, %v2169_v45, %v4725_v56 }
 0x21f   : > { %v4827_v23 = vperm.slane %v2170_v46, %v4005_v50  ;;  %v4840_v46 = vpop.permute.xlu2 %737 }
 0x220   : > { %6358 = vst [vmem:[#allocation99_spill] sm:$0xff] %v4840_v46 }
 0x221   : > { %6355 = vst [vmem:[#allocation96_spill] sm:$0xff] %v4827_v23  ;;  %880 = vperm.xlu2 %3706, %v869_v32   ;;  %861 = vperm.xlu1 %3705, %v856_v38   ;;  %v2208_v11 = vsel %vm1013_vm0, %v4827_v23, %v2207_v57  ;;  %v895_v38 = vperm.slane %v4702_v12, 7  ;;  %v4862_v23 = vpop.permute.xlu0 %724 }
 0x222   : > { %v2216_v63 = vperm.slane %v2208_v11, %v4096_v41  ;;  %6363 = vst [vmem:[#allocation102_spill] sm:$0xff] %v4862_v23 }
 0x223   : > { %v4843_v31 = vpop.permute.xlu1 %711 }
 0x224   : > { %v2233_v9 = vrot.slane %v2216_v63, 4  ;;  %v4835_v13 = vsel %vm1013_vm0, %v2216_v63, %v2235_v55  ;;  %6359 = vst [vmem:[#allocation100_spill] sm:$0xff] %v4843_v31  ;;  %v6361_v63 = vperm.slane %v3977_v30, 0 }
 0x225   : > { %6356 = vst [vmem:[#allocation97_spill] sm:$0xff] %v4835_v13 }
 0x226   : > { %v4838_v45 = vsel %vm1013_vm0, %v2233_v9, %v2192_v28 }
 0x227   : > { %6357 = vst [vmem:[#allocation98_spill] sm:$0xff] %v4838_v45  ;;  %v4847_v57 = vpop.permute.xlu2 %750 }
 0x228   : > { %6360 = vst [vmem:[#allocation101_spill] sm:$0xff] %v4847_v57 }
 0x229   : > { %3708 = vset.pattern.permute.xlu2 %v3898_v1  ;;  %874 = vperm.xlu1 %3705, %v869_v32   ;;  %v6362_v32 = vperm.slane %v3965_v26, 6  ;;  %v4881_v59 = vpop.permute.xlu0 %789 }
 0x22a   : > { %6364 = vst [vmem:[#allocation103_spill] sm:$0xff] %v4881_v59 }
 0x22f   : > { %v4858_v13 = vpop.permute.xlu2 %770 }
 0x231   : > { %900 = vperm.xlu2 %3708, %v895_v38   ;;  %3707 = vset.pattern.permute.xlu1 %v3912_v6 }
 0x233   : > { %v732_v11 = vpop.permute.xlu1 %731 }
 0x234   : > { %v2021_v55 = vrot.slane %v732_v11, 4 }
 0x236   : > { %v2022_v9 = vsel %vm1013_vm0, %v2021_v55, %v4798_v2 }
 0x237   : > { %v4856_v28 = vperm.slane %v2022_v9, %v4005_v50  ;;  %v2245_v9 = vrot.slane %v4840_v46, 4 }
 0x239   : > { %913 = vperm.xlu2 %3708, %v6361_v63   ;;  %893 = vperm.xlu1 %3707, %v6362_v32   ;;  %v2071_v55 = vrot.slane %v4856_v28, 4  ;;  %v784_v63 = vpop.permute.xlu2 %783  ;;  %v4875_v32 = vld [vmem:[%s3892_s5 + $0x38] sm:$0xff]  ;;  %v2246_v19 = vsel %vm1013_vm0, %v2245_v9, %v4843_v31 }
 0x23a   : > { %v934_v9 = vperm.slane %v4875_v32, 2 }
 0x23b   : > { %v745_v12 = vpop.permute.xlu1 %744 }
 0x23c   : > { %v2033_v45 = vrot.slane %v745_v12, 4 }
 0x23e   : > { %v2034_v56 = vsel %vm1013_vm0, %v2033_v45, %v4824_v14  ;;  %v921_v45 = vperm.slane %v4875_v32, 1 }
 0x23f   : > { %v4866_v27 = vperm.slane %v2034_v56, %v4005_v50  ;;  %v2257_v56 = vrot.slane %v4847_v57, 4 }
 0x241   : > { %3710 = vset.pattern.permute.xlu2 %v3912_v6  ;;  %906 = vperm.xlu1 %3707, %v895_v38   ;;  %v4871_v26 = vsel %vm1013_vm0, %v4866_v27, %v2071_v55  ;;  %v4884_v38 = vperm.slane %v2246_v19, %v4005_v50  ;;  %v2269_v55 = vrot.slane %v4881_v59, 4  ;;  %v2258_v51 = vsel %vm1013_vm0, %v2257_v56, %v4862_v23 }
 0x242   : > { %v4897_v19 = vperm.slane %v2258_v51, %v4005_v50  ;;  %v2080_v25 = vperm.slane %v4871_v26, %v4096_v41 }
 0x243   : > { %6365 = vst [vmem:[#allocation104_spill] sm:$0xff] %v4884_v38  ;;  %v2295_v42 = vrot.slane %v4884_v38, 4  ;;  %v4899_v57 = vpop.permute.xlu2 %802 }
 0x244   : > { %6367 = vst [vmem:[#allocation106_spill] sm:$0xff] %v4897_v19  ;;  %v2281_v48 = vrot.slane %v4899_v57, 4 }
 0x245   : > { %6368 = vst [vmem:[#allocation107_spill] sm:$0xff] %v4899_v57  ;;  %v2296_v56 = vsel %vm1013_vm0, %v4897_v19, %v2295_v42  ;;  %v960_v19 = vperm.slane %v4875_v32, 4 }
 0x246   : > { %v4912_v51 = vperm.slane %v2296_v56, %v4096_v41  ;;  %v2035_v56 = vrot.slane %v4824_v14, 4 }
 0x248   : > { %6371 = vst [vmem:[#allocation110_spill] sm:$0xff] %v4912_v51  ;;  %v2347_v38 = vrot.slane %v4912_v51, 4 }
 0x249   : > { %932 = vperm.xlu2 %3710, %v921_v45   ;;  %3709 = vset.pattern.permute.xlu1 %v3898_v1 }
 0x24b   : > { %v4888_v46 = vpop.permute.xlu1 %763 }
 0x24c   : > { %6366 = vst [vmem:[#allocation105_spill] sm:$0xff] %v4888_v46  ;;  %v2270_v31 = vsel %vm1013_vm0, %v2269_v55, %v4888_v46 }
 0x24d   : > { %v4903_v59 = vperm.slane %v2270_v31, %v4005_v50  ;;  %v2023_v31 = vrot.slane %v4798_v2, 4  ;;  %v2045_v2 = vrot.slane %v784_v63, 4 }
 0x24f   : > { %6369 = vst [vmem:[#allocation108_spill] sm:$0xff] %v4903_v59  ;;  %v2319_v46 = vrot.slane %v4903_v59, 4 }
 0x251   : > { %945 = vperm.xlu2 %3710, %v934_v9   ;;  %926 = vperm.xlu1 %3709, %v921_v45  }
 0x253   : > { %v4907_v23 = vpop.permute.xlu1 %776 }
 0x254   : > { %6370 = vst [vmem:[#allocation109_spill] sm:$0xff] %v4907_v23  ;;  %v2282_v55 = vsel %vm1013_vm0, %v2281_v48, %v4907_v23  ;;  %v2047_v48 = vrot.slane %v4084_v58, 4  ;;  %v4926_v23 = vpop.permute.xlu2 %815 }
 0x255   : > { %v4916_v57 = vperm.slane %v2282_v55, %v4005_v50  ;;  %6374 = vst [vmem:[#allocation113_spill] sm:$0xff] %v4926_v23  ;;  %v2024_v55 = vsel %vm1013_vm0, %v732_v11, %v2023_v31  ;;  %v2059_v11 = vrot.slane %v4858_v13, 4 }
 0x256   : > { %v2032_v51 = vperm.slane %v2024_v55, %v4005_v50  ;;  %v2048_v59 = vsel %vm1013_vm0, %v784_v63, %v2047_v48 }
 0x257   : > { %6372 = vst [vmem:[#allocation111_spill] sm:$0xff] %v4916_v57  ;;  %v2320_v45 = vsel %vm1013_vm0, %v4916_v57, %v2319_v46  ;;  %v2056_v31 = vperm.slane %v2048_v59, %v4005_v50  ;;  %v2069_v59 = vrot.slane %v4866_v27, 4  ;;  %v6376_v27 = vperm.slane %v3977_v30, 5 }
 0x258   : > { %v4922_v42 = vperm.slane %v2320_v45, %v4096_v41  ;;  %v2036_v45 = vsel %vm1013_vm0, %v745_v12, %v2035_v56  ;;  %v2083_v57 = vrot.slane %v2032_v51, 4 }
 0x259   : > { %3713 = vset.pattern.permute.xlu2 %v3898_v1  ;;  %939 = vperm.xlu1 %3709, %v934_v9   ;;  %v2046_v9 = vsel %vm1013_vm0, %v2045_v2, %v4084_v58  ;;  %v2044_v14 = vperm.slane %v2036_v45, %v4005_v50  ;;  %v2107_v55 = vrot.slane %v2056_v31, 4 }
 0x25a   : > { %6373 = vst [vmem:[#allocation112_spill] sm:$0xff] %v4922_v42  ;;  %v4933_v46 = vsel %vm1013_vm0, %v4922_v42, %v2347_v38  ;;  %v2052_v38 = vperm.slane %v2046_v9, %v4005_v50 }
 0x25b   : > { %6375 = vst [vmem:[#allocation114_spill] sm:$0xff] %v4933_v46  ;;  %v2081_v12 = vrot.slane %v2044_v14, 4  ;;  %v2084_v63 = vsel %vm1013_vm0, %v2044_v14, %v2083_v57 }
 0x25c   : > { %v4947_v48 = vpop.permute.xlu2 %835  ;;  %v2095_v45 = vrot.slane %v2052_v38, 4  ;;  %v2092_v42 = vperm.slane %v2084_v63, %v4096_v41 }
 0x25d   : > { %v2082_v14 = vsel %vm1013_vm0, %v2081_v12, %v2032_v51  ;;  %v2070_v51 = vsel %vm1013_vm0, %v2069_v59, %v4856_v28 }
 0x25e   : > { %v4970_v26 = vperm.slane %v2082_v14, %v4096_v41  ;;  %v2076_v28 = vperm.slane %v2070_v51, %v4096_v41 }
 0x261   : > { %965 = vperm.xlu2 %3713, %v960_v19   ;;  %3712 = vset.pattern.permute.xlu1 %v3912_v6 }
 0x263   : > { %v797_v56 = vpop.permute.xlu1 %796 }
 0x264   : > { %v2057_v58 = vrot.slane %v797_v56, 4  ;;  %v2060_v2 = vsel %vm1013_vm0, %v797_v56, %v2059_v11  ;;  %v2371_v56 = vrot.slane %v4118_v5, 4 }
 0x265   : > { %v2068_v46 = vperm.slane %v2060_v2, %v4005_v50 }
 0x266   : > { %v2058_v9 = vsel %vm1013_vm0, %v2057_v58, %v4858_v13  ;;  %v6377_v13 = vperm.slane %v3977_v30, 3  ;;  %v2131_v30 = vrot.slane %v2092_v42, 4 }
 0x267   : > { %v2064_v33 = vperm.slane %v2058_v9, %v4005_v50  ;;  %v2105_v57 = vrot.slane %v2068_v46, 4  ;;  %v2108_v11 = vsel %vm1013_vm0, %v2068_v46, %v2107_v55 }
 0x268   : > { %v2116_v12 = vperm.slane %v2108_v11, %v4096_v41 }
 0x269   : > { %v2093_v2 = vrot.slane %v2064_v33, 4  ;;  %978 = vperm.xlu2 %3713, %v6376_v27   ;;  %958 = vperm.xlu1 %3712, %v6377_v13   ;;  %v2106_v63 = vsel %vm1013_vm0, %v2105_v57, %v2056_v31  ;;  %v2096_v58 = vsel %vm1013_vm0, %v2064_v33, %v2095_v45  ;;  %v2123_v27 = vrot.slane %v2080_v25, 4  ;;  %v849_v45 = vpop.permute.xlu2 %848 }
 0x26a   : > { %v2104_v46 = vperm.slane %v2096_v58, %v4096_v41  ;;  %v4977_v33 = vperm.slane %v2106_v63, %v4096_v41  ;;  %v4984_v14 = vsel %vm1013_vm0, %v2116_v12, %v2131_v30  ;;  %v2127_v58 = vrot.slane %v4970_v26, 4 }
 0x26b   : > { %v810_v55 = vpop.permute.xlu1 %809  ;;  %v2094_v9 = vsel %vm1013_vm0, %v2093_v2, %v2052_v38  ;;  %v2372_v38 = vsel %vm1013_vm0, %v849_v45, %v2371_v56 }
 0x26c   : > { %v2359_v13 = vrot.slane %v810_v55, 4  ;;  %v2100_v31 = vperm.slane %v2094_v9, %v4096_v41  ;;  %v4981_v59 = vsel %vm1013_vm0, %v2104_v46, %v2123_v27  ;;  %v2121_v57 = vrot.slane %v2104_v46, 4 }
 0x26d   : > { %v2129_v46 = vrot.slane %v2116_v12, 4  ;;  %v5001_v27 = vsel %vm1013_vm0, %v4977_v33, %v2127_v58  ;;  %v5004_v56 = vperm.slane %v2372_v38, %v4005_v50  ;;  %v986_v12 = vperm.slane %v4875_v32, 6 }
 0x26e   : > { %v2360_v11 = vsel %vm1013_vm0, %v4947_v48, %v2359_v13  ;;  %v2117_v2 = vrot.slane %v2100_v31, 4  ;;  %v4994_v51 = vsel %vm1013_vm0, %v2121_v57, %v2080_v25  ;;  %v999_v57 = vperm.slane %v4875_v32, 7 }
 0x26f   : > { %v4991_v63 = vperm.slane %v2360_v11, %v4005_v50  ;;  %v5009_v13 = vsel %vm1013_vm0, %v2129_v46, %v2092_v42  ;;  %v2357_v42 = vrot.slane %v4947_v48, 4  ;;  %v2369_v32 = vrot.slane %v849_v45, 4 }
 0x270   : > { %v4997_v9 = vsel %vm1013_vm0, %v2117_v2, %v2076_v28  ;;  %v1223_v46 = vrot.slane %v4285_v49, 4  ;;  %v2381_v45 = vrot.slane %v4142_v36, 4 }
 0x271   : > { %v2419_v30 = vrot.slane %v4991_v63, 4  ;;  %3715 = vset.pattern.permute.xlu2 %v3912_v6  ;;  %971 = vperm.xlu1 %3712, %v960_v19   ;;  %v1559_v6 = vrot.slane %v4540_v34, 4  ;;  %v2358_v58 = vsel %vm1013_vm0, %v2357_v42, %v810_v55  ;;  %v2370_v34 = vsel %vm1013_vm0, %v2369_v32, %v4118_v5 }
 0x272   : > { %v2364_v48 = vperm.slane %v2358_v58, %v4005_v50  ;;  %v2376_v55 = vperm.slane %v2370_v34, %v4005_v50 }
 0x273   : > { %v2420_v25 = vsel %vm1013_vm0, %v5004_v56, %v2419_v30  ;;  %v5018_v11 = vpop.permute.xlu2 %867  ;;  %v1560_v19 = vsel %vm1013_vm0, %v4526_v20, %v1559_v6  ;;  %v2119_v30 = vrot.slane %v2076_v28, 4  ;;  %v1224_v20 = vsel %vm1013_vm0, %v4272_v0, %v1223_v46 }
 0x274   : > { %6379 = vst [vmem:[#allocation116_spill] sm:$0xff] %v5018_v11  ;;  %v2007_v0 = vrot.slane %v4795_v22, 4 }
 0x276   : > { %v2008_v32 = vsel %vm1013_vm0, %v4787_v43, %v2007_v0 }
 0x279   : > { %997 = vperm.xlu2 %3715, %v986_v12   ;;  %3714 = vset.pattern.permute.xlu1 %v3898_v1 }
 0x27b   : > { %v5016_v38 = vpop.permute.xlu1 %828  ;;  %v5027_v1 = vpop.permute.xlu2 %880 }
 0x27c   : > { %6378 = vst [vmem:[#allocation115_spill] sm:$0xff] %v5016_v38 }
 0x27d   : > { %6381 = vst [vmem:[#allocation118_spill] sm:$0xff] %v5027_v1 }
 0x281   : > { %1010 = vperm.xlu2 %3715, %v999_v57   ;;  %991 = vperm.xlu1 %3714, %v986_v12   ;;  %v2120_v12 = vsel %vm1013_vm0, %v2100_v31, %v2119_v30 }
 0x283   : > { %v5025_v2 = vpop.permute.xlu1 %841 }
 0x284   : > { %6380 = vst [vmem:[#allocation117_spill] sm:$0xff] %v5025_v2 }
 0x289   : > { %1004 = vperm.xlu1 %3714, %v999_v57   ;;  %2817 = vrot.lane.b32.xlu2 %v1560_v19, %s3805_s6  ;;  %v2407_v57 = vrot.slane %v2364_v48, 4  ;;  %v2405_v19 = vrot.slane %v2376_v55, 4 }
 0x28b   : > { %v901_v6 = vpop.permute.xlu2 %900  ;;  %v2408_v46 = vsel %vm1013_vm0, %v2376_v55, %v2407_v57  ;;  %v2406_v22 = vsel %vm1013_vm0, %v2405_v19, %v2364_v48  ;;  %v2428_v48 = vperm.slane %v2420_v25, %v4096_v41 }
 0x28c   : > { %v2393_v42 = vrot.slane %v901_v6, 4  ;;  %v2416_v43 = vperm.slane %v2408_v46, %v4096_v41  ;;  %v2412_v55 = vperm.slane %v2406_v22, %v4096_v41 }
 0x28e   : > { %v2455_v46 = vrot.slane %v2412_v55, 4 }
 0x291   : > { %2815 = vrot.lane.b32.xlu1 %v1224_v20, %s3805_s6  ;;  %2823 = vrot.lane.b32.xlu2 %v2120_v12, %s3805_s6 }
 0x293   : > { %v862_v49 = vpop.permute.xlu1 %861  ;;  %v5074_v25 = vpop.permute.xlu2 %913 }
 0x294   : > { %v2383_v28 = vrot.slane %v862_v49, 4  ;;  %v2382_v5 = vsel %vm1013_vm0, %v2381_v45, %v862_v49  ;;  %v1199_v49 = vrot.slane %v4236_v54, 4  ;;  %v2459_v54 = vrot.slane %v2416_v43, 4 }
 0x295   : > { %v2388_v58 = vperm.slane %v2382_v5, %v4005_v50 }
 0x296   : > { %v2384_v31 = vsel %vm1013_vm0, %v4142_v36, %v2383_v28  ;;  %v1200_v19 = vsel %vm1013_vm0, %v4230_v44, %v1199_v49  ;;  %v1983_v49 = vrot.slane %v4776_v52, 4 }
 0x297   : > { %v5054_v30 = vperm.slane %v2384_v31, %v4005_v50  ;;  %v2431_v12 = vrot.slane %v2388_v58, 4 }
 0x299   : > { %2821 = vrot.lane.b32.xlu1 %v2008_v32, %s3805_s6  ;;  %2845 = vrot.lane.b32.xlu2 %v4121_v15, %s3806_s12  ;;  %v2443_v28 = vrot.slane %v5054_v30, 4 }
 0x29b   : > { %v875_v36 = vpop.permute.xlu1 %874 }
 0x29c   : > { %v2394_v34 = vsel %vm1013_vm0, %v2393_v42, %v875_v36  ;;  %v2395_v20 = vrot.slane %v875_v36, 4  ;;  %v1175_v36 = vrot.slane %v4216_v8, 4  ;;  %v5095_v8 = vpop.permute.xlu0 %854 }
 0x29d   : > { %v2400_v45 = vperm.slane %v2394_v34, %v4005_v50  ;;  %v1208_v34 = vperm.slane %v1200_v19, %v4096_v41  ;;  %6382 = vst [vmem:[#allocation119_spill] sm:$0xff] %v5095_v8 }
 0x29e   : > { %v2396_v15 = vsel %vm1013_vm0, %v901_v6, %v2395_v20 }
 0x29f   : > { %v5065_v57 = vperm.slane %v2396_v15, %v4005_v50  ;;  %v2429_v5 = vrot.slane %v2400_v45, 4  ;;  %v2432_v0 = vsel %vm1013_vm0, %v2400_v45, %v2431_v12 }
 0x2a0   : > { %v2440_v31 = vperm.slane %v2432_v0, %v4096_v41  ;;  %v1176_v0 = vsel %vm1013_vm0, %v4193_v39, %v1175_v36 }
 0x2a1   : > { %2851 = vrot.lane.b32.xlu2 %v4630_v3, %s3806_s12  ;;  %v2430_v6 = vsel %vm1013_vm0, %v2429_v5, %v2388_v58  ;;  %v2444_v42 = vsel %vm1013_vm0, %v5065_v57, %v2443_v28  ;;  %v2467_v3 = vrot.slane %v2428_v48, 4  ;;  %v2581_v58 = vrot.slane %v5025_v2, 4 }
 0x2a2   : > { %v2436_v32 = vperm.slane %v2430_v6, %v4096_v41  ;;  %v5080_v22 = vsel %vm1013_vm0, %v2440_v31, %v2459_v54  ;;  %v2452_v44 = vperm.slane %v2444_v42, %v4096_v41  ;;  %v2457_v45 = vrot.slane %v2440_v31, 4 }
 0x2a3   : > { %v2593_v31 = vrot.slane %v5095_v8, 4  ;;  %v2582_v52 = vsel %vm1013_vm0, %v2581_v58, %v4926_v23  ;;  %v1225_v6 = vrot.slane %v1208_v34, 4  ;;  %v1184_v42 = vperm.slane %v1176_v0, %v4096_v41 }
 0x2a4   : > { %v2456_v20 = vsel %vm1013_vm0, %v2436_v32, %v2455_v46  ;;  %v2453_v12 = vrot.slane %v2436_v32, 4  ;;  %v5090_v15 = vsel %vm1013_vm0, %v2452_v44, %v2467_v3  ;;  %v2465_v28 = vrot.slane %v2452_v44, 4 }
 0x2a5   : > { %2825 = vrot.lane.b32.xlu0 %v2456_v20, %s3805_s6  ;;  %v2458_v54 = vsel %vm1013_vm0, %v2457_v45, %v2416_v43  ;;  %v2588_v39 = vperm.slane %v2582_v52, %v4005_v50  ;;  %v2594_v46 = vsel %vm1013_vm0, %v2593_v31, %v5016_v38  ;;  %v1226_v43 = vsel %vm1013_vm0, %v1225_v6, %v1184_v42 }
 0x2a6   : > { %v5093_v5 = vsel %vm1013_vm0, %v2453_v12, %v2412_v55  ;;  %v5100_v19 = vsel %vm1013_vm0, %v2465_v28, %v2428_v48  ;;  %v1984_v55 = vsel %vm1013_vm0, %v4753_v60, %v1983_v49  ;;  %v5113_v48 = vpop.permute.xlu2 %932  ;;  %v1959_v3 = vrot.slane %v4765_v29, 4 }
 0x2a7   : > { %v1992_v36 = vperm.slane %v1984_v55, %v4096_v41  ;;  %v1227_v60 = vrot.slane %v1184_v42, 4  ;;  %v2600_v58 = vperm.slane %v2594_v46, %v4005_v50  ;;  %v2631_v20 = vrot.slane %v2588_v39, 4 }
 0x2a8   : > { %v1960_v12 = vsel %vm1013_vm0, %v4743_v37, %v1959_v3 }
 0x2a9   : > { %2857 = vrot.lane.b32.xlu2 %v2458_v54, %s3806_s12  ;;  %v1228_v49 = vsel %vm1013_vm0, %v1208_v34, %v1227_v60  ;;  %v2009_v28 = vrot.slane %v1992_v36, 4  ;;  %v1968_v29 = vperm.slane %v1960_v12, %v4096_v41  ;;  %v2629_v0 = vrot.slane %v2600_v58, 4 }
 0x2aa   : > { %v2632_v54 = vsel %vm1013_vm0, %v2600_v58, %v2631_v20 }
 0x2ab   : > { %v5111_v32 = vpop.permute.xlu1 %893  ;;  %v2010_v6 = vsel %vm1013_vm0, %v2009_v28, %v1968_v29  ;;  %v2630_v55 = vsel %vm1013_vm0, %v2629_v0, %v2588_v39  ;;  %v2011_v46 = vrot.slane %v1968_v29, 4 }
 0x2ac   : > { %6383 = vst [vmem:[#allocation120_spill] sm:$0xff] %v5111_v32  ;;  %v2605_v44 = vrot.slane %v5111_v32, 4  ;;  %v5144_v58 = vperm.slane %v2630_v55, %v4096_v41 }
 0x2ad   : > { %2847 = vrot.lane.b32.xlu0 %v1226_v43, %s3806_s12  ;;  %v2012_v60 = vsel %vm1013_vm0, %v1992_v36, %v2011_v46 }
 0x2ae   : > { %v2606_v45 = vsel %vm1013_vm0, %v2605_v44, %v5018_v11  ;;  %v946_v34 = vpop.permute.xlu2 %945  ;;  %v2640_v44 = vperm.slane %v2632_v54, %v4096_v41  ;;  %v2679_v36 = vrot.slane %v5144_v58, 4 }
 0x2af   : > { %v2612_v31 = vperm.slane %v2606_v45, %v4005_v50 }
 0x2b0   : > { %v2683_v45 = vrot.slane %v2640_v44, 4 }
 0x2b1   : > { %2879 = vrot.lane.b32.xlu2 %v1228_v49, %s3807_s14  ;;  %v2655_v43 = vrot.slane %v2612_v31, 4 }
 0x2b3   : > { %v5131_v52 = vpop.permute.xlu1 %906 }
 0x2b4   : > { %6384 = vst [vmem:[#allocation121_spill] sm:$0xff] %v5131_v52  ;;  %v2617_v37 = vrot.slane %v5131_v52, 4 }
 0x2b5   : > { %2853 = vrot.lane.b32.xlu0 %v2010_v6, %s3806_s12 }
 0x2b6   : > { %v2618_v42 = vsel %vm1013_vm0, %v2617_v37, %v5027_v1 }
 0x2b7   : > { %v2624_v3 = vperm.slane %v2618_v42, %v4005_v50 }
 0x2b9   : > { %v2653_v20 = vrot.slane %v2624_v3, 4  ;;  %2885 = vrot.lane.b32.xlu2 %v2012_v60, %s3807_s14  ;;  %v2656_v12 = vsel %vm1013_vm0, %v2624_v3, %v2655_v43  ;;  %v2471_v3 = vrot.slane %v5074_v25, 4 }
 0x2ba   : > { %v2664_v39 = vperm.slane %v2656_v12, %v4096_v41 }
 0x2bb   : > { %v2654_v49 = vsel %vm1013_vm0, %v2653_v20, %v2612_v31  ;;  %v5164_v6 = vpop.permute.xlu2 %965 }
 0x2bc   : > { %v5151_v28 = vperm.slane %v2654_v49, %v4096_v41  ;;  %v5154_v29 = vsel %vm1013_vm0, %v2664_v39, %v2683_v45  ;;  %v2681_v0 = vrot.slane %v2664_v39, 4  ;;  %v920_v39 = vpop.permute.xlu0 %919 }
 0x2bd   : > { %6385 = vst [vmem:[#allocation122_spill] sm:$0xff] %v5154_v29 }
 0x2be   : > { %v5159_v54 = vsel %vm1013_vm0, %v5151_v28, %v2679_v36  ;;  %v5162_v37 = vsel %vm1013_vm0, %v2681_v0, %v2640_v44  ;;  %v2695_v36 = vrot.slane %v920_v39, 4 }
 0x2bf   : > { %6386 = vst [vmem:[#allocation123_spill] sm:$0xff] %v5159_v54 }
 0x2c0   : > { %6387 = vst [vmem:[#allocation124_spill] sm:$0xff] %v5162_v37  ;;  %v2696_v2 = vsel %vm1013_vm0, %v946_v34, %v2695_v36 }
 0x2c1   : > { %v2704_v23 = vperm.slane %v2696_v2, %v4005_v50 }
 0x2c3   : > { %v5166_v55 = vpop.permute.xlu1 %926  ;;  %v5172_v43 = vpop.permute.xlu2 %978  ;;  %v2755_v11 = vrot.slane %v2704_v23, 4 }
 0x2c4   : > { %v2483_v31 = vrot.slane %v5166_v55, 4 }
 0x2c6   : > { %v2484_v42 = vsel %vm1013_vm0, %v4154_v10, %v2483_v31  ;;  %v2693_v31 = vrot.slane %v946_v34, 4 }
 0x2c7   : > { %v2492_v46 = vperm.slane %v2484_v42, %v4005_v50 }
 0x2c8   : > { %v2694_v8 = vsel %vm1013_vm0, %v2693_v31, %v920_v39 }
 0x2c9   : > { %v2529_v20 = vrot.slane %v2492_v46, 4 }
 0x2cb   : > { %v5175_v60 = vpop.permute.xlu1 %939 }
 0x2cc   : > { %v2472_v44 = vsel %vm1013_vm0, %v5175_v60, %v2471_v3  ;;  %v2707_v3 = vrot.slane %v5113_v48, 4 }
 0x2cd   : > { %v2480_v12 = vperm.slane %v2472_v44, %v4005_v50  ;;  %v985_v44 = vpop.permute.xlu0 %984 }
 0x2ce   : > { %v2731_v32 = vrot.slane %v985_v44, 4 }
 0x2cf   : > { %v5181_v45 = vsel %vm1013_vm0, %v2529_v20, %v2480_v12  ;;  %v2531_v49 = vrot.slane %v2480_v12, 4  ;;  %v2700_v20 = vperm.slane %v2694_v8, %v4005_v50 }
 0x2d1   : > { %v5184_v0 = vsel %vm1013_vm0, %v2492_v46, %v2531_v49  ;;  %v2743_v34 = vrot.slane %v2700_v20, 4 }
 0x2d3   : > { %v998_v42 = vpop.permute.xlu2 %997 }
 0x2d4   : > { %v2717_v54 = vrot.slane %v998_v42, 4 }
 0x2db   : > { %v1011_v38 = vpop.permute.xlu2 %1010  ;;  %v959_v12 = vpop.permute.xlu1 %958 }
 0x2dc   : > { %v2729_v52 = vrot.slane %v1011_v38, 4  ;;  %v2705_v46 = vrot.slane %v959_v12, 4  ;;  %v2708_v49 = vsel %vm1013_vm0, %v959_v12, %v2707_v3  ;;  %v2732_v36 = vsel %vm1013_vm0, %v1011_v38, %v2731_v32 }
 0x2dd   : > { %v2716_v1 = vperm.slane %v2708_v49, %v4005_v50  ;;  %v2740_v3 = vperm.slane %v2732_v36, %v4005_v50 }
 0x2de   : > { %v2730_v39 = vsel %vm1013_vm0, %v2729_v52, %v985_v44  ;;  %v2706_v2 = vsel %vm1013_vm0, %v2705_v46, %v5113_v48 }
 0x2df   : > { %v2736_v31 = vperm.slane %v2730_v39, %v4005_v50  ;;  %v2712_v8 = vperm.slane %v2706_v2, %v4005_v50  ;;  %v2753_v37 = vrot.slane %v2716_v1, 4  ;;  %v2756_v29 = vsel %vm1013_vm0, %v2716_v1, %v2755_v11 }
 0x2e0   : > { %v2777_v1 = vrot.slane %v2740_v3, 4 }
 0x2e1   : > { %v2741_v12 = vrot.slane %v2712_v8, 4  ;;  %v2754_v49 = vsel %vm1013_vm0, %v2753_v37, %v2704_v23  ;;  %v2744_v52 = vsel %vm1013_vm0, %v2712_v8, %v2743_v34  ;;  %v2765_v38 = vrot.slane %v2736_v31, 4 }
 0x2e2   : > { %v2760_v34 = vperm.slane %v2754_v49, %v4096_v41 }
 0x2e3   : > { %v972_v32 = vpop.permute.xlu1 %971  ;;  %v2818_v44 = vpop.permute.xlu2 %2817  ;;  %v2742_v48 = vsel %vm1013_vm0, %v2741_v12, %v2700_v20 }
 0x2e4   : > { %v2718_v46 = vsel %vm1013_vm0, %v2717_v54, %v972_v32  ;;  %v2719_v39 = vrot.slane %v972_v32, 4  ;;  %v5207_v2 = vsel %vm3285_vm1, %v4550_v40, %v2818_v44  ;;  %v2748_v11 = vperm.slane %v2742_v48, %v4096_v41 }
 0x2e5   : > { %v2724_v23 = vperm.slane %v2718_v46, %v4005_v50  ;;  %v2752_v54 = vperm.slane %v2744_v52, %v4096_v41  ;;  %v2764_v32 = vperm.slane %v2756_v29, %v4096_v41  ;;  %v2469_v52 = vrot.slane %v5175_v60, 4 }
 0x2e6   : > { %v2720_v37 = vsel %vm1013_vm0, %v998_v42, %v2719_v39  ;;  %v2791_v40 = vrot.slane %v2748_v11, 4  ;;  %v2799_v29 = vrot.slane %v2760_v34, 4 }
 0x2e7   : > { %v2728_v36 = vperm.slane %v2720_v37, %v4005_v50  ;;  %v2766_v20 = vsel %vm1013_vm0, %v2765_v38, %v2724_v23  ;;  %v2767_v8 = vrot.slane %v2724_v23, 4  ;;  %v2795_v37 = vrot.slane %v2752_v54, 4 }
 0x2e8   : > { %v2772_v12 = vperm.slane %v2766_v20, %v4096_v41  ;;  %v2803_v60 = vrot.slane %v2764_v32, 4 }
 0x2e9   : > { %v2768_v44 = vsel %vm1013_vm0, %v2736_v31, %v2767_v8  ;;  %v2779_v48 = vrot.slane %v2728_v36, 4  ;;  %v2778_v46 = vsel %vm1013_vm0, %v2777_v1, %v2728_v36 }
 0x2ea   : > { %v5221_v42 = vsel %vm1013_vm0, %v2772_v12, %v2791_v40  ;;  %v2789_v49 = vrot.slane %v2772_v12, 4  ;;  %v2784_v39 = vperm.slane %v2778_v46, %v4096_v41  ;;  %v2776_v38 = vperm.slane %v2768_v44, %v4096_v41 }
 0x2eb   : > { %v2824_v23 = vpop.permute.xlu2 %2823  ;;  %v2780_v20 = vsel %vm1013_vm0, %v2740_v3, %v2779_v48 }
 0x2ec   : > { %v5229_v31 = vsel %vm3285_vm1, %v4997_v9, %v2824_v23  ;;  %v5232_v1 = vsel %vm1013_vm0, %v2789_v49, %v2748_v11  ;;  %v2797_v36 = vrot.slane %v2784_v39, 4  ;;  %v2793_v8 = vrot.slane %v2776_v38, 4 }
 0x2ed   : > { %v5235_v12 = vsel %vm1013_vm0, %v2776_v38, %v2795_v37  ;;  %v2788_v40 = vperm.slane %v2780_v20, %v4096_v41  ;;  %v5239_v44 = vsel %vm1013_vm0, %v2784_v39, %v2799_v29  ;;  %v2470_v11 = vsel %vm1013_vm0, %v2469_v52, %v5074_v25  ;;  %v2814_v38 = vpop.permute.xlu0 %2813 }
 0x2ee   : > { %v5242_v3 = vsel %vm1013_vm0, %v2797_v36, %v2760_v34  ;;  %v5245_v9 = vsel %vm1013_vm0, %v2793_v8, %v2752_v54  ;;  %v2481_v49 = vrot.slane %v4154_v10, 4  ;;  %v2495_v23 = vrot.slane %v5164_v6, 4 }
 0x2ef   : > { %v5250_v48 = vsel %vm1013_vm0, %v2788_v40, %v2803_v60  ;;  %v2801_v46 = vrot.slane %v2788_v40, 4  ;;  %v2476_v54 = vperm.slane %v2470_v11, %v4005_v50  ;;  %v3286_v25 = vsel %vm3285_vm1, %v4126_v4, %v2814_v38 }
 0x2f0   : > { %v2482_v34 = vsel %vm1013_vm0, %v2481_v49, %v5166_v55  ;;  %v2507_v4 = vrot.slane %v5172_v43, 4 }
 0x2f1   : > { %v5255_v39 = vsel %vm1013_vm0, %v2801_v46, %v2764_v32  ;;  %v2488_v36 = vperm.slane %v2482_v34, %v4005_v50  ;;  %v2519_v32 = vrot.slane %v2476_v54, 4 }
 0x2f2   : > { %6388 = vst [vmem:[#allocation125_spill] sm:$0xff] %v5255_v39 }
 0x2f3   : > { %v992_v52 = vpop.permute.xlu1 %991  ;;  %v2846_v37 = vpop.permute.xlu2 %2845  ;;  %v2517_v40 = vrot.slane %v2488_v36, 4  ;;  %v2520_v11 = vsel %vm1013_vm0, %v2488_v36, %v2519_v32 }
 0x2f4   : > { %v2493_v20 = vrot.slane %v992_v52, 4  ;;  %v2496_v10 = vsel %vm1013_vm0, %v992_v52, %v2495_v23  ;;  %v5264_v29 = vsel %vm3294_vm2, %v3286_v25, %v2846_v37  ;;  %v2540_v37 = vperm.slane %v5184_v0, %v4096_v41 }
 0x2f5   : > { %v2820_v8 = vpop.permute.xlu0 %2819  ;;  %v2504_v60 = vperm.slane %v2496_v10, %v4005_v50  ;;  %v2518_v34 = vsel %vm1013_vm0, %v2517_v40, %v2476_v54  ;;  %v2536_v54 = vperm.slane %v5181_v45, %v4096_v41 }
 0x2f6   : > { %v2494_v55 = vsel %vm1013_vm0, %v2493_v20, %v5164_v6  ;;  %v3289_v46 = vsel %vm3285_vm1, %v4619_v24, %v2820_v8  ;;  %v2528_v24 = vperm.slane %v2520_v11, %v4096_v41  ;;  %v2524_v32 = vperm.slane %v2518_v34, %v4096_v41 }
 0x2f7   : > { %v2500_v49 = vperm.slane %v2494_v55, %v4005_v50  ;;  %v2555_v20 = vrot.slane %v2504_v60, 4 }
 0x2f9   : > { %v2543_v8 = vrot.slane %v2500_v49, 4 }
 0x2fb   : > { %v1005_v38 = vpop.permute.xlu1 %1004  ;;  %v2852_v23 = vpop.permute.xlu2 %2851 }
 0x2fc   : > { %v2505_v25 = vrot.slane %v1005_v38, 4  ;;  %v2508_v52 = vsel %vm1013_vm0, %v1005_v38, %v2507_v4  ;;  %v5278_v6 = vsel %vm3294_vm2, %v3289_v46, %v2852_v23  ;;  %v2579_v46 = vrot.slane %v2540_v37, 4 }
 0x2fd   : > { %v2516_v10 = vperm.slane %v2508_v52, %v4005_v50  ;;  %v2571_v23 = vrot.slane %v2528_v24, 4 }
 0x2fe   : > { %v2506_v36 = vsel %vm1013_vm0, %v2505_v25, %v5172_v43 }
 0x2ff   : > { %v2512_v55 = vperm.slane %v2506_v36, %v4005_v50  ;;  %v2553_v40 = vrot.slane %v2516_v10, 4  ;;  %v2556_v4 = vsel %vm1013_vm0, %v2516_v10, %v2555_v20  ;;  %v2567_v10 = vrot.slane %v2524_v32, 4 }
 0x300   : > { %v2564_v0 = vperm.slane %v2556_v4, %v4096_v41  ;;  %v2575_v4 = vrot.slane %v2536_v54, 4 }
 0x301   : > { %v2541_v38 = vrot.slane %v2512_v55, 4  ;;  %v2544_v11 = vsel %vm1013_vm0, %v2512_v55, %v2543_v8  ;;  %v2554_v43 = vsel %vm1013_vm0, %v2553_v40, %v2504_v60 }
 0x302   : > { %v2552_v34 = vperm.slane %v2544_v11, %v4096_v41  ;;  %v2577_v25 = vrot.slane %v2564_v0, 4  ;;  %v2560_v45 = vperm.slane %v2554_v43, %v4096_v41  ;;  %v5297_v52 = vsel %vm1013_vm0, %v2564_v0, %v2579_v46 }
 0x303   : > { %v2816_v36 = vpop.permute.xlu1 %2815  ;;  %v2542_v20 = vsel %vm1013_vm0, %v2541_v38, %v2500_v49 }
 0x304   : > { %v3287_v39 = vsel %vm3285_vm1, %v4294_v16, %v2816_v36  ;;  %v2572_v8 = vsel %vm1013_vm0, %v2552_v34, %v2571_v23  ;;  %v2569_v55 = vrot.slane %v2552_v34, 4  ;;  %v2548_v60 = vperm.slane %v2542_v20, %v4096_v41  ;;  %v6390_v20 = vld [vmem:[#allocation62_spill] sm:$0xff] }
 0x305   : > { %2891 = vrot.lane.b32.xlu2 %v2572_v8, %s3807_s14  ;;  %v5306_v40 = vsel %vm1013_vm0, %v2577_v25, %v2540_v37  ;;  %v5309_v0 = vsel %vm1013_vm0, %v2560_v45, %v2575_v4  ;;  %v2573_v46 = vrot.slane %v2560_v45, 4  ;;  %v1565_v23 = vrot.slane %v4515_v61, 4  ;;  %v6389_v25 = vld [vmem:[#allocation65_spill] sm:$0xff] }
 0x306   : > { %v2570_v49 = vsel %vm1013_vm0, %v2569_v55, %v2528_v24  ;;  %v2568_v38 = vsel %vm1013_vm0, %v2548_v60, %v2567_v10  ;;  %v2565_v11 = vrot.slane %v2548_v60, 4  ;;  %v1073_v24 = vrot.slane %v4025_v62, 4  ;;  %v6391_v10 = vld [vmem:[#allocation63_spill] sm:$0xff] }
 0x307   : > { %2859 = vrot.lane.b32.xlu0 %v2570_v49, %s3806_s12  ;;  %2827 = vrot.lane.b32.xlu1 %v2568_v38, %s3805_s6  ;;  %v5316_v16 = vsel %vm1013_vm0, %v2573_v46, %v2536_v54  ;;  %v1566_v43 = vsel %vm1013_vm0, %v1565_v23, %v4505_v17  ;;  %v1097_v34 = vrot.slane %v4092_v21, 4  ;;  %v2125_v61 = vrot.slane %v4977_v33, 4  ;;  %v2858_v54 = vpop.permute.xlu2 %2857  ;;  %v6392_v49 = vld [vmem:[#allocation11_spill] sm:$0xff] }
 0x308   : > { %v5320_v37 = vsel %vm1013_vm0, %v2565_v11, %v2524_v32  ;;  %v1074_v32 = vsel %vm1013_vm0, %v1073_v24, %v4010_v53  ;;  %v1657_v33 = vrot.slane %v6389_v25, 4  ;;  %v2417_v60 = vrot.slane %v5004_v56, 4 }
 0x309   : > { %v1098_v17 = vsel %vm1013_vm0, %v1097_v34, %v4078_v47  ;;  %v2126_v62 = vsel %vm1013_vm0, %v2125_v61, %v4970_v26  ;;  %v1080_v21 = vperm.slane %v1074_v32, %v4096_v41  ;;  %v2441_v46 = vrot.slane %v5065_v57, 4 }
 0x30a   : > { %v1658_v4 = vsel %vm1013_vm0, %v1657_v33, %v6391_v10  ;;  %v2418_v34 = vsel %vm1013_vm0, %v2417_v60, %v4991_v63  ;;  %v6395_v63 = vld [vmem:[#allocation66_spill] sm:$0xff]  ;;  %v6396_v33 = vld [vmem:[#allocation17_spill] sm:$0xff] }
 0x30b   : > { %v1119_v45 = vrot.slane %v1080_v21, 4  ;;  %v1664_v55 = vperm.slane %v1658_v4, %v4096_v41  ;;  %v2442_v56 = vsel %vm1013_vm0, %v2441_v46, %v5054_v30  ;;  %v2822_v57 = vpop.permute.xlu1 %2821  ;;  %v6398_v4 = vld [vmem:[#allocation15_spill] sm:$0xff]  ;;  %v6400_v46 = vld [vmem:[#allocation85_spill] sm:$0xff] }
 0x30d   : > { %2913 = vrot.lane.b32.xlu2 %v1566_v43, %s3808_s15  ;;  %v1677_v24 = vrot.slane %v1664_v55, 4 }
 0x30f   : > { %2881 = vrot.lane.b32.xlu0 %v4529_v18, %s3807_s14  ;;  %2849 = vrot.lane.b32.xlu1 %v4546_v35, %s3806_s12  ;;  %v1104_v18 = vperm.slane %v1098_v17, %v4096_v41  ;;  %v1633_v35 = vrot.slane %v4575_v7, 4  ;;  %v2448_v17 = vperm.slane %v2442_v56, %v4096_v41  ;;  %v6403_v56 = vld [vmem:[#allocation22_spill] sm:$0xff] }
 0x311   : > { %v1117_v36 = vrot.slane %v1104_v18, 4  ;;  %v1634_v7 = vsel %vm1013_vm0, %v1633_v35, %v6390_v20  ;;  %v6397_v20 = vld [vmem:[#allocation18_spill] sm:$0xff] }
 0x313   : > { %v1118_v8 = vsel %vm1013_vm0, %v1117_v36, %v1080_v21  ;;  %v6394_v21 = vld [vmem:[#allocation93_spill] sm:$0xff]  ;;  %v2461_v36 = vrot.slane %v2448_v17, 4 }
 0x315   : > { %2919 = vrot.lane.b32.xlu2 %v2126_v62, %s3808_s15 }
 0x317   : > { %2887 = vrot.lane.b32.xlu0 %v4981_v59, %s3807_s14  ;;  %2855 = vrot.lane.b32.xlu1 %v4994_v51, %s3806_s12  ;;  %v2826_v53 = vpop.permute.xlu0 %2825  ;;  %v1120_v59 = vsel %vm1013_vm0, %v1104_v18, %v1119_v45  ;;  %v2880_v51 = vpop.permute.xlu2 %2879  ;;  %v3290_v18 = vsel %vm3285_vm1, %v6394_v21, %v2822_v57 }
 0x318   : > { %v3292_v47 = vsel %vm3285_vm1, %v5093_v5, %v2826_v53  ;;  %v1640_v5 = vperm.slane %v1634_v7, %v4096_v41  ;;  %v1185_v53 = vrot.slane %v6396_v33, 4 }
 0x319   : > { %v5350_v26 = vsel %vm3294_vm2, %v3292_v47, %v2858_v54  ;;  %v6393_v54 = vld [vmem:[#allocation20_spill] sm:$0xff] }
 0x31a   : > { %v1679_v43 = vrot.slane %v1640_v5, 4  ;;  %v1678_v32 = vsel %vm1013_vm0, %v1677_v24, %v1640_v5  ;;  %v1209_v62 = vrot.slane %v6393_v54, 4  ;;  %v6399_v5 = vld [vmem:[#allocation25_spill] sm:$0xff]  ;;  %v6402_v24 = vld [vmem:[#allocation87_spill] sm:$0xff] }
 0x31c   : > { %v1680_v61 = vsel %vm1013_vm0, %v1664_v55, %v1679_v43  ;;  %v1210_v7 = vsel %vm1013_vm0, %v1209_v62, %v6397_v20  ;;  %v1233_v55 = vrot.slane %v6399_v5, 4  ;;  %v6405_v62 = vld [vmem:[#allocation90_spill] sm:$0xff]  ;;  %v6409_v20 = vld [vmem:[#allocation57_spill] sm:$0xff] }
 0x31d   : > { %2941 = vrot.lane.b32.xlu2 %v1120_v59, %s3809_s16  ;;  %v1186_v59 = vsel %vm1013_vm0, %v1185_v53, %v6398_v4  ;;  %v2017_v21 = vrot.slane %v6405_v62, 4  ;;  %v6412_v4 = vld [vmem:[#allocation12_spill] sm:$0xff] }
 0x31e   : > { %v1192_v60 = vperm.slane %v1186_v59, %v4096_v41  ;;  %v1234_v57 = vsel %vm1013_vm0, %v1233_v55, %v6403_v56  ;;  %v6414_v59 = vld [vmem:[#allocation73_spill] sm:$0xff]  ;;  %v6417_v55 = vld [vmem:[#allocation36_spill] sm:$0xff] }
 0x31f   : > { %2909 = vrot.lane.b32.xlu0 %v1118_v8, %s3808_s15  ;;  %2877 = vrot.lane.b32.xlu1 %v6392_v49, %s3807_s14  ;;  %v2848_v38 = vpop.permute.xlu0 %2847  ;;  %v2886_v35 = vpop.permute.xlu2 %2885  ;;  %v1216_v8 = vperm.slane %v1210_v7, %v4096_v41  ;;  %v1969_v49 = vrot.slane %v6400_v46, 4 }
 0x320   : > { %v3296_v11 = vsel %vm3294_vm2, %v3287_v39, %v2848_v38  ;;  %v2424_v39 = vperm.slane %v2418_v34, %v4096_v41  ;;  %v6401_v38 = vld [vmem:[#allocation89_spill] sm:$0xff] }
 0x321   : > { %v5368_v23 = vsel %vm3303_vm3, %v3296_v11, %v2880_v51  ;;  %v1993_v11 = vrot.slane %v6401_v38, 4  ;;  %v1229_v43 = vrot.slane %v1216_v8, 4  ;;  %v6419_v38 = vld [vmem:[#allocation68_spill] sm:$0xff] }
 0x322   : > { %v2463_v45 = vrot.slane %v2424_v39, 4  ;;  %v2462_v51 = vsel %vm1013_vm0, %v2461_v36, %v2424_v39  ;;  %v6408_v36 = vld [vmem:[#allocation56_spill] sm:$0xff] }
 0x323   : > { %v1994_v34 = vsel %vm1013_vm0, %v1993_v11, %v6402_v24  ;;  %v2677_v11 = vrot.slane %v5151_v28, 4 }
 0x324   : > { %v2464_v10 = vsel %vm1013_vm0, %v2448_v17, %v2463_v45  ;;  %v1230_v17 = vsel %vm1013_vm0, %v1229_v43, %v1192_v60  ;;  %v2000_v54 = vperm.slane %v1994_v34, %v4096_v41  ;;  %v6407_v45 = vld [vmem:[#allocation55_spill] sm:$0xff]  ;;  %v6420_v43 = vld [vmem:[#allocation24_spill] sm:$0xff] }
 0x325   : > { %2947 = vrot.lane.b32.xlu2 %v1680_v61, %s3809_s16  ;;  %v1231_v61 = vrot.slane %v1192_v60, 4  ;;  %v1421_v60 = vrot.slane %v6417_v55, 4  ;;  %v6421_v34 = vld [vmem:[#allocation32_spill] sm:$0xff] }
 0x327   : > { %2915 = vrot.lane.b32.xlu0 %v1678_v32, %s3808_s15  ;;  %2883 = vrot.lane.b32.xlu1 %v6395_v63, %s3807_s14  ;;  %v2854_v30 = vpop.permute.xlu0 %2853  ;;  %v1232_v39 = vsel %vm1013_vm0, %v1216_v8, %v1231_v61  ;;  %v2013_v63 = vrot.slane %v2000_v54, 4  ;;  %v6416_v8 = vld [vmem:[#allocation27_spill] sm:$0xff]  ;;  %v1422_v56 = vsel %vm1013_vm0, %v1421_v60, %v6421_v34  ;;  %v6430_v60 = vld [vmem:[#allocation45_spill] sm:$0xff] }
 0x328   : > { %v3299_v25 = vsel %vm3294_vm2, %v3290_v18, %v2854_v30  ;;  %v6406_v30 = vld [vmem:[#allocation88_spill] sm:$0xff]  ;;  %v1397_v5 = vrot.slane %v6416_v8, 4 }
 0x329   : > { %v5388_v47 = vsel %vm3303_vm3, %v3299_v25, %v2886_v35  ;;  %v2018_v35 = vsel %vm1013_vm0, %v2017_v21, %v6406_v30 }
 0x32a   : > { %v1398_v24 = vsel %vm1013_vm0, %v1397_v5, %v6420_v43  ;;  %v6431_v43 = vld [vmem:[#allocation41_spill] sm:$0xff] }
 0x32b   : > { %v1404_v61 = vperm.slane %v1398_v24, %v4096_v41 }
 0x32d   : > { %2953 = vrot.lane.b32.xlu2 %v2464_v10, %s3809_s16  ;;  %v1447_v62 = vrot.slane %v1404_v61, 4 }
 0x32f   : > { %2921 = vrot.lane.b32.xlu0 %v2462_v51, %s3808_s15  ;;  %2889 = vrot.lane.b32.xlu1 %v5080_v22, %s3807_s14  ;;  %v6404_v22 = vld [vmem:[#allocation84_spill] sm:$0xff] }
 0x330   : > { %v1970_v32 = vsel %vm1013_vm0, %v1969_v49, %v6404_v22  ;;  %v6415_v51 = vld [vmem:[#allocation72_spill] sm:$0xff]  ;;  %v6418_v49 = vld [vmem:[#allocation67_spill] sm:$0xff]  ;;  %v1428_v22 = vperm.slane %v1422_v56, %v4096_v41 }
 0x331   : > { %v1976_v18 = vperm.slane %v1970_v32, %v4096_v41  ;;  %v6422_v32 = vld [vmem:[#allocation82_spill] sm:$0xff]  ;;  %v6432_v56 = vld [vmem:[#allocation111_spill] sm:$0xff] }
 0x332   : > { %v1445_v21 = vrot.slane %v1428_v22, 4 }
 0x333   : > { %v2015_v25 = vrot.slane %v1976_v18, 4  ;;  %v2014_v53 = vsel %vm1013_vm0, %v2013_v63, %v1976_v18  ;;  %v6425_v63 = vld [vmem:[#allocation94_spill] sm:$0xff] }
 0x335   : > { %2975 = vrot.lane.b32.xlu2 %v1234_v57, %s3810_s17  ;;  %v2016_v33 = vsel %vm1013_vm0, %v2000_v54, %v2015_v25  ;;  %v2678_v57 = vsel %vm1013_vm0, %v2677_v11, %v5144_v58  ;;  %v6424_v58 = vld [vmem:[#allocation80_spill] sm:$0xff]  ;;  %v1446_v25 = vsel %vm1013_vm0, %v1445_v21, %v1404_v61 }
 0x337   : > { %2943 = vrot.lane.b32.xlu0 %v1232_v39, %s3809_s16  ;;  %2911 = vrot.lane.b32.xlu1 %v1230_v17, %s3808_s15  ;;  %v2181_v39 = vrot.slane %v6422_v32, 4  ;;  %v6423_v17 = vld [vmem:[#allocation96_spill] sm:$0xff]  ;;  %v6434_v32 = vld [vmem:[#allocation106_spill] sm:$0xff] }
 0x338   : > { %v2205_v54 = vrot.slane %v6423_v17, 4 }
 0x339   : > { %v2182_v18 = vsel %vm1013_vm0, %v2181_v39, %v6424_v58  ;;  %v6435_v58 = vld [vmem:[#allocation108_spill] sm:$0xff] }
 0x33a   : > { %v2206_v30 = vsel %vm1013_vm0, %v2205_v54, %v6425_v63 }
 0x33d   : > { %2981 = vrot.lane.b32.xlu2 %v2018_v35, %s3810_s17  ;;  %v1448_v35 = vsel %vm1013_vm0, %v1428_v22, %v1447_v62 }
 0x33f   : > { %2949 = vrot.lane.b32.xlu0 %v2016_v33, %s3809_s16  ;;  %2917 = vrot.lane.b32.xlu1 %v2014_v53, %s3808_s15  ;;  %v2212_v33 = vperm.slane %v2206_v30, %v4096_v41  ;;  %v6426_v53 = vld [vmem:[#allocation28_spill] sm:$0xff] }
 0x345   : > { %2987 = vrot.lane.b32.xlu2 %v5306_v40, %s3810_s17  ;;  %v6410_v40 = vld [vmem:[#allocation21_spill] sm:$0xff] }
 0x347   : > { %2955 = vrot.lane.b32.xlu0 %v5309_v0, %s3809_s16  ;;  %2923 = vrot.lane.b32.xlu1 %v5316_v16, %s3808_s15  ;;  %v1333_v0 = vrot.slane %v6410_v40, 4  ;;  %v6411_v16 = vld [vmem:[#allocation19_spill] sm:$0xff] }
 0x349   : > { %v1334_v7 = vsel %vm1013_vm0, %v1333_v0, %v6411_v16  ;;  %v2229_v0 = vrot.slane %v2212_v33, 4 }
 0x34d   : > { %3009 = vrot.lane.b32.xlu2 %v6407_v45, %s3811_s19 }
 0x34f   : > { %2977 = vrot.lane.b32.xlu0 %v6408_v36, %s3810_s17  ;;  %2945 = vrot.lane.b32.xlu1 %v6409_v20, %s3809_s16 }
 0x355   : > { %3015 = vrot.lane.b32.xlu2 %v4984_v14, %s3811_s19  ;;  %v6413_v14 = vld [vmem:[#allocation13_spill] sm:$0xff] }
 0x357   : > { %2983 = vrot.lane.b32.xlu0 %v5009_v13, %s3810_s17  ;;  %2951 = vrot.lane.b32.xlu1 %v5001_v27, %s3809_s16  ;;  %v1893_v13 = vrot.slane %v6414_v59, 4  ;;  %v6427_v59 = vld [vmem:[#allocation46_spill] sm:$0xff] }
 0x359   : > { %v1894_v27 = vsel %vm1013_vm0, %v1893_v13, %v6415_v51  ;;  %v1757_v13 = vrot.slane %v6427_v59, 4 }
 0x35d   : > { %3037 = vrot.lane.b32.xlu2 %v1334_v7, %s3812_s20 }
 0x35f   : > { %v2892_v10 = vpop.permute.xlu2 %2891  ;;  %3005 = vrot.lane.b32.xlu0 %v6412_v4, %s3811_s19  ;;  %2973 = vrot.lane.b32.xlu1 %v6413_v14, %s3810_s17 }
 0x365   : > { %3043 = vrot.lane.b32.xlu2 %v1894_v27, %s3812_s20  ;;  %v6428_v27 = vld [vmem:[#allocation91_spill] sm:$0xff] }
 0x367   : > { %v2914_v46 = vpop.permute.xlu2 %2913  ;;  %3011 = vrot.lane.b32.xlu0 %v6418_v49, %s3811_s19  ;;  %2979 = vrot.lane.b32.xlu1 %v6419_v38, %s3810_s17  ;;  %v1758_v49 = vsel %vm1013_vm0, %v1757_v13, %v6430_v60 }
 0x368   : > { %v1764_v34 = vperm.slane %v1758_v49, %v4096_v41  ;;  %v6440_v49 = vld [vmem:[#allocation23_spill] sm:$0xff] }
 0x36a   : > { %v1781_v62 = vrot.slane %v1764_v34, 4 }
 0x36d   : > { %3049 = vrot.lane.b32.xlu2 %v2678_v57, %s3812_s20  ;;  %v2317_v57 = vrot.slane %v6432_v56, 4 }
 0x36f   : > { %v2920_v28 = vpop.permute.xlu2 %2919  ;;  %3017 = vrot.lane.b32.xlu0 %v5090_v15, %s3811_s19  ;;  %2985 = vrot.lane.b32.xlu1 %v5100_v19, %s3810_s17  ;;  %v2188_v15 = vperm.slane %v2182_v18, %v4096_v41  ;;  %v6436_v18 = vld [vmem:[#allocation48_spill] sm:$0xff] }
 0x371   : > { %v2231_v40 = vrot.slane %v2188_v15, 4  ;;  %v2230_v14 = vsel %vm1013_vm0, %v2229_v0, %v2188_v15 }
 0x373   : > { %v2232_v7 = vsel %vm1013_vm0, %v2212_v33, %v2231_v40 }
 0x375   : > { %3071 = vrot.lane.b32.xlu2 %v1448_v35, %s3813_s21  ;;  %v6437_v35 = vld [vmem:[#allocation104_spill] sm:$0xff] }
 0x377   : > { %v5487_v19 = vpop.permute.xlu2 %2941  ;;  %3007 = vrot.lane.b32.xlu1 %v6426_v53, %s3811_s19  ;;  %3039 = vrot.lane.b32.xlu0 %v1446_v25, %s3812_s20 }
 0x379   : > { %v2828_v45 = vpop.permute.xlu1 %2827  ;;  %v2860_v36 = vpop.permute.xlu0 %2859 }
 0x37a   : > { %v3293_v20 = vsel %vm3285_vm1, %v5320_v37, %v2828_v45  ;;  %v6429_v37 = vld [vmem:[#allocation43_spill] sm:$0xff]  ;;  %v6438_v45 = vld [vmem:[#allocation112_spill] sm:$0xff]  ;;  %vm3461_vm1 = vcmask 523264  }
 0x37b   : > { %v3302_v16 = vsel %vm3294_vm2, %v3293_v20, %v2860_v36  ;;  %v1733_v8 = vrot.slane %v6429_v37, 4 }
 0x37c   : > { %v5497_v4 = vsel %vm3303_vm3, %v3302_v16, %v2892_v10 }
 0x37d   : > { %3077 = vrot.lane.b32.xlu2 %v2232_v7, %s3813_s21  ;;  %v1734_v24 = vsel %vm1013_vm0, %v1733_v8, %v6431_v43  ;;  %v6441_v43 = vld [vmem:[#allocation26_spill] sm:$0xff] }
 0x37e   : > { %v1740_v22 = vperm.slane %v1734_v24, %v4096_v41  ;;  %v6442_v24 = vld [vmem:[#allocation29_spill] sm:$0xff] }
 0x37f   : > { %v2948_v51 = vpop.permute.xlu2 %2947  ;;  %3013 = vrot.lane.b32.xlu1 %v6428_v27, %s3811_s19  ;;  %3045 = vrot.lane.b32.xlu0 %v2230_v14, %s3812_s20  ;;  %v6439_v14 = vld [vmem:[#allocation110_spill] sm:$0xff] }
 0x380   : > { %v1783_v63 = vrot.slane %v1740_v22, 4 }
 0x381   : > { %v2850_v5 = vpop.permute.xlu1 %2849  ;;  %v2882_v55 = vpop.permute.xlu0 %2881 }
 0x382   : > { %v3297_v10 = vsel %vm3294_vm2, %v5207_v2, %v2850_v5  ;;  %v6433_v2 = vld [vmem:[#allocation51_spill] sm:$0xff]  ;;  %v1784_v15 = vsel %vm1013_vm0, %v1764_v34, %v1783_v63 }
 0x383   : > { %v3306_v38 = vsel %vm3303_vm3, %v3297_v10, %v2882_v55 }
 0x384   : > { %v5512_v11 = vsel %vm3312_vm4, %v3306_v38, %v2914_v46  ;;  %v1785_v46 = vrot.slane %v6433_v2, 4 }
 0x385   : > { %3083 = vrot.lane.b32.xlu2 %v5221_v42, %s3813_s21  ;;  %v2293_v42 = vrot.slane %v6434_v32, 4  ;;  %v6445_v32 = vld [vmem:[#allocation95_spill] sm:$0xff] }
 0x387   : > { %v2954_v61 = vpop.permute.xlu2 %2953  ;;  %3019 = vrot.lane.b32.xlu1 %v5297_v52, %s3811_s19  ;;  %3051 = vrot.lane.b32.xlu0 %v5232_v1, %s3812_s20  ;;  %v2318_v52 = vsel %vm1013_vm0, %v2317_v57, %v6435_v58  ;;  %v1786_v1 = vsel %vm1013_vm0, %v1785_v46, %v6436_v18  ;;  %v2294_v25 = vsel %vm1013_vm0, %v2293_v42, %v6437_v35  ;;  %v6443_v57 = vld [vmem:[#allocation83_spill] sm:$0xff]  ;;  %v6450_v35 = vld [vmem:[#allocation81_spill] sm:$0xff] }
 0x388   : > { %v2324_v33 = vperm.slane %v2318_v52, %v4096_v41  ;;  %v2300_v36 = vperm.slane %v2294_v25, %v4096_v41  ;;  %v6449_v52 = vld [vmem:[#allocation78_spill] sm:$0xff] }
 0x389   : > { %v2856_v39 = vpop.permute.xlu1 %2855  ;;  %v2888_v17 = vpop.permute.xlu0 %2887  ;;  %v2147_v18 = vrot.slane %v6449_v52, 4 }
 0x38a   : > { %v3300_v54 = vsel %vm3294_vm2, %v5229_v31, %v2856_v39  ;;  %v1782_v31 = vsel %vm1013_vm0, %v1781_v62, %v1740_v22  ;;  %v2341_v16 = vrot.slane %v2324_v33, 4  ;;  %v2343_v13 = vrot.slane %v2300_v36, 4  ;;  %v6444_v22 = vld [vmem:[#allocation75_spill] sm:$0xff] }
 0x38b   : > { %v3309_v21 = vsel %vm3303_vm3, %v3300_v54, %v2888_v17  ;;  %v6446_v17 = vld [vmem:[#allocation74_spill] sm:$0xff]  ;;  %v6447_v54 = vld [vmem:[#allocation76_spill] sm:$0xff]  ;;  %v2148_v25 = vsel %vm1013_vm0, %v6450_v35, %v2147_v18  ;;  %v6463_v18 = vld [vmem:[#allocation49_spill] sm:$0xff] }
 0x38c   : > { %v5535_v30 = vsel %vm3312_vm4, %v3309_v21, %v2920_v28  ;;  %v2345_v28 = vrot.slane %v6438_v45, 4  ;;  %v2342_v37 = vsel %vm1013_vm0, %v2341_v16, %v2300_v36  ;;  %v2344_v8 = vsel %vm1013_vm0, %v2324_v33, %v2343_v13  ;;  %v6453_v36 = vld [vmem:[#allocation77_spill] sm:$0xff]  ;;  %v6454_v16 = vld [vmem:[#allocation123_spill] sm:$0xff] }
 0x38d   : > { %3105 = vrot.lane.b32.xlu2 %v1786_v1, %s3814_s22  ;;  %v6465_v35 = vld [vmem:[#allocation97_spill] sm:$0xff] }
 0x38e   : > { %v2346_v59 = vsel %vm1013_vm0, %v2345_v28, %v6439_v14  ;;  %v6452_v28 = vld [vmem:[#allocation122_spill] sm:$0xff] }
 0x38f   : > { %v2976_v53 = vpop.permute.xlu2 %2975  ;;  %3041 = vrot.lane.b32.xlu1 %v1782_v31, %s3812_s20  ;;  %3073 = vrot.lane.b32.xlu0 %v1784_v15, %s3813_s21  ;;  %v6451_v31 = vld [vmem:[#allocation86_spill] sm:$0xff] }
 0x391   : > { %v2878_v20 = vpop.permute.xlu1 %2877  ;;  %v2910_v40 = vpop.permute.xlu0 %2909 }
 0x392   : > { %v3304_v0 = vsel %vm3303_vm3, %v5264_v29, %v2878_v20  ;;  %v2135_v20 = vrot.slane %v6453_v36, 4  ;;  %v6468_v36 = vld [vmem:[#allocation105_spill] sm:$0xff] }
 0x393   : > { %v3313_v7 = vsel %vm3312_vm4, %v3304_v0, %v2910_v40 }
 0x394   : > { %v5554_v27 = vsel %vm3321_vm5, %v3313_v7, %v5487_v19  ;;  %v6456_v7 = vld [vmem:[#allocation37_spill] sm:$0xff] }
 0x395   : > { %3111 = vrot.lane.b32.xlu2 %v2346_v59, %s3814_s22  ;;  %v1453_v14 = vrot.slane %v6456_v7, 4 }
 0x397   : > { %v2982_v5 = vpop.permute.xlu2 %2981  ;;  %3047 = vrot.lane.b32.xlu1 %v2342_v37, %s3812_s20  ;;  %3079 = vrot.lane.b32.xlu0 %v2344_v8, %s3813_s21  ;;  %v6457_v8 = vld [vmem:[#allocation79_spill] sm:$0xff] }
 0x399   : > { %v2884_v29 = vpop.permute.xlu1 %2883  ;;  %v2916_v55 = vpop.permute.xlu0 %2915 }
 0x39a   : > { %v3307_v10 = vsel %vm3303_vm3, %v5278_v6, %v2884_v29  ;;  %v2171_v6 = vrot.slane %v6443_v57, 4  ;;  %v2136_v29 = vsel %vm1013_vm0, %v6457_v8, %v2135_v20  ;;  %v6459_v57 = vld [vmem:[#allocation40_spill] sm:$0xff]  ;;  %v2271_v20 = vrot.slane %v6468_v36, 4  ;;  %v6471_v8 = vld [vmem:[#allocation5_spill] sm:$0xff] }
 0x39b   : > { %v3316_v60 = vsel %vm3312_vm4, %v3307_v10, %v2916_v55 }
 0x39c   : > { %v5565_v19 = vsel %vm3321_vm5, %v3316_v60, %v2948_v51  ;;  %v2172_v42 = vsel %vm1013_vm0, %v6445_v32, %v2171_v6  ;;  %v6460_v6 = vld [vmem:[#allocation38_spill] sm:$0xff] }
 0x39d   : > { %3133 = vrot.lane.b32.xlu2 %v6440_v49, %s3815_s23  ;;  %v5592_v21 = vperm.slane %v2172_v42, %v4005_v50  ;;  %v6458_v49 = vld [vmem:[#allocation34_spill] sm:$0xff] }
 0x39f   : > { %v2988_v38 = vpop.permute.xlu2 %2987  ;;  %3069 = vrot.lane.b32.xlu1 %v6441_v43, %s3813_s21  ;;  %3101 = vrot.lane.b32.xlu0 %v6442_v24, %s3814_s22  ;;  %v2217_v45 = vrot.slane %v5592_v21, 4  ;;  %v1454_v43 = vsel %vm1013_vm0, %v1453_v14, %v6458_v49 }
 0x3a1   : > { %v2890_v34 = vpop.permute.xlu1 %2889  ;;  %v2922_v56 = vpop.permute.xlu0 %2921 }
 0x3a2   : > { %v3310_v2 = vsel %vm3303_vm3, %v5350_v26, %v2890_v34  ;;  %v6448_v26 = vld [vmem:[#allocation92_spill] sm:$0xff] }
 0x3a3   : > { %v3319_v51 = vsel %vm3312_vm4, %v3310_v2, %v2922_v56  ;;  %v2159_v62 = vrot.slane %v6448_v26, 4  ;;  %v5639_v56 = vperm.slane %v2136_v29, %v4005_v50  ;;  %v1251_v29 = vrot.slane %v6471_v8, 4 }
 0x3a4   : > { %v5578_v46 = vsel %vm3321_vm5, %v3319_v51, %v2954_v61 }
 0x3a5   : > { %3139 = vrot.lane.b32.xlu2 %v6444_v22, %s3815_s23  ;;  %v2160_v15 = vsel %vm1013_vm0, %v6451_v31, %v2159_v62 }
 0x3a6   : > { %v5613_v40 = vperm.slane %v2160_v15, %v4005_v50 }
 0x3a7   : > { %v5584_v39 = vpop.permute.xlu2 %3009  ;;  %3075 = vrot.lane.b32.xlu1 %v6446_v17, %s3813_s21  ;;  %3107 = vrot.lane.b32.xlu0 %v6447_v54, %s3814_s22  ;;  %v6461_v54 = vld [vmem:[#allocation109_spill] sm:$0xff] }
 0x3a8   : > { %v2218_v37 = vsel %vm1013_vm0, %v2217_v45, %v5613_v40  ;;  %v2283_v26 = vrot.slane %v6461_v54, 4  ;;  %v6467_v45 = vld [vmem:[#allocation102_spill] sm:$0xff] }
 0x3a9   : > { %v2912_v61 = vpop.permute.xlu1 %2911  ;;  %v2944_v58 = vpop.permute.xlu0 %2943  ;;  %v5633_v24 = vperm.slane %v2218_v37, %v4096_v41 }
 0x3aa   : > { %v3314_v1 = vsel %vm3312_vm4, %v5368_v23, %v2912_v61  ;;  %v5610_v23 = vperm.slane %v2148_v25, %v4005_v50  ;;  %v6466_v25 = vld [vmem:[#allocation107_spill] sm:$0xff] }
 0x3ab   : > { %v3323_v63 = vsel %vm3321_vm5, %v3314_v1, %v2944_v58  ;;  %v6462_v58 = vld [vmem:[#allocation44_spill] sm:$0xff]  ;;  %v1769_v1 = vrot.slane %v6463_v18, 4  ;;  %v2284_v31 = vsel %vm1013_vm0, %v6466_v25, %v2283_v26  ;;  %v6480_v18 = vld [vmem:[#allocation9_spill] sm:$0xff] }
 0x3ac   : > { %v5603_v33 = vsel %vm3330_vm6, %v3323_v63, %v2976_v53  ;;  %v6455_v53 = vld [vmem:[#allocation124_spill] sm:$0xff]  ;;  %v2193_v10 = vrot.slane %v5610_v23, 4  ;;  %v1745_v52 = vrot.slane %v6462_v58, 4  ;;  %v6464_v63 = vld [vmem:[#allocation98_spill] sm:$0xff]  ;;  %v5681_v14 = vperm.slane %v2284_v31, %v4005_v50  ;;  %v6479_v58 = vld [vmem:[#allocation33_spill] sm:$0xff] }
 0x3ad   : > { %3145 = vrot.lane.b32.xlu2 %v6452_v28, %s3815_s23  ;;  %v2259_v28 = vrot.slane %v6467_v45, 4  ;;  %v6478_v26 = vld [vmem:[#allocation8_spill] sm:$0xff] }
 0x3ae   : > { %v2194_v2 = vsel %vm1013_vm0, %v2193_v10, %v5639_v56  ;;  %v6472_v10 = vld [vmem:[#allocation10_spill] sm:$0xff] }
 0x3af   : > { %v5615_v0 = vpop.permute.xlu2 %3015  ;;  %3081 = vrot.lane.b32.xlu1 %v6454_v16, %s3813_s21  ;;  %3113 = vrot.lane.b32.xlu0 %v6455_v53, %s3814_s22  ;;  %v5654_v42 = vperm.slane %v2194_v2, %v4096_v41  ;;  %v6469_v53 = vld [vmem:[#allocation42_spill] sm:$0xff]  ;;  %v6475_v2 = vld [vmem:[#allocation100_spill] sm:$0xff] }
 0x3b0   : > { %v1746_v7 = vsel %vm1013_vm0, %v1745_v52, %v6469_v53 }
 0x3b1   : > { %v2918_v59 = vpop.permute.xlu1 %2917  ;;  %v2950_v13 = vpop.permute.xlu0 %2949 }
 0x3b2   : > { %v3317_v55 = vsel %vm3312_vm4, %v5388_v47, %v2918_v59 }
 0x3b3   : > { %v3326_v60 = vsel %vm3321_vm5, %v3317_v55, %v2950_v13  ;;  %v6470_v13 = vld [vmem:[#allocation47_spill] sm:$0xff] }
 0x3b4   : > { %v5636_v34 = vsel %vm3330_vm6, %v3326_v60, %v2982_v5  ;;  %v2237_v5 = vrot.slane %v5633_v24, 4  ;;  %v1770_v37 = vsel %vm1013_vm0, %v1769_v1, %v6470_v13  ;;  %v1275_v60 = vrot.slane %v6472_v10, 4  ;;  %v6485_v10 = vld [vmem:[#allocation6_spill] sm:$0xff] }
 0x3b5   : > { %3167 = vrot.lane.b32.xlu2 %v1454_v43, %s3816_s24  ;;  %v1752_v43 = vperm.slane %v1746_v7, %v4096_v41 }
 0x3b6   : > { %v2238_v62 = vsel %vm1013_vm0, %v2237_v5, %v5654_v42  ;;  %v2247_v5 = vrot.slane %v6475_v2, 4  ;;  %v1276_v1 = vsel %vm1013_vm0, %v6480_v18, %v1275_v60  ;;  %v6487_v2 = vld [vmem:[#allocation61_spill] sm:$0xff]  ;;  %v6490_v18 = vld [vmem:[#allocation60_spill] sm:$0xff] }
 0x3b7   : > { %v5642_v47 = vpop.permute.xlu2 %3037  ;;  %3103 = vrot.lane.b32.xlu1 %v6459_v57, %s3814_s22  ;;  %3135 = vrot.lane.b32.xlu0 %v6460_v6, %s3815_s23  ;;  %v6474_v57 = vld [vmem:[#allocation101_spill] sm:$0xff]  ;;  %v5735_v13 = vperm.slane %v1276_v1, %v4005_v50 }
 0x3b8   : > { %v2260_v6 = vsel %vm1013_vm0, %v6474_v57, %v2259_v28  ;;  %v1791_v28 = vrot.slane %v1752_v43, 4  ;;  %v6486_v57 = vld [vmem:[#allocation30_spill] sm:$0xff] }
 0x3b9   : > { %v2924_v51 = vpop.permute.xlu1 %2923  ;;  %v2956_v22 = vpop.permute.xlu0 %2955  ;;  %v5718_v25 = vperm.slane %v2260_v6, %v4005_v50 }
 0x3ba   : > { %v3320_v32 = vsel %vm3312_vm4, %v5497_v4, %v2924_v51  ;;  %v6476_v51 = vld [vmem:[#allocation103_spill] sm:$0xff] }
 0x3bb   : > { %v3329_v17 = vsel %vm3321_vm5, %v3320_v32, %v2956_v22  ;;  %v2272_v22 = vsel %vm1013_vm0, %v6476_v51, %v2271_v20  ;;  %v2329_v32 = vrot.slane %v5681_v14, 4  ;;  %v6483_v20 = vld [vmem:[#allocation31_spill] sm:$0xff]  ;;  %v6488_v51 = vld [vmem:[#allocation70_spill] sm:$0xff] }
 0x3bc   : > { %v5661_v61 = vsel %vm3330_vm6, %v3329_v17, %v2988_v38 }
 0x3bd   : > { %3173 = vrot.lane.b32.xlu2 %v2238_v62, %s3816_s24  ;;  %v1263_v62 = vrot.slane %v6478_v26, 4 }
 0x3bf   : > { %v5666_v4 = vpop.permute.xlu2 %3043  ;;  %3109 = vrot.lane.b32.xlu1 %v6464_v63, %s3814_s22  ;;  %3141 = vrot.lane.b32.xlu0 %v6465_v35, %s3815_s23  ;;  %v6481_v63 = vld [vmem:[#allocation14_spill] sm:$0xff] }
 0x3c0   : > { %v1239_v35 = vrot.slane %v6481_v63, 4 }
 0x3c1   : > { %v2946_v15 = vpop.permute.xlu1 %2945  ;;  %v2978_v38 = vpop.permute.xlu0 %2977 }
 0x3c2   : > { %v3324_v16 = vsel %vm3321_vm5, %v5512_v11, %v2946_v15  ;;  %v6473_v11 = vld [vmem:[#allocation35_spill] sm:$0xff]  ;;  %v1240_v60 = vsel %vm1013_vm0, %v6485_v10, %v1239_v35 }
 0x3c3   : > { %v3333_v59 = vsel %vm3330_vm6, %v3324_v16, %v2978_v38  ;;  %v1435_v49 = vrot.slane %v6473_v11, 4  ;;  %v6482_v15 = vld [vmem:[#allocation99_spill] sm:$0xff]  ;;  %v1411_v16 = vrot.slane %v6483_v20, 4  ;;  %v2305_v11 = vrot.slane %v5718_v25, 4 }
 0x3c4   : > { %v5689_v55 = vsel %vm3339_vm7, %v3333_v59, %v5584_v39  ;;  %v1776_v39 = vperm.slane %v1770_v37, %v4096_v41  ;;  %v2248_v38 = vsel %vm1013_vm0, %v6482_v15, %v2247_v5  ;;  %v6484_v37 = vld [vmem:[#allocation16_spill] sm:$0xff]  ;;  %v1811_v5 = vrot.slane %v6487_v2, 4  ;;  %v6495_v2 = vld [vmem:[#allocation118_spill] sm:$0xff] }
 0x3c5   : > { %3179 = vrot.lane.b32.xlu2 %v5242_v3, %s3816_s24  ;;  %v6477_v3 = vld [vmem:[#allocation7_spill] sm:$0xff]  ;;  %v1436_v52 = vsel %vm1013_vm0, %v6479_v58, %v1435_v49  ;;  %v1264_v8 = vsel %vm1013_vm0, %v6484_v37, %v1263_v62  ;;  %v5748_v49 = vperm.slane %v2248_v38, %v4005_v50  ;;  %v1412_v6 = vsel %vm1013_vm0, %v6486_v57, %v1411_v16  ;;  %v6489_v62 = vld [vmem:[#allocation52_spill] sm:$0xff]  ;;  %v6492_v38 = vld [vmem:[#allocation69_spill] sm:$0xff] }
 0x3c6   : > { %v1252_v54 = vsel %vm1013_vm0, %v6477_v3, %v1251_v29  ;;  %v1789_v36 = vrot.slane %v1776_v39, 4  ;;  %v5730_v7 = vperm.slane %v1436_v52, %v4096_v41  ;;  %v5763_v3 = vperm.slane %v1264_v8, %v4005_v50  ;;  %v6493_v37 = vld [vmem:[#allocation59_spill] sm:$0xff] }
 0x3c7   : > { %v5703_v17 = vpop.permute.xlu2 %3049  ;;  %3115 = vrot.lane.b32.xlu1 %v5245_v9, %s3814_s22  ;;  %3147 = vrot.lane.b32.xlu0 %v5235_v12, %s3815_s23  ;;  %v5721_v9 = vperm.slane %v2272_v22, %v4005_v50  ;;  %v1835_v22 = vrot.slane %v6488_v51, 4  ;;  %v5773_v52 = vperm.slane %v1240_v60, %v4005_v50  ;;  %v5777_v35 = vperm.slane %v1412_v6, %v4096_v41 }
 0x3c8   : > { %v1457_v58 = vrot.slane %v5730_v7, 4  ;;  %v1799_v8 = vrot.slane %v6493_v37, 4 }
 0x3c9   : > { %v2952_v12 = vpop.permute.xlu1 %2951  ;;  %v2984_v31 = vpop.permute.xlu0 %2983  ;;  %v2330_v59 = vsel %vm1013_vm0, %v2329_v32, %v5721_v9  ;;  %v5760_v32 = vperm.slane %v1252_v54, %v4005_v50  ;;  %v1823_v54 = vrot.slane %v6490_v18, 4  ;;  %v6498_v18 = vld [vmem:[#allocation121_spill] sm:$0xff] }
 0x3ca   : > { %v3327_v45 = vsel %vm3321_vm5, %v5535_v30, %v2952_v12  ;;  %v1792_v30 = vsel %vm1013_vm0, %v1776_v39, %v1791_v28  ;;  %v5757_v39 = vperm.slane %v2330_v59, %v4096_v41  ;;  %v2306_v12 = vsel %vm1013_vm0, %v2305_v11, %v5748_v49 }
 0x3cb   : > { %v3336_v53 = vsel %vm3330_vm6, %v3327_v45, %v2984_v31  ;;  %v6491_v31 = vld [vmem:[#allocation58_spill] sm:$0xff]  ;;  %v1836_v45 = vsel %vm1013_vm0, %v6492_v38, %v1835_v22  ;;  %v1297_v20 = vrot.slane %v5760_v32, 4  ;;  %v1458_v59 = vsel %vm1013_vm0, %v1457_v58, %v5777_v35  ;;  %v6497_v58 = vld [vmem:[#allocation64_spill] sm:$0xff] }
 0x3cc   : > { %v5742_v29 = vsel %vm3339_vm7, %v3336_v53, %v5615_v0  ;;  %v1790_v0 = vsel %vm1013_vm0, %v1789_v36, %v1752_v43  ;;  %v1321_v43 = vrot.slane %v5735_v13, 4  ;;  %v1812_v15 = vsel %vm1013_vm0, %v6491_v31, %v1811_v5 }
 0x3cd   : > { %3201 = vrot.lane.b32.xlu2 %v1792_v30, %s3817_s25  ;;  %v2349_v36 = vrot.slane %v5757_v39, 4  ;;  %v6494_v30 = vld [vmem:[#allocation71_spill] sm:$0xff]  ;;  %v5798_v60 = vperm.slane %v2306_v12, %v4096_v41  ;;  %v5805_v11 = vperm.slane %v1812_v15, %v4005_v50  ;;  %v5808_v57 = vperm.slane %v1836_v45, %v4005_v50 }
 0x3ce   : > { %v1322_v16 = vsel %vm1013_vm0, %v1321_v43, %v5763_v3  ;;  %v1824_v10 = vsel %vm1013_vm0, %v6494_v30, %v1823_v54  ;;  %v1298_v6 = vsel %vm1013_vm0, %v1297_v20, %v5773_v52  ;;  %v2619_v5 = vrot.slane %v6495_v2, 4  ;;  %v6501_v30 = vld [vmem:[#allocation115_spill] sm:$0xff] }
 0x3cf   : > { %v5765_v26 = vpop.permute.xlu2 %3071  ;;  %3137 = vrot.lane.b32.xlu1 %v6489_v62, %s3815_s23  ;;  %3169 = vrot.lane.b32.xlu0 %v1790_v0, %s3816_s24  ;;  %v2350_v51 = vsel %vm1013_vm0, %v2349_v36, %v5798_v60  ;;  %v5818_v22 = vperm.slane %v1824_v10, %v4005_v50  ;;  %v6496_v62 = vld [vmem:[#allocation114_spill] sm:$0xff]  ;;  %v1800_v43 = vsel %vm1013_vm0, %v6497_v58, %v1799_v8  ;;  %v1857_v31 = vrot.slane %v5805_v11, 4  ;;  %v6503_v58 = vld [vmem:[#allocation120_spill] sm:$0xff] }
 0x3d0   : > { %v2620_v54 = vsel %vm1013_vm0, %v6498_v18, %v2619_v5  ;;  %v1304_v12 = vperm.slane %v1298_v6, %v4096_v41  ;;  %v1881_v15 = vrot.slane %v5808_v57, 4  ;;  %v2595_v10 = vrot.slane %v6501_v30, 4  ;;  %v6502_v6 = vld [vmem:[#allocation50_spill] sm:$0xff] }
 0x3d1   : > { %v2974_v1 = vpop.permute.xlu1 %2973  ;;  %v3006_v63 = vpop.permute.xlu0 %3005  ;;  %v5840_v37 = vperm.slane %v2620_v54, %v4005_v50 }
 0x3d2   : > { %v3331_v28 = vsel %vm3330_vm6, %v5554_v27, %v2974_v1  ;;  %v6499_v1 = vld [vmem:[#allocation53_spill] sm:$0xff]  ;;  %v1343_v5 = vrot.slane %v1304_v12, 4 }
 0x3d3   : > { %v3340_v53 = vsel %vm3339_vm7, %v3331_v28, %v3006_v63  ;;  %v1793_v63 = vrot.slane %v6499_v1, 4  ;;  %v6500_v28 = vld [vmem:[#allocation116_spill] sm:$0xff] }
 0x3d4   : > { %v5802_v27 = vsel %vm3348_vm8, %v3340_v53, %v5642_v47  ;;  %v1328_v47 = vperm.slane %v1322_v16, %v4096_v41  ;;  %v2607_v36 = vrot.slane %v6500_v28, 4  ;;  %v1808_v53 = vperm.slane %v1800_v43, %v4005_v50 }
 0x3d5   : > { %3231 = vrot.lane.b32.xlu2 %v1458_v59, %s3818_s26  ;;  %v1882_v59 = vsel %vm1013_vm0, %v1881_v15, %v5818_v22  ;;  %v1794_v2 = vsel %vm1013_vm0, %v1793_v63, %v6502_v6  ;;  %v2665_v63 = vrot.slane %v5840_v37, 4 }
 0x3d6   : > { %v1341_v16 = vrot.slane %v1328_v47, 4  ;;  %v2608_v43 = vsel %vm1013_vm0, %v6503_v58, %v2607_v36  ;;  %v1344_v54 = vsel %vm1013_vm0, %v1328_v47, %v1343_v5  ;;  %v1888_v1 = vperm.slane %v1882_v59, %v4096_v41 }
 0x3d7   : > { %v5820_v0 = vpop.permute.xlu2 %3077  ;;  %3143 = vrot.lane.b32.xlu1 %v6496_v62, %s3815_s23  ;;  %3175 = vrot.lane.b32.xlu0 %v2350_v51, %s3816_s24  ;;  %v2219_v51 = vrot.slane %v5613_v40, 4  ;;  %v1858_v62 = vsel %vm1013_vm0, %v1857_v31, %v1808_v53  ;;  %v6504_v40 = vld [vmem:[#allocation113_spill] sm:$0xff]  ;;  %v6505_v31 = vld [vmem:[#allocation119_spill] sm:$0xff] }
 0x3d8   : > { %v1342_v18 = vsel %vm1013_vm0, %v1341_v16, %v1304_v12  ;;  %v2583_v15 = vrot.slane %v6504_v40, 4  ;;  %v5870_v12 = vperm.slane %v2608_v43, %v4005_v50  ;;  %v1901_v30 = vrot.slane %v1888_v1, 4 }
 0x3d9   : > { %v2980_v38 = vpop.permute.xlu1 %2979  ;;  %v3012_v45 = vpop.permute.xlu0 %3011  ;;  %v2220_v47 = vsel %vm1013_vm0, %v5592_v21, %v2219_v51 }
 0x3da   : > { %v3334_v20 = vsel %vm3330_vm6, %v5565_v19, %v2980_v38  ;;  %v2596_v38 = vsel %vm1013_vm0, %v6505_v31, %v2595_v10  ;;  %v2666_v21 = vsel %vm1013_vm0, %v2665_v63, %v5870_v12  ;;  %v5886_v51 = vperm.slane %v2220_v47, %v4096_v41 }
 0x3db   : > { %v3343_v8 = vsel %vm3339_vm7, %v3334_v20, %v3012_v45  ;;  %v1864_v45 = vperm.slane %v1858_v62, %v4096_v41  ;;  %v6506_v20 = vld [vmem:[#allocation117_spill] sm:$0xff]  ;;  %v5878_v10 = vperm.slane %v2596_v38, %v4005_v50  ;;  %v5900_v43 = vperm.slane %v2666_v21, %v4096_v41 }
 0x3dc   : > { %v5848_v19 = vsel %vm3348_vm8, %v3343_v8, %v5666_v4  ;;  %v2584_v16 = vsel %vm1013_vm0, %v6506_v20, %v2583_v15  ;;  %v1459_v8 = vrot.slane %v5777_v35, 4  ;;  %v2195_v35 = vrot.slane %v5639_v56, 4 }
 0x3dd   : > { %3233 = vrot.lane.b32.xlu2 %v1794_v2, %s3818_s26  ;;  %v1903_v5 = vrot.slane %v1864_v45, 4  ;;  %v5894_v62 = vperm.slane %v2584_v16, %v4005_v50  ;;  %v1902_v58 = vsel %vm1013_vm0, %v1901_v30, %v1864_v45  ;;  %v1859_v63 = vrot.slane %v1808_v53, 4 }
 0x3de   : > { %v1460_v2 = vsel %vm1013_vm0, %v5730_v7, %v1459_v8  ;;  %v2196_v50 = vsel %vm1013_vm0, %v5610_v23, %v2195_v35  ;;  %v2685_v38 = vrot.slane %v5900_v43, 4  ;;  %v1299_v35 = vrot.slane %v5773_v52, 4 }
 0x3df   : > { %3165 = vrot.lane.b32.xlu1 %v1342_v18, %s3816_s24  ;;  %v5860_v4 = vpop.permute.xlu2 %3083  ;;  %3197 = vrot.lane.b32.xlu0 %v1344_v54, %s3817_s25  ;;  %v1904_v7 = vsel %vm1013_vm0, %v1888_v1, %v1903_v5  ;;  %v1883_v18 = vrot.slane %v5818_v22, 4  ;;  %v2241_v54 = vrot.slane %v5886_v51, 4  ;;  %v2204_v31 = vperm.slane %v2196_v50, %v4096_v41 }
 0x3e0   : > { %v1860_v23 = vsel %vm1013_vm0, %v5805_v11, %v1859_v63 }
 0x3e1   : > { %v2986_v28 = vpop.permute.xlu1 %2985  ;;  %v3018_v36 = vpop.permute.xlu0 %3017  ;;  %v1884_v53 = vsel %vm1013_vm0, %v5808_v57, %v1883_v18  ;;  %v2242_v47 = vsel %vm1013_vm0, %v2241_v54, %v2204_v31  ;;  %v1868_v16 = vperm.slane %v1860_v23, %v4096_v41  ;;  %v2243_v54 = vrot.slane %v2204_v31, 4 }
 0x3e2   : > { %v3337_v59 = vsel %vm3330_vm6, %v5578_v46, %v2986_v28  ;;  %v1892_v57 = vperm.slane %v1884_v53, %v4096_v41 }
 0x3e3   : > { %v3346_v6 = vsel %vm3339_vm7, %v3337_v59, %v3018_v36  ;;  %v2239_v36 = vrot.slane %v5654_v42, 4  ;;  %v1323_v59 = vrot.slane %v5763_v3, 4 }
 0x3e4   : > { %v5890_v46 = vsel %vm3348_vm8, %v3346_v6, %v5703_v17  ;;  %v2641_v17 = vrot.slane %v5878_v10, 4  ;;  %v1907_v6 = vrot.slane %v1868_v16, 4  ;;  %v1905_v21 = vrot.slane %v1892_v57, 4 }
 0x3e5   : > { %3263 = vrot.lane.b32.xlu2 %v1460_v2, %s3819_s27  ;;  %v2240_v11 = vsel %vm1013_vm0, %v5633_v24, %v2239_v36  ;;  %v1324_v2 = vsel %vm1013_vm0, %v5735_v13, %v1323_v59  ;;  %v2331_v13 = vrot.slane %v5721_v9, 4  ;;  %v2351_v36 = vrot.slane %v5798_v60, 4 }
 0x3e6   : > { %v2642_v15 = vsel %vm1013_vm0, %v2641_v17, %v5894_v62  ;;  %v1908_v3 = vsel %vm1013_vm0, %v1892_v57, %v1907_v6 }
 0x3e7   : > { %3171 = vrot.lane.b32.xlu1 %v1902_v58, %s3816_s24  ;;  %v5905_v56 = vpop.permute.xlu2 %3105  ;;  %3203 = vrot.lane.b32.xlu0 %v1904_v7, %s3817_s25  ;;  %v2648_v28 = vperm.slane %v2642_v15, %v4096_v41  ;;  %v1906_v58 = vsel %vm1013_vm0, %v1905_v21, %v1868_v16  ;;  %v6507_v7 = vld [vmem:[#allocation39_spill] sm:$0xff]  ;;  %v2244_v15 = vsel %vm1013_vm0, %v5886_v51, %v2243_v54  ;;  %v2667_v51 = vrot.slane %v5870_v12, 4 }
 0x3e9   : > { %v3008_v1 = vpop.permute.xlu1 %3007  ;;  %v3040_v40 = vpop.permute.xlu0 %3039  ;;  %v2686_v20 = vsel %vm1013_vm0, %v2685_v38, %v2648_v28  ;;  %v2307_v38 = vrot.slane %v5748_v49, 4 }
 0x3ea   : > { %v3341_v22 = vsel %vm3339_vm7, %v5603_v33, %v3008_v1 }
 0x3eb   : > { %v3350_v45 = vsel %vm3348_vm8, %v3341_v22, %v3040_v40  ;;  %v2332_v40 = vsel %vm1013_vm0, %v5681_v14, %v2331_v13  ;;  %v2687_v22 = vrot.slane %v2648_v28, 4  ;;  %v2308_v49 = vsel %vm1013_vm0, %v5718_v25, %v2307_v38  ;;  %v6508_v13 = vld [vmem:[#allocation54_spill] sm:$0xff] }
 0x3ec   : > { %v5927_v33 = vsel %vm3357_vm9, %v3350_v45, %v5765_v26  ;;  %v2340_v14 = vperm.slane %v2332_v40, %v4096_v41  ;;  %v2316_v12 = vperm.slane %v2308_v49, %v4096_v41  ;;  %v2643_v25 = vrot.slane %v5894_v62, 4 }
 0x3ed   : > { %3237 = vrot.lane.b32.xlu2 %v2242_v47, %s3818_s26  ;;  %v2688_v31 = vsel %vm1013_vm0, %v5900_v43, %v2687_v22  ;;  %v2668_v43 = vsel %vm1013_vm0, %v5840_v37, %v2667_v51 }
 0x3ee   : > { %v2353_v53 = vrot.slane %v2340_v14, 4 }
 0x3ef   : > { %3177 = vrot.lane.b32.xlu1 %v2686_v20, %s3816_s24  ;;  %3205 = vrot.lane.b32.xlu0 %v2240_v11, %s3817_s25  ;;  %v5938_v42 = vpop.permute.xlu2 %3111  ;;  %v2676_v11 = vperm.slane %v2668_v43, %v4096_v41 }
 0x3f0   : > { %v2354_v37 = vsel %vm1013_vm0, %v2353_v53, %v2316_v12 }
 0x3f1   : > { %v3014_v26 = vpop.permute.xlu1 %3013  ;;  %v3046_v8 = vpop.permute.xlu0 %3045 }
 0x3f2   : > { %v3344_v30 = vsel %vm3339_vm7, %v5636_v34, %v3014_v26  ;;  %v1332_v34 = vperm.slane %v1324_v2, %v4096_v41 }
 0x3f3   : > { %v3353_v24 = vsel %vm3348_vm8, %v3344_v30, %v3046_v8 }
 0x3f4   : > { %v5948_v5 = vsel %vm3357_vm9, %v3353_v24, %v5820_v0  ;;  %v1300_v0 = vsel %vm1013_vm0, %v5760_v32, %v1299_v35  ;;  %v1345_v63 = vrot.slane %v1332_v34, 4  ;;  %v2355_v24 = vrot.slane %v2316_v12, 4 }
 0x3f5   : > { %3267 = vrot.lane.b32.xlu2 %v1908_v3, %s3819_s27  ;;  %v1308_v9 = vperm.slane %v1300_v0, %v4096_v41 }
 0x3f6   : > { %v2356_v2 = vsel %vm1013_vm0, %v2340_v14, %v2355_v24 }
 0x3f7   : > { %3199 = vrot.lane.b32.xlu1 %v6507_v7, %s3817_s25  ;;  %3235 = vrot.lane.b32.xlu0 %v1906_v58, %s3818_s26  ;;  %v3134_v50 = vpop.permute.xlu2 %3133 }
 0x3f9   : > { %v3020_v18 = vpop.permute.xlu1 %3019  ;;  %v3052_v17 = vpop.permute.xlu0 %3051 }
 0x3fa   : > { %v3347_v52 = vsel %vm3339_vm7, %v5661_v61, %v3020_v18  ;;  %v1346_v61 = vsel %vm1013_vm0, %v1345_v63, %v1308_v9 }
 0x3fb   : > { %v3356_v1 = vsel %vm3348_vm8, %v3347_v52, %v3052_v17 }
 0x3fc   : > { %v5970_v32 = vsel %vm3357_vm9, %v3356_v1, %v5860_v4 }
 0x3fd   : > { %3269 = vrot.lane.b32.xlu2 %v2244_v15, %s3819_s27 }
 0x3ff   : > { %3229 = vrot.lane.b32.xlu1 %v1346_v61, %s3818_s26  ;;  %3209 = vrot.lane.b32.xlu0 %v2688_v31, %s3817_s25  ;;  %v3140_v28 = vpop.permute.xlu2 %3139 }
 0x401   : > { %v3042_v45 = vpop.permute.xlu1 %3041  ;;  %v3074_v4 = vpop.permute.xlu0 %3073 }
 0x402   : > { %v3351_v23 = vsel %vm3348_vm8, %v5689_v55, %v3042_v45  ;;  %v2352_v55 = vsel %vm1013_vm0, %v5757_v39, %v2351_v36  ;;  %v1347_v39 = vrot.slane %v1308_v9, 4 }
 0x403   : > { %v3360_v47 = vsel %vm3357_vm9, %v3351_v23, %v3074_v4 }
 0x404   : > { %v5992_v20 = vsel %vm3366_vm10, %v3360_v47, %v5905_v56  ;;  %v2644_v56 = vsel %vm1013_vm0, %v5878_v10, %v2643_v25  ;;  %v1348_v30 = vsel %vm1013_vm0, %v1332_v34, %v1347_v39 }
 0x405   : > { %3275 = vrot.lane.b32.xlu2 %v5250_v48, %s3819_s27  ;;  %v2689_v48 = vrot.slane %v2676_v11, 4  ;;  %v2652_v59 = vperm.slane %v2644_v56, %v4096_v41 }
 0x407   : > { %3207 = vrot.lane.b32.xlu1 %v2352_v55, %s3817_s25  ;;  %3239 = vrot.lane.b32.xlu0 %v2354_v37, %s3818_s26  ;;  %v3146_v8 = vpop.permute.xlu2 %3145  ;;  %v2690_v6 = vsel %vm1013_vm0, %v2689_v48, %v2652_v59  ;;  %v2691_v40 = vrot.slane %v2652_v59, 4 }
 0x409   : > { %v3048_v60 = vpop.permute.xlu1 %3047  ;;  %v3080_v16 = vpop.permute.xlu0 %3079  ;;  %v2692_v15 = vsel %vm1013_vm0, %v2676_v11, %v2691_v40  ;;  %vm3452_vm0 = vcmask 261120  }
 0x40a   : > { %v3354_v62 = vsel %vm3348_vm8, %v5742_v29, %v3048_v60 }
 0x40b   : > { %v3363_v57 = vsel %vm3357_vm9, %v3354_v62, %v3080_v16 }
 0x40c   : > { %v3372_v26 = vsel %vm3366_vm10, %v3363_v57, %v5938_v42 }
 0x40f   : > { %3261 = vrot.lane.b32.xlu1 %v1348_v30, %s3819_s27  ;;  %3241 = vrot.lane.b32.xlu0 %v2690_v6, %s3818_s26  ;;  %v3168_v3 = vpop.permute.xlu2 %3167 }
 0x411   : > { %v3070_v10 = vpop.permute.xlu1 %3069  ;;  %v3102_v29 = vpop.permute.xlu0 %3101 }
 0x412   : > { %v3358_v21 = vsel %vm3357_vm9, %v5802_v27, %v3070_v10 }
 0x413   : > { %v3367_v41 = vsel %vm3366_vm10, %v3358_v21, %v3102_v29 }
 0x414   : > { %v6019_v42 = vsel %vm3375_vm11, %v3367_v41, %v3134_v50 }
 0x417   : > { %3211 = vrot.lane.b32.xlu1 %v5239_v44, %s3817_s25  ;;  %3271 = vrot.lane.b32.xlu0 %v2356_v2, %s3819_s27  ;;  %v3174_v0 = vpop.permute.xlu2 %3173 }
 0x419   : > { %v3076_v35 = vpop.permute.xlu1 %3075  ;;  %v3108_v58 = vpop.permute.xlu0 %3107 }
 0x41a   : > { %v3361_v34 = vsel %vm3357_vm9, %v5848_v19, %v3076_v35  ;;  %v6509_v19 = vld [vmem:[#allocation125_spill] sm:$0xff] }
 0x41b   : > { %v3370_v27 = vsel %vm3366_vm10, %v3361_v34, %v3108_v58 }
 0x41c   : > { %v6029_v7 = vsel %vm3375_vm11, %v3370_v27, %v3140_v28 }
 0x41f   : > { %3265 = vrot.lane.b32.xlu1 %v6508_v13, %s3819_s27  ;;  %v3180_v1 = vpop.permute.xlu2 %3179 }
 0x421   : > { %v3082_v18 = vpop.permute.xlu1 %3081  ;;  %v3114_v17 = vpop.permute.xlu0 %3113 }
 0x422   : > { %v3364_v44 = vsel %vm3357_vm9, %v5890_v46, %v3082_v18 }
 0x423   : > { %v3373_v50 = vsel %vm3366_vm10, %v3364_v44, %v3114_v17 }
 0x424   : > { %v6037_v52 = vsel %vm3375_vm11, %v3373_v50, %v3146_v8 }
 0x427   : > { %3243 = vrot.lane.b32.xlu1 %v6509_v19, %s3818_s26  ;;  %v3202_v38 = vpop.permute.xlu2 %3201 }
 0x429   : > { %v3104_v54 = vpop.permute.xlu1 %3103  ;;  %v3136_v63 = vpop.permute.xlu0 %3135 }
 0x42a   : > { %v3368_v56 = vsel %vm3366_vm10, %v5927_v33, %v3104_v54 }
 0x42b   : > { %v3377_v62 = vsel %vm3375_vm11, %v3368_v56, %v3136_v63 }
 0x42c   : > { %v3386_v59 = vsel %vm3384_vm12, %v3377_v62, %v3168_v3 }
 0x42f   : > { %3273 = vrot.lane.b32.xlu1 %v2692_v15, %s3819_s27  ;;  %v3232_v45 = vpop.permute.xlu2 %3231 }
 0x431   : > { %v3110_v9 = vpop.permute.xlu1 %3109  ;;  %v3142_v22 = vpop.permute.xlu0 %3141 }
 0x432   : > { %v3371_v48 = vsel %vm3366_vm10, %v5948_v5, %v3110_v9 }
 0x437   : > { %v3234_v36 = vpop.permute.xlu2 %3233 }
 0x439   : > { %v3116_v46 = vpop.permute.xlu1 %3115  ;;  %v3148_v61 = vpop.permute.xlu0 %3147 }
 0x43a   : > { %v3374_v31 = vsel %vm3366_vm10, %v5970_v32, %v3116_v46 }
 0x43b   : > { %v3383_v14 = vsel %vm3375_vm11, %v3374_v31, %v3148_v61 }
 0x43c   : > { %v6047_v51 = vsel %vm3384_vm12, %v3383_v14, %v3180_v1 }
 0x43f   : > { %v3264_v55 = vpop.permute.xlu2 %3263 }
 0x441   : > { %v3138_v4 = vpop.permute.xlu1 %3137  ;;  %v3170_v49 = vpop.permute.xlu0 %3169 }
 0x442   : > { %v3378_v23 = vsel %vm3375_vm11, %v5992_v20, %v3138_v4 }
 0x443   : > { %v3387_v53 = vsel %vm3384_vm12, %v3378_v23, %v3170_v49 }
 0x444   : > { %v3396_v43 = vsel %vm3393_vm13, %v3387_v53, %v3202_v38 }
 0x445   : > { %v3405_v63 = vsel %vm3402_vm14, %v3396_v43, %v3234_v36 }
 0x447   : > { %v3238_v60 = vpop.permute.xlu2 %3237 }
 0x449   : > { %v3144_v47 = vpop.permute.xlu1 %3143  ;;  %v3176_v28 = vpop.permute.xlu0 %3175 }
 0x44a   : > { %v3381_v32 = vsel %vm3375_vm11, %v3372_v26, %v3144_v47  ;;  %v3380_v26 = vsel %vm3375_vm11, %v3371_v48, %v3142_v22 }
 0x44b   : > { %v3389_v6 = vsel %vm3384_vm12, %v3380_v26, %v3174_v0 }
 0x44f   : > { %v3268_v57 = vpop.permute.xlu2 %3267 }
 0x451   : > { %v3166_v12 = vpop.permute.xlu1 %3165  ;;  %v3198_v25 = vpop.permute.xlu0 %3197 }
 0x452   : > { %v3385_v35 = vsel %vm3384_vm12, %v6019_v42, %v3166_v12 }
 0x453   : > { %v3394_v58 = vsel %vm3393_vm13, %v3385_v35, %v3198_v25 }
 0x457   : > { %v3270_v41 = vpop.permute.xlu2 %3269 }
 0x459   : > { %v3172_v37 = vpop.permute.xlu1 %3171  ;;  %v3204_v11 = vpop.permute.xlu0 %3203 }
 0x45a   : > { %v3388_v18 = vsel %vm3384_vm12, %v6029_v7, %v3172_v37  ;;  %v3390_v7 = vsel %vm3384_vm12, %v3381_v32, %v3176_v28 }
 0x45b   : > { %v3397_v0 = vsel %vm3393_vm13, %v3388_v18, %v3204_v11 }
 0x45f   : > { %v3276_v46 = vpop.permute.xlu2 %3275 }
 0x461   : > { %v3178_v16 = vpop.permute.xlu1 %3177  ;;  %v3206_v20 = vpop.permute.xlu0 %3205 }
 0x462   : > { %v3398_v5 = vsel %vm3393_vm13, %v3389_v6, %v3206_v20 }
 0x463   : > { %v3407_v29 = vsel %vm3402_vm14, %v3398_v5, %v3238_v60 }
 0x464   : > { %v3416_v24 = vsel %vm3411_vm15, %v3407_v29, %v3270_v41 }
 0x469   : > { %v3200_v39 = vpop.permute.xlu1 %3199  ;;  %v3236_v10 = vpop.permute.xlu0 %3235 }
 0x46a   : > { %v3395_v8 = vsel %vm3393_vm13, %v3386_v59, %v3200_v39  ;;  %v3406_v44 = vsel %vm3402_vm14, %v3397_v0, %v3236_v10 }
 0x46b   : > { %v3404_v30 = vsel %vm3402_vm14, %v3395_v8, %v3232_v45  ;;  %v3415_v42 = vsel %vm3411_vm15, %v3406_v44, %v3268_v57  ;;  %v3391_v45 = vsel %vm3384_vm12, %v6037_v52, %v3178_v16 }
 0x46c   : > { %v3413_v33 = vsel %vm3411_vm15, %v3404_v30, %v3264_v55 }
 0x46d   : > { %3430 = vrot.lane.b32.xlu1 %v3413_v33, %s3820_s28 }
 0x471   : > { %v3230_v21 = vpop.permute.xlu1 %3229  ;;  %v3210_v2 = vpop.permute.xlu0 %3209 }
 0x472   : > { %v3403_v34 = vsel %vm3402_vm14, %v3394_v58, %v3230_v21  ;;  %v3400_v4 = vsel %vm3393_vm13, %v3391_v45, %v3210_v2 }
 0x475   : > { %3436 = vrot.lane.b32.xlu1 %v3416_v24, %s3820_s28 }
 0x479   : > { %v3208_v3 = vpop.permute.xlu1 %3207  ;;  %v3240_v17 = vpop.permute.xlu0 %3239 }
 0x47a   : > { %v3399_v40 = vsel %vm3393_vm13, %v3390_v7, %v3208_v3 }
 0x47b   : > { %v3408_v9 = vsel %vm3402_vm14, %v3399_v40, %v3240_v17 }
 0x481   : > { %v3262_v27 = vpop.permute.xlu1 %3261  ;;  %v3242_v19 = vpop.permute.xlu0 %3241 }
 0x482   : > { %v3412_v13 = vsel %vm3411_vm15, %v3403_v34, %v3262_v27  ;;  %v3409_v49 = vsel %vm3402_vm14, %v3400_v4, %v3242_v19 }
 0x483   : > { %3428 = vrot.lane.b32.xlu0 %v3412_v13, %s3820_s28 }
 0x489   : > { %v3212_v50 = vpop.permute.xlu1 %3211  ;;  %v3272_v15 = vpop.permute.xlu0 %3271 }
 0x48a   : > { %v3401_v22 = vsel %vm3393_vm13, %v6047_v51, %v3212_v50  ;;  %v3417_v61 = vsel %vm3411_vm15, %v3408_v9, %v3272_v15 }
 0x48b   : > { %3434 = vrot.lane.b32.xlu0 %v3415_v42, %s3820_s28 }
 0x491   : > { %v3266_v54 = vpop.permute.xlu1 %3265 }
 0x492   : > { %v3414_v1 = vsel %vm3411_vm15, %v3405_v63, %v3266_v54 }
 0x493   : > { %3432 = vrot.lane.b32.xlu2 %v3414_v1, %s3820_s28 }
 0x499   : > { %v3244_v38 = vpop.permute.xlu1 %3243 }
 0x49a   : > { %v3410_v31 = vsel %vm3402_vm14, %v3401_v22, %v3244_v38 }
 0x49b   : > { %3438 = vrot.lane.b32.xlu2 %v3417_v61, %s3820_s28  ;;  %v3419_v14 = vsel %vm3411_vm15, %v3410_v31, %v3276_v46 }
 0x49c   : > { %3442 = vrot.lane.b32.xlu1 %v3419_v14, %s3820_s28 }
 0x4a1   : > { %v3274_v51 = vpop.permute.xlu1 %3273 }
 0x4a2   : > { %v3418_v23 = vsel %vm3411_vm15, %v3409_v49, %v3274_v51 }
 0x4a3   : > { %3440 = vrot.lane.b32.xlu0 %v3418_v23, %s3820_s28 }
 0x4df   : > { %v3431_v52 = vpop.permute.xlu1 %3430 }
 0x4e0   : > { %v3454_v53 = vsel %vm3452_vm0, %v3413_v33, %v3431_v52 }
 0x4e1   : > { %3463 = vst.msk [vmem:[%s169_s4 + $0x8] sm:$0xff] %vm3461_vm1, %v3454_v53 }
 0x4e7   : > { %v3437_v47 = vpop.permute.xlu1 %3436 }
 0x4e8   : > { %v3457_v12 = vsel %vm3452_vm0, %v3416_v24, %v3437_v47 }
 0x4e9   : > { %3466 = vst.msk [vmem:[%s169_s4 + $0x20] sm:$0xff] %vm3461_vm1, %v3457_v12 }
 0x4ed   : > { %v3433_v43 = vpop.permute.xlu2 %3432 }
 0x4ee   : > { %v3455_v36 = vsel %vm3452_vm0, %v3414_v1, %v3433_v43 }
 0x4ef   : > { %3464 = vst.msk [vmem:[%s169_s4 + $0x10] sm:$0xff] %vm3461_vm1, %v3455_v36 }
 0x4f5   : > { %v3429_v28 = vpop.permute.xlu0 %3428  ;;  %v3439_v25 = vpop.permute.xlu2 %3438 }
 0x4f6   : > { %v3453_v32 = vsel %vm3452_vm0, %v3412_v13, %v3429_v28  ;;  %v3458_v11 = vsel %vm3452_vm0, %v3417_v61, %v3439_v25 }
 0x4f7   : > { %3462 = vst.msk [vmem:[%s169_s4] sm:$0xff] %vm3461_vm1, %v3453_v32 }
 0x4f8   : > { %3467 = vst.msk [vmem:[%s169_s4 + $0x28] sm:$0xff] %vm3461_vm1, %v3458_v11 }
 0x4fd   : > { %v3435_v55 = vpop.permute.xlu0 %3434 }
 0x4fe   : > { %v3456_v37 = vsel %vm3452_vm0, %v3415_v42, %v3435_v55 }
 0x4ff   : > { %3465 = vst.msk [vmem:[%s169_s4 + $0x18] sm:$0xff] %vm3461_vm1, %v3456_v37 }
 0x50e   : > { %v3443_v60 = vpop.permute.xlu1 %3442 }
 0x50f   : > { %v3460_v16 = vsel %vm3452_vm0, %v3419_v14, %v3443_v60 }
 0x510   : > { %3469 = vst.msk [vmem:[%s169_s4 + $0x38] sm:$0xff] %vm3461_vm1, %v3460_v16 }
 0x515   : > { %v3441_v56 = vpop.permute.xlu0 %3440 }
 0x516   : > { %v3459_v20 = vsel %vm3452_vm0, %v3418_v23, %v3441_v56 }
 0x517   : > { %3468 = vst.msk [vmem:[%s169_s4 + $0x30] sm:$0xff] %vm3461_vm1, %v3459_v20 }
 0x518 PF: > { %s14_s11 = sadd.s32 1, %s3799_s11   ;;  %s6510_s6 = smov %s3783_s7 }
 0x519   : > { %p11_p0 = scmp.ge.s32.totalorder %s14_s11, 4   ;;  %s6511_s7 = smov %s3787_s8 }
 0x51a   : > { %s6512_s8 = smov %s3880_s18  ;;  %s6513_s9 = smov %s3795_s10 }
 0x51b   : > { %s6514_s10 = smov %s6516_s13  ;;  %13 = sbr.rel (!%p11_p0) target bundleno = 4 (0x4), region = 64 }
 0x520   :  { %3503 = vsyncpa [#allocation3], 1 }
 0x521   :  { %3505 = vsyncpa [#allocation3 + $0x1], 1 }

</bundles_post_ra>
